<compile_context>
chip_gen: v7x
topology: tpu7x:2x2x1
jax: 0.10.0
libtpu: 0.0.40
codegen_flags: <defaults>
</compile_context>

<pallas_src>
import functools

import jax
import jax.numpy as jnp
from jax.experimental import pallas as pl
from jax.experimental.pallas import tpu as pltpu

EPS = 1e-5


def _round_up(x, m):
    return (x + m - 1) // m * m


def _fold_bn(gamma, beta, mean, var):
    scale = gamma / jnp.sqrt(var + EPS)
    shift = beta - mean * scale
    return scale, shift


def _pad1(v, n):
    return jnp.pad(v, (0, n - v.shape[0]))


# ----------------------- fused _DenseLayer kernel ----------------------------
def _dense_layer_kernel(x_ref, s1_ref, b1_ref, w1_ref, b2_ref, w2_ref,
                        o_ref, a_ref, *, width):
    # x_ref : (1, H, WP, CINP) bf16   feature buffer, first CINP channels
    # s1/b1 : (1, CINP) f32           folded BN1 scale/shift (zero on pad chans)
    # w1    : (CINP, CMIDP) bf16      1x1 conv weight with BN2 scale folded in
    # b2    : (1, CMIDP) f32          folded BN2 shift
    # w2    : (3, 3, CMIDP, G) bf16   3x3 conv weight (HWIO)
    # o_ref : (1, H, WP, G) bf16      new features
    # a_ref : (H+2, WP, CMIDP) f32    row-halo'd bottleneck activation scratch
    _, h, wp, cinp = x_ref.shape
    cmidp = w1_ref.shape[1]
    g = o_ref.shape[3]
    m = h * wp

    # ---- pointwise stage: relu(bn2(relu(bn1(x)) @ W1)) ----------------------
    x = x_ref[0].reshape(m, cinp).astype(jnp.float32)
    hdd = jnp.maximum(x * s1_ref[...] + b1_ref[...], 0.0)            # BN1 + ReLU
    mid = jnp.dot(hdd.astype(jnp.bfloat16), w1_ref[...],             # 1x1 (MXU)
                  preferred_element_type=jnp.float32)
    a = jnp.maximum(mid + b2_ref[...], 0.0)                          # +b2, ReLU

    # Zero the padded image columns (col >= width) so the halo / roll
    # wrap-around below always picks up zeros ("SAME" padding in x).
    col = jax.lax.broadcasted_iota(jnp.int32, (m, 1), 0) % wp
    a = jnp.where(col < width, a, 0.0)

    # ---- stage into the row-halo'd scratch (rows 0 and H+1 are zero) --------
    a_ref[0] = jnp.zeros((wp, cmidp), jnp.float32)
    a_ref[h + 1] = jnp.zeros((wp, cmidp), jnp.float32)
    a_ref[pl.ds(1, h)] = a.reshape(h, wp, cmidp)

    # ---- 3x3 "SAME" conv: 9 matmuls over rolled / row-sliced views ----------
    # out[r, c] = sum_{dy,dx} A[(r+dy)*WP + c + dx - 1] @ w2[dy, dx]
    # with A the halo'd activation flattened over (row, col).
    n_flat = (h + 2) * wp
    A = a_ref[...].reshape(n_flat, cmidp)
    acc = jnp.zeros((m, g), jnp.float32)
    for dx in range(3):
        shift = (1 - dx) % n_flat
        shifted = A if shift == 0 else pltpu.roll(A, shift, axis=0)
        for dy in range(3):
            slab = shifted[dy * wp:dy * wp + m, :].astype(jnp.bfloat16)
            acc = acc + jnp.dot(slab, w2_ref[dy, dx],
                                preferred_element_type=jnp.float32)
    o_ref[0] = acc.reshape(h, wp, g).astype(o_ref.dtype)


def _dense_layer(buf, s1, b1, w1, b2, w2, *, h, w, wp, cin_pad, growth):
    n = buf.shape[0]
    cmid_pad = w1.shape[1]
    kernel = functools.partial(_dense_layer_kernel, width=w)
    return pl.pallas_call(
        kernel,
        out_shape=jax.ShapeDtypeStruct((n, h, wp, growth), jnp.bfloat16),
        grid_spec=pltpu.PrefetchScalarGridSpec(
            num_scalar_prefetch=0,
            grid=(n,),
            in_specs=[
                # Only the live (128-rounded) channels of the feature buffer.
                pl.BlockSpec((1, h, wp, cin_pad), lambda i: (i, 0, 0, 0)),
                pl.BlockSpec((1, cin_pad), lambda i: (0, 0)),
                pl.BlockSpec((1, cin_pad), lambda i: (0, 0)),
                pl.BlockSpec((cin_pad, cmid_pad), lambda i: (0, 0)),
                pl.BlockSpec((1, cmid_pad), lambda i: (0, 0)),
                pl.BlockSpec((3, 3, cmid_pad, growth), lambda i: (0, 0, 0, 0)),
            ],
            out_specs=pl.BlockSpec((1, h, wp, growth), lambda i: (i, 0, 0, 0)),
            scratch_shapes=[pltpu.VMEM((h + 2, wp, cmid_pad), jnp.float32)],
        ),
        compiler_params=pltpu.CompilerParams(
            dimension_semantics=("parallel",)),
    )(buf, s1[None, :], b1[None, :], w1, b2[None, :], w2)


# --------------------------- DenseBlock wrapper ------------------------------
def dense_block_pallas(x_nchw, params):
    x = jnp.transpose(x_nchw, (0, 2, 3, 1))                       # NHWC
    n, h, w, c0 = x.shape
    growth = params[0]["w2"].shape[-1]
    n_layers = len(params)
    c_total = c0 + n_layers * growth
    c_pad = _round_up(c_total, 128)          # lane-padded channel capacity
    wp = _round_up(w + 2, 8)                 # >= W+2 zero pad cols, sublane aligned

    # Pre-allocated, padded, bf16 feature buffer (replaces per-layer concat).
    buf = jnp.zeros((n, h, wp, c_pad), jnp.bfloat16)
    buf = jax.lax.dynamic_update_slice(buf, x.astype(jnp.bfloat16), (0, 0, 0, 0))

    for li, p in enumerate(params):
        cin = c0 + li * growth
        cin_pad = min(_round_up(cin, 128), c_pad)
        cmid = p["w1"].shape[1]
        cmid_pad = _round_up(cmid, 128)

        s1, b1 = _fold_bn(p["g1"], p["b1"], p["m1"], p["v1"])
        s2, b2 = _fold_bn(p["g2"], p["b2"], p["m2"], p["v2"])

        # Fold BN2 scale into W1 (exact); zero-pad all MXU operands to
        # multiples of 128 on the channel dims.
        w1_eff = jnp.pad(p["w1"] * s2[None, :],
                         ((0, cin_pad - cin), (0, cmid_pad - cmid)))
        w1_eff = w1_eff.astype(jnp.bfloat16)
        w2_p = jnp.pad(p["w2"], ((0, 0), (0, 0), (0, cmid_pad - cmid), (0, 0)))
        w2_p = w2_p.astype(jnp.bfloat16)

        new = _dense_layer(
            buf, _pad1(s1, cin_pad), _pad1(b1, cin_pad), w1_eff,
            _pad1(b2, cmid_pad), w2_p,
            h=h, w=w, wp=wp, cin_pad=cin_pad, growth=growth)

        # torch.cat(dim=1): write the G new channels into the buffer slab.
        buf = jax.lax.dynamic_update_slice(buf, new, (0, 0, 0, cin))

    out = buf[:, :, :w, :c_total].astype(jnp.float32)             # drop padding
    return jnp.transpose(out, (0, 3, 1, 2))                       # back to NCHW


# ---------------------------- reference (JAX) --------------------------------
def dense_block_ref(x_nchw, params):
    x = jnp.transpose(x_nchw, (0, 2, 3, 1)).astype(jnp.float32)
    for p in params:
        s1, b1 = _fold_bn(p["g1"], p["b1"], p["m1"], p["v1"])
        s2, b2 = _fold_bn(p["g2"], p["b2"], p["m2"], p["v2"])
        hdd = jnp.maximum(x * s1 + b1, 0.0)
        mid = jnp.einsum("nhwc,cd->nhwd", hdd, p["w1"])
        a = jnp.maximum(mid * s2 + b2, 0.0)
        new = jax.lax.conv_general_dilated(
            a, p["w2"], window_strides=(1, 1), padding="SAME",
            dimension_numbers=("NHWC", "HWIO", "NHWC"))
        x = jnp.concatenate([x, new], axis=-1)
    return jnp.transpose(x, (0, 3, 1, 2))


# ---------------------------- parameter init ---------------------------------
def init_params(key, num_layers, num_input_features, bn_size, growth_rate):
    params = []
    cin = num_input_features
    cmid = bn_size * growth_rate
    for _ in range(num_layers):
        key, *ks = jax.random.split(key, 11)
        p = dict(
            g1=1.0 + 0.1 * jax.random.normal(ks[0], (cin,)),
            b1=0.1 * jax.random.normal(ks[1], (cin,)),
            m1=0.1 * jax.random.normal(ks[2], (cin,)),
            v1=1.0 + 0.1 * jax.random.uniform(ks[3], (cin,)),
            w1=0.2 * jax.random.normal(ks[4], (cin, cmid)),               # 1x1 conv
            g2=1.0 + 0.1 * jax.random.normal(ks[5], (cmid,)),
            b2=0.1 * jax.random.normal(ks[6], (cmid,)),
            m2=0.1 * jax.random.normal(ks[7], (cmid,)),
            v2=1.0 + 0.1 * jax.random.uniform(ks[8], (cmid,)),
            w2=0.2 * jax.random.normal(ks[9], (3, 3, cmid, growth_rate)),  # 3x3 conv
        )
        params.append({k: v.astype(jnp.float32) for k, v in p.items()})
        cin += growth_rate
    return params


if __name__ == "__main__":
    num_layers, num_input_features = 3, 4
    bn_size, growth_rate, drop_rate = 2, 4, 0.0

    key = jax.random.PRNGKey(0)
    kx, kp = jax.random.split(key)
    x = jax.random.normal(kx, (2, num_input_features, 16, 16), jnp.float32)
    params = init_params(kp, num_layers, num_input_features, bn_size, growth_rate)

    fwd = jax.jit(dense_block_pallas)
    out = jax.block_until_ready(fwd(x, params))
    ref = dense_block_ref(x, params)

    expected_c = num_input_features + num_layers * growth_rate
    assert out.shape == (2, expected_c, 16, 16), out.shape
    scale = float(jnp.max(jnp.abs(ref)))
    max_err = float(jnp.max(jnp.abs(out - ref)))
    # bf16 MXU operands + bf16 feature buffer -> tolerance scaled to |ref|.
    assert max_err <= 3e-2 * max(scale, 1.0), f"max abs err {max_err} (ref scale {scale})"
    print("KERNEL_OK")
</pallas_src>

<mosaic_0001>
module attributes {stable_mosaic.version = 11 : i64} {
  func.func @_dense_layer_kernel(%arg0: i32, %arg1: memref<1x16x24x128xbf16, #tpu.memory_space<vmem>>, %arg2: memref<1x128xf32, #tpu.memory_space<vmem>>, %arg3: memref<1x128xf32, #tpu.memory_space<vmem>>, %arg4: memref<128x128xbf16, #tpu.memory_space<vmem>>, %arg5: memref<1x128xf32, #tpu.memory_space<vmem>>, %arg6: memref<3x3x128x4xbf16, #tpu.memory_space<vmem>>, %arg7: memref<1x16x24x4xbf16, #tpu.memory_space<vmem>>, %arg8: memref<18x24x128xf32, #tpu.memory_space<vmem>>) attributes {dimension_semantics = [#tpu.dimension_semantics<parallel>], iteration_bounds = array<i64: 2>, scalar_prefetch = 0 : i64, scratch_operands = 1 : i64, tpu.core_type = #tpu.core_type<tc>, window_params = [{transform_indices = @transform_0, window_bounds = array<i64: 1, 16, 24, 128>}, {pipeline_mode = #tpu.pipeline_mode<synchronous>, transform_indices = @transform_1, window_bounds = array<i64: 1, 128>}, {pipeline_mode = #tpu.pipeline_mode<synchronous>, transform_indices = @transform_2, window_bounds = array<i64: 1, 128>}, {pipeline_mode = #tpu.pipeline_mode<synchronous>, transform_indices = @transform_3, window_bounds = array<i64: 128, 128>}, {pipeline_mode = #tpu.pipeline_mode<synchronous>, transform_indices = @transform_4, window_bounds = array<i64: 1, 128>}, {pipeline_mode = #tpu.pipeline_mode<synchronous>, transform_indices = @transform_5, window_bounds = array<i64: 3, 3, 128, 4>}, {transform_indices = @transform_6, window_bounds = array<i64: 1, 16, 24, 4>}]} {
    %c0 = arith.constant 0 : index
    %c0_0 = arith.constant 0 : index
    %c0_1 = arith.constant 0 : index
    %c0_2 = arith.constant 0 : index
    %0 = vector.load %arg1[%c0, %c0_0, %c0_1, %c0_2] : memref<1x16x24x128xbf16, #tpu.memory_space<vmem>>, vector<1x16x24x128xbf16>
    %1 = vector.shape_cast %0 : vector<1x16x24x128xbf16> to vector<16x24x128xbf16>
    %2 = vector.shape_cast %1 : vector<16x24x128xbf16> to vector<384x128xbf16>
    %3 = arith.extf %2 : vector<384x128xbf16> to vector<384x128xf32>
    %c0_3 = arith.constant 0 : index
    %c0_4 = arith.constant 0 : index
    %4 = vector.load %arg2[%c0_3, %c0_4] : memref<1x128xf32, #tpu.memory_space<vmem>>, vector<1x128xf32>
    %5 = vector.broadcast %4 : vector<1x128xf32> to vector<384x128xf32>
    %6 = arith.mulf %3, %5 : vector<384x128xf32>
    %c0_5 = arith.constant 0 : index
    %c0_6 = arith.constant 0 : index
    %7 = vector.load %arg3[%c0_5, %c0_6] : memref<1x128xf32, #tpu.memory_space<vmem>>, vector<1x128xf32>
    %8 = vector.broadcast %7 : vector<1x128xf32> to vector<384x128xf32>
    %9 = arith.addf %6, %8 : vector<384x128xf32>
    %cst = arith.constant 0.000000e+00 : f32
    %10 = vector.broadcast %cst : f32 to vector<384x128xf32>
    %11 = arith.maximumf %9, %10 : vector<384x128xf32>
    %12 = arith.truncf %11 : vector<384x128xf32> to vector<384x128xbf16>
    %c0_7 = arith.constant 0 : index
    %c0_8 = arith.constant 0 : index
    %13 = vector.load %arg4[%c0_7, %c0_8] : memref<128x128xbf16, #tpu.memory_space<vmem>>, vector<128x128xbf16>
    %cst_9 = arith.constant dense<0.000000e+00> : vector<384x128xf32>
    %14 = tpu.matmul %12, %13, %cst_9 {dimension_numbers = #tpu.dot_dimension_numbers<[1], [0], [0], [1], [0, 0, 1, 1], [], []>} : vector<384x128xbf16>, vector<128x128xbf16>, vector<384x128xf32> -> vector<384x128xf32>
    %c0_10 = arith.constant 0 : index
    %c0_11 = arith.constant 0 : index
    %15 = vector.load %arg5[%c0_10, %c0_11] : memref<1x128xf32, #tpu.memory_space<vmem>>, vector<1x128xf32>
    %16 = vector.broadcast %15 : vector<1x128xf32> to vector<384x128xf32>
    %17 = arith.addf %14, %16 : vector<384x128xf32>
    %cst_12 = arith.constant 0.000000e+00 : f32
    %18 = vector.broadcast %cst_12 : f32 to vector<384x128xf32>
    %19 = arith.maximumf %17, %18 : vector<384x128xf32>
    %20 = tpu.iota {dimensions = array<i32: 0>} : vector<384x1xi32>
    %c24_i32 = arith.constant 24 : i32
    %c0_i32 = arith.constant 0 : i32
    %21 = arith.cmpi eq, %c24_i32, %c0_i32 : i32
    %c1_i32 = arith.constant 1 : i32
    %22 = arith.select %21, %c1_i32, %c24_i32 : i32
    %23 = vector.broadcast %22 : i32 to vector<384x1xi32>
    %24 = arith.remsi %20, %23 : vector<384x1xi32>
    %c0_i32_13 = arith.constant 0 : i32
    %25 = vector.broadcast %c0_i32_13 : i32 to vector<384x1xi32>
    %26 = arith.cmpi ne, %24, %25 : vector<384x1xi32>
    %c0_i32_14 = arith.constant 0 : i32
    %27 = vector.broadcast %c0_i32_14 : i32 to vector<384x1xi32>
    %28 = arith.cmpi slt, %24, %27 : vector<384x1xi32>
    %c0_i32_15 = arith.constant 0 : i32
    %29 = arith.cmpi slt, %22, %c0_i32_15 : i32
    %30 = vector.broadcast %29 : i1 to vector<384x1xi1>
    %31 = vector.broadcast %30 : vector<384x1xi1> to vector<384x1xi1>
    %32 = arith.xori %28, %31 : vector<384x1xi1>
    %33 = arith.andi %32, %26 : vector<384x1xi1>
    %34 = vector.broadcast %22 : i32 to vector<384x1xi32>
    %35 = arith.addi %24, %34 : vector<384x1xi32>
    %36 = arith.select %33, %35, %24 : vector<384x1xi1>, vector<384x1xi32>
    %c16_i32 = arith.constant 16 : i32
    %37 = vector.broadcast %c16_i32 : i32 to vector<384x1xi32>
    %38 = arith.cmpi slt, %36, %37 : vector<384x1xi32>
    %cst_16 = arith.constant 0.000000e+00 : f32
    %39 = vector.shape_cast %38 : vector<384x1xi1> to vector<384x1xi1>
    %40 = vector.broadcast %39 : vector<384x1xi1> to vector<384x128xi1>
    %41 = vector.broadcast %cst_16 : f32 to vector<384x128xf32>
    %42 = arith.select %40, %19, %41 : vector<384x128xi1>, vector<384x128xf32>
    %cst_17 = arith.constant 0.000000e+00 : f32
    %43 = vector.broadcast %cst_17 : f32 to vector<24x128xf32>
    %c0_18 = arith.constant 0 : index
    %c0_19 = arith.constant 0 : index
    %c0_20 = arith.constant 0 : index
    %44 = vector.load %arg8[%c0_18, %c0_19, %c0_20] : memref<18x24x128xf32, #tpu.memory_space<vmem>>, vector<1x24x128xf32>
    %45 = vector.shape_cast %44 : vector<1x24x128xf32> to vector<24x128xf32>
    %46 = vector.shape_cast %43 : vector<24x128xf32> to vector<1x24x128xf32>
    tpu.vector_store %arg8[%c0_18, %c0_19, %c0_20], %46 {strides = array<i32>} : memref<18x24x128xf32, #tpu.memory_space<vmem>>, vector<1x24x128xf32>,
    %cst_21 = arith.constant 0.000000e+00 : f32
    %47 = vector.broadcast %cst_21 : f32 to vector<24x128xf32>
    %c17 = arith.constant 17 : index
    %c0_22 = arith.constant 0 : index
    %c0_23 = arith.constant 0 : index
    %48 = vector.load %arg8[%c17, %c0_22, %c0_23] : memref<18x24x128xf32, #tpu.memory_space<vmem>>, vector<1x24x128xf32>
    %49 = vector.shape_cast %48 : vector<1x24x128xf32> to vector<24x128xf32>
    %50 = vector.shape_cast %47 : vector<24x128xf32> to vector<1x24x128xf32>
    tpu.vector_store %arg8[%c17, %c0_22, %c0_23], %50 {strides = array<i32>} : memref<18x24x128xf32, #tpu.memory_space<vmem>>, vector<1x24x128xf32>,
    %51 = vector.shape_cast %42 : vector<384x128xf32> to vector<16x24x128xf32>
    %c1 = arith.constant 1 : index
    %c0_24 = arith.constant 0 : index
    %c0_25 = arith.constant 0 : index
    %52 = vector.load %arg8[%c1, %c0_24, %c0_25] : memref<18x24x128xf32, #tpu.memory_space<vmem>>, vector<16x24x128xf32>
    tpu.vector_store %arg8[%c1, %c0_24, %c0_25], %51 {strides = array<i32>} : memref<18x24x128xf32, #tpu.memory_space<vmem>>, vector<16x24x128xf32>,
    %c0_26 = arith.constant 0 : index
    %c0_27 = arith.constant 0 : index
    %c0_28 = arith.constant 0 : index
    %53 = vector.load %arg8[%c0_26, %c0_27, %c0_28] : memref<18x24x128xf32, #tpu.memory_space<vmem>>, vector<18x24x128xf32>
    %54 = vector.shape_cast %53 : vector<18x24x128xf32> to vector<432x128xf32>
    %cst_29 = arith.constant 0.000000e+00 : f32
    %55 = vector.broadcast %cst_29 : f32 to vector<384x4xf32>
    %c1_i32_30 = arith.constant 1 : i32
    %56 = tpu.dynamic_rotate %54 by %c1_i32_30 dim 0 : vector<432x128xf32>, i32 -> vector<432x128xf32>
    %57 = vector.extract_strided_slice %56 {offsets = [0, 0], sizes = [384, 128], strides = [1, 1]} : vector<432x128xf32> to vector<384x128xf32>
    %58 = arith.truncf %57 : vector<384x128xf32> to vector<384x128xbf16>
    %c0_31 = arith.constant 0 : index
    %c0_32 = arith.constant 0 : index
    %c0_33 = arith.constant 0 : index
    %c0_34 = arith.constant 0 : index
    %59 = vector.load %arg6[%c0_31, %c0_32, %c0_33, %c0_34] : memref<3x3x128x4xbf16, #tpu.memory_space<vmem>>, vector<1x1x128x4xbf16>
    %60 = vector.shape_cast %59 : vector<1x1x128x4xbf16> to vector<128x4xbf16>
    %cst_35 = arith.constant dense<0.000000e+00> : vector<384x4xf32>
    %61 = tpu.matmul %58, %60, %cst_35 {dimension_numbers = #tpu.dot_dimension_numbers<[1], [0], [0], [1], [0, 0, 1, 1], [], []>} : vector<384x128xbf16>, vector<128x4xbf16>, vector<384x4xf32> -> vector<384x4xf32>
    %62 = arith.addf %55, %61 : vector<384x4xf32>
    %63 = vector.extract_strided_slice %56 {offsets = [24, 0], sizes = [384, 128], strides = [1, 1]} : vector<432x128xf32> to vector<384x128xf32>
    %64 = arith.truncf %63 : vector<384x128xf32> to vector<384x128xbf16>
    %c1_36 = arith.constant 1 : index
    %c0_37 = arith.constant 0 : index
    %c0_38 = arith.constant 0 : index
    %c0_39 = arith.constant 0 : index
    %65 = vector.load %arg6[%c1_36, %c0_37, %c0_38, %c0_39] : memref<3x3x128x4xbf16, #tpu.memory_space<vmem>>, vector<1x1x128x4xbf16>
    %66 = vector.shape_cast %65 : vector<1x1x128x4xbf16> to vector<128x4xbf16>
    %cst_40 = arith.constant dense<0.000000e+00> : vector<384x4xf32>
    %67 = tpu.matmul %64, %66, %cst_40 {dimension_numbers = #tpu.dot_dimension_numbers<[1], [0], [0], [1], [0, 0, 1, 1], [], []>} : vector<384x128xbf16>, vector<128x4xbf16>, vector<384x4xf32> -> vector<384x4xf32>
    %68 = arith.addf %62, %67 : vector<384x4xf32>
    %69 = vector.extract_strided_slice %56 {offsets = [48, 0], sizes = [384, 128], strides = [1, 1]} : vector<432x128xf32> to vector<384x128xf32>
    %70 = arith.truncf %69 : vector<384x128xf32> to vector<384x128xbf16>
    %c2 = arith.constant 2 : index
    %c0_41 = arith.constant 0 : index
    %c0_42 = arith.constant 0 : index
    %c0_43 = arith.constant 0 : index
    %71 = vector.load %arg6[%c2, %c0_41, %c0_42, %c0_43] : memref<3x3x128x4xbf16, #tpu.memory_space<vmem>>, vector<1x1x128x4xbf16>
    %72 = vector.shape_cast %71 : vector<1x1x128x4xbf16> to vector<128x4xbf16>
    %cst_44 = arith.constant dense<0.000000e+00> : vector<384x4xf32>
    %73 = tpu.matmul %70, %72, %cst_44 {dimension_numbers = #tpu.dot_dimension_numbers<[1], [0], [0], [1], [0, 0, 1, 1], [], []>} : vector<384x128xbf16>, vector<128x4xbf16>, vector<384x4xf32> -> vector<384x4xf32>
    %74 = arith.addf %68, %73 : vector<384x4xf32>
    %75 = vector.extract_strided_slice %54 {offsets = [0, 0], sizes = [384, 128], strides = [1, 1]} : vector<432x128xf32> to vector<384x128xf32>
    %76 = arith.truncf %75 : vector<384x128xf32> to vector<384x128xbf16>
    %c0_45 = arith.constant 0 : index
    %c1_46 = arith.constant 1 : index
    %c0_47 = arith.constant 0 : index
    %c0_48 = arith.constant 0 : index
    %77 = vector.load %arg6[%c0_45, %c1_46, %c0_47, %c0_48] : memref<3x3x128x4xbf16, #tpu.memory_space<vmem>>, vector<1x1x128x4xbf16>
    %78 = vector.shape_cast %77 : vector<1x1x128x4xbf16> to vector<128x4xbf16>
    %cst_49 = arith.constant dense<0.000000e+00> : vector<384x4xf32>
    %79 = tpu.matmul %76, %78, %cst_49 {dimension_numbers = #tpu.dot_dimension_numbers<[1], [0], [0], [1], [0, 0, 1, 1], [], []>} : vector<384x128xbf16>, vector<128x4xbf16>, vector<384x4xf32> -> vector<384x4xf32>
    %80 = arith.addf %74, %79 : vector<384x4xf32>
    %81 = vector.extract_strided_slice %54 {offsets = [24, 0], sizes = [384, 128], strides = [1, 1]} : vector<432x128xf32> to vector<384x128xf32>
    %82 = arith.truncf %81 : vector<384x128xf32> to vector<384x128xbf16>
    %c1_50 = arith.constant 1 : index
    %c1_51 = arith.constant 1 : index
    %c0_52 = arith.constant 0 : index
    %c0_53 = arith.constant 0 : index
    %83 = vector.load %arg6[%c1_50, %c1_51, %c0_52, %c0_53] : memref<3x3x128x4xbf16, #tpu.memory_space<vmem>>, vector<1x1x128x4xbf16>
    %84 = vector.shape_cast %83 : vector<1x1x128x4xbf16> to vector<128x4xbf16>
    %cst_54 = arith.constant dense<0.000000e+00> : vector<384x4xf32>
    %85 = tpu.matmul %82, %84, %cst_54 {dimension_numbers = #tpu.dot_dimension_numbers<[1], [0], [0], [1], [0, 0, 1, 1], [], []>} : vector<384x128xbf16>, vector<128x4xbf16>, vector<384x4xf32> -> vector<384x4xf32>
    %86 = arith.addf %80, %85 : vector<384x4xf32>
    %87 = vector.extract_strided_slice %54 {offsets = [48, 0], sizes = [384, 128], strides = [1, 1]} : vector<432x128xf32> to vector<384x128xf32>
    %88 = arith.truncf %87 : vector<384x128xf32> to vector<384x128xbf16>
    %c2_55 = arith.constant 2 : index
    %c1_56 = arith.constant 1 : index
    %c0_57 = arith.constant 0 : index
    %c0_58 = arith.constant 0 : index
    %89 = vector.load %arg6[%c2_55, %c1_56, %c0_57, %c0_58] : memref<3x3x128x4xbf16, #tpu.memory_space<vmem>>, vector<1x1x128x4xbf16>
    %90 = vector.shape_cast %89 : vector<1x1x128x4xbf16> to vector<128x4xbf16>
    %cst_59 = arith.constant dense<0.000000e+00> : vector<384x4xf32>
    %91 = tpu.matmul %88, %90, %cst_59 {dimension_numbers = #tpu.dot_dimension_numbers<[1], [0], [0], [1], [0, 0, 1, 1], [], []>} : vector<384x128xbf16>, vector<128x4xbf16>, vector<384x4xf32> -> vector<384x4xf32>
    %92 = arith.addf %86, %91 : vector<384x4xf32>
    %c431_i32 = arith.constant 431 : i32
    %93 = tpu.dynamic_rotate %54 by %c431_i32 dim 0 : vector<432x128xf32>, i32 -> vector<432x128xf32>
    %94 = vector.extract_strided_slice %93 {offsets = [0, 0], sizes = [384, 128], strides = [1, 1]} : vector<432x128xf32> to vector<384x128xf32>
    %95 = arith.truncf %94 : vector<384x128xf32> to vector<384x128xbf16>
    %c0_60 = arith.constant 0 : index
    %c2_61 = arith.constant 2 : index
    %c0_62 = arith.constant 0 : index
    %c0_63 = arith.constant 0 : index
    %96 = vector.load %arg6[%c0_60, %c2_61, %c0_62, %c0_63] : memref<3x3x128x4xbf16, #tpu.memory_space<vmem>>, vector<1x1x128x4xbf16>
    %97 = vector.shape_cast %96 : vector<1x1x128x4xbf16> to vector<128x4xbf16>
    %cst_64 = arith.constant dense<0.000000e+00> : vector<384x4xf32>
    %98 = tpu.matmul %95, %97, %cst_64 {dimension_numbers = #tpu.dot_dimension_numbers<[1], [0], [0], [1], [0, 0, 1, 1], [], []>} : vector<384x128xbf16>, vector<128x4xbf16>, vector<384x4xf32> -> vector<384x4xf32>
    %99 = arith.addf %92, %98 : vector<384x4xf32>
    %100 = vector.extract_strided_slice %93 {offsets = [24, 0], sizes = [384, 128], strides = [1, 1]} : vector<432x128xf32> to vector<384x128xf32>
    %101 = arith.truncf %100 : vector<384x128xf32> to vector<384x128xbf16>
    %c1_65 = arith.constant 1 : index
    %c2_66 = arith.constant 2 : index
    %c0_67 = arith.constant 0 : index
    %c0_68 = arith.constant 0 : index
    %102 = vector.load %arg6[%c1_65, %c2_66, %c0_67, %c0_68] : memref<3x3x128x4xbf16, #tpu.memory_space<vmem>>, vector<1x1x128x4xbf16>
    %103 = vector.shape_cast %102 : vector<1x1x128x4xbf16> to vector<128x4xbf16>
    %cst_69 = arith.constant dense<0.000000e+00> : vector<384x4xf32>
    %104 = tpu.matmul %101, %103, %cst_69 {dimension_numbers = #tpu.dot_dimension_numbers<[1], [0], [0], [1], [0, 0, 1, 1], [], []>} : vector<384x128xbf16>, vector<128x4xbf16>, vector<384x4xf32> -> vector<384x4xf32>
    %105 = arith.addf %99, %104 : vector<384x4xf32>
    %106 = vector.extract_strided_slice %93 {offsets = [48, 0], sizes = [384, 128], strides = [1, 1]} : vector<432x128xf32> to vector<384x128xf32>
    %107 = arith.truncf %106 : vector<384x128xf32> to vector<384x128xbf16>
    %c2_70 = arith.constant 2 : index
    %c2_71 = arith.constant 2 : index
    %c0_72 = arith.constant 0 : index
    %c0_73 = arith.constant 0 : index
    %108 = vector.load %arg6[%c2_70, %c2_71, %c0_72, %c0_73] : memref<3x3x128x4xbf16, #tpu.memory_space<vmem>>, vector<1x1x128x4xbf16>
    %109 = vector.shape_cast %108 : vector<1x1x128x4xbf16> to vector<128x4xbf16>
    %cst_74 = arith.constant dense<0.000000e+00> : vector<384x4xf32>
    %110 = tpu.matmul %107, %109, %cst_74 {dimension_numbers = #tpu.dot_dimension_numbers<[1], [0], [0], [1], [0, 0, 1, 1], [], []>} : vector<384x128xbf16>, vector<128x4xbf16>, vector<384x4xf32> -> vector<384x4xf32>
    %111 = arith.addf %105, %110 : vector<384x4xf32>
    %112 = vector.shape_cast %111 : vector<384x4xf32> to vector<16x24x4xf32>
    %113 = arith.truncf %112 : vector<16x24x4xf32> to vector<16x24x4xbf16>
    %c0_75 = arith.constant 0 : index
    %c0_76 = arith.constant 0 : index
    %c0_77 = arith.constant 0 : index
    %c0_78 = arith.constant 0 : index
    %114 = vector.load %arg7[%c0_75, %c0_76, %c0_77, %c0_78] : memref<1x16x24x4xbf16, #tpu.memory_space<vmem>>, vector<1x16x24x4xbf16>
    %115 = vector.shape_cast %114 : vector<1x16x24x4xbf16> to vector<16x24x4xbf16>
    %116 = vector.shape_cast %113 : vector<16x24x4xbf16> to vector<1x16x24x4xbf16>
    tpu.vector_store %arg7[%c0_75, %c0_76, %c0_77, %c0_78], %116 {strides = array<i32>} : memref<1x16x24x4xbf16, #tpu.memory_space<vmem>>, vector<1x16x24x4xbf16>,
    return
  }
  func.func @transform_0(%arg0: i32) -> (i32, i32, i32, i32) {
    %c0_i32 = arith.constant 0 : i32
    %c0_i32_0 = arith.constant 0 : i32
    %c0_i32_1 = arith.constant 0 : i32
    %c0_i32_2 = arith.constant 0 : i32
    return %arg0, %c0_i32, %c0_i32_0, %c0_i32_1 : i32, i32, i32, i32
  }
  func.func @transform_1(%arg0: i32) -> (i32, i32) {
    %c0_i32 = arith.constant 0 : i32
    %c0_i32_0 = arith.constant 0 : i32
    %c0_i32_1 = arith.constant 0 : i32
    return %c0_i32, %c0_i32_0 : i32, i32
  }
  func.func @transform_2(%arg0: i32) -> (i32, i32) {
    %c0_i32 = arith.constant 0 : i32
    %c0_i32_0 = arith.constant 0 : i32
    %c0_i32_1 = arith.constant 0 : i32
    return %c0_i32, %c0_i32_0 : i32, i32
  }
  func.func @transform_3(%arg0: i32) -> (i32, i32) {
    %c0_i32 = arith.constant 0 : i32
    %c0_i32_0 = arith.constant 0 : i32
    %c0_i32_1 = arith.constant 0 : i32
    return %c0_i32, %c0_i32_0 : i32, i32
  }
  func.func @transform_4(%arg0: i32) -> (i32, i32) {
    %c0_i32 = arith.constant 0 : i32
    %c0_i32_0 = arith.constant 0 : i32
    %c0_i32_1 = arith.constant 0 : i32
    return %c0_i32, %c0_i32_0 : i32, i32
  }
  func.func @transform_5(%arg0: i32) -> (i32, i32, i32, i32) {
    %c0_i32 = arith.constant 0 : i32
    %c0_i32_0 = arith.constant 0 : i32
    %c0_i32_1 = arith.constant 0 : i32
    %c0_i32_2 = arith.constant 0 : i32
    %c0_i32_3 = arith.constant 0 : i32
    return %c0_i32, %c0_i32_0, %c0_i32_1, %c0_i32_2 : i32, i32, i32, i32
  }
  func.func @transform_6(%arg0: i32) -> (i32, i32, i32, i32) {
    %c0_i32 = arith.constant 0 : i32
    %c0_i32_0 = arith.constant 0 : i32
    %c0_i32_1 = arith.constant 0 : i32
    %c0_i32_2 = arith.constant 0 : i32
    return %arg0, %c0_i32, %c0_i32_0, %c0_i32_1 : i32, i32, i32, i32
  }
}

</mosaic_0001>

<bundles_post_ra>
// kernel: dense_block_pallas.3
= control target key start
LH: loop header
LB: loop body
LE: loop exit
PB: predicated region body
PF: predicated region fallthrough
CT: control target
= control target key end

     0   :  { %s7847_s21 = smov 0   ;;  %s12315_s0 = inlined_call_operand.vmem [shape: bf16[2,16,24,128], index: 0, kind: input, shape index: {}]   ;;  %s12316_s1 = inlined_call_operand.vmem [shape: f32[1,128], index: 1, kind: input, shape index: {}]   ;;  %s12317_s2 = inlined_call_operand.vmem [shape: f32[1,128], index: 2, kind: input, shape index: {}]   ;;  %s12318_s3 = inlined_call_operand.vmem [shape: bf16[128,128], index: 3, kind: input, shape index: {}]   ;;  %s12319_s4 = inlined_call_operand.vmem [shape: f32[1,128], index: 4, kind: input, shape index: {}]   ;;  %s12320_s5 = inlined_call_operand.vmem [shape: bf16[3,3,128,4], index: 5, kind: input, shape index: {}]   ;;  %s12321_s6 = inlined_call_operand.vmem [shape: bf16[2,16,24,4], index: 6, kind: output, shape index: {}]  }
   0x1 LB: > { %s5622_s22 = sadd.s32 4294967295, %s7807_s21   ;;  %p5626_p0 = scmp.ge.s32.totalorder %s7807_s21, 1  ;;  %s7807_s21 = sphi %s7847_s21, %s16_s21  }
   0x2   : > { %p212_p1 = scmp.lt.s32.totalorder %s7807_s21, 3 }
   0x4   : > { %p213_p2 = pnand %p5626_p0, %p212_p1 }
   0x6   : > { %216 = sbr.rel (%p213_p2) target bundleno = 1041 (0x411), region = 44 }
   0xd   : > { %v7719_v0 = vld [vmem:[%s12318_s3] sm:$0xff]   ;;  %p242_p3 = scmp.lt.s32.totalorder %s5622_s22, 1  ;;  %v7720_v1 = vld [vmem:[%s12318_s3 + $0x8] sm:$0xff]   ;;  %v7721_v2 = vld [vmem:[%s12318_s3 + $0x10] sm:$0xff]  }
   0xe   : > { %6587 = vmatprep.subr.bf16.mxu0 %v7719_v0  ;;  %v7722_v3 = vld [vmem:[%s12318_s3 + $0x18] sm:$0xff]   ;;  %v7881_v5 = vld [vmem:[%s12316_s1] ss:$0 sm:$0xff]  ;;  %v7724_v34 = vld [vmem:[%s12318_s3 + $0x28] sm:$0xff]  }
   0xf   : > { %s14204_s22 = smov (!%p242_p3, %s5622_s22), 1  ;;  %6588 = vmatpush3.bf16.msra.mxu0 %v7719_v0  ;;  %v7889_v11 = vld [vmem:[%s12317_s2] ss:$0 sm:$0xff]  ;;  %v7728_v51 = vld [vmem:[%s12320_s5 + $0x108] sm:$0xff]   ;;  %v7725_v52 = vld [vmem:[%s12318_s3 + $0x30] sm:$0xff]  }
  0x10   : > { %6589 = vmatprep.subr.bf16.mxu0 %v7720_v1  ;;  %s7611_s29 = smul.u32 192, %s14204_s22  ;;  %v7723_v20 = vld [vmem:[%s12318_s3 + $0x20] sm:$0xff]   ;;  %v7726_v62 = vld [vmem:[%s12318_s3 + $0x38] sm:$0xff]  }
  0x11   : > { %v7727_v46 = vld [vmem:[%s12320_s5 + $0x100] sm:$0xff]  }
  0x12   : > { %s7872_s8 = scalar_lea.vmem %s12315_s0, %s7611_s29  ;;  %6907 = vmatprep.subr.bf16.mxu1 %v7727_v46  ;;  %s12168_s7 = scalar_lea.vmem %s12321_s6, %s7611_s29 }
  0x13   : > { %6590 = vmatpush3.bf16.msra.mxu0 %v7720_v1  ;;  %v5939_v4 = vld [vmem:[%s7872_s8] sm:$0xff]   ;;  %v6034_v8 = vld [vmem:[%s7872_s8 + $0x8] sm:$0xff]   ;;  %v6035_v9 = vld [vmem:[%s7872_s8 + $0x10] sm:$0xff]   ;;  %6908 = vmatpush3.bf16.msra.mxu1 %v7727_v46 }
  0x14   : > { %6591 = vmatprep.subr.bf16.mxu0 %v7721_v2  ;;  %v5940_v6 = vunpack.c.l.bf16 %v5939_v4  ;;  %v5941_v7 = vunpack.c.h.bf16 %v5939_v4  ;;  %v6036_v10 = vld [vmem:[%s7872_s8 + $0x18] sm:$0xff]   ;;  %v5944_v12 = vunpack.c.l.bf16 %v6034_v8  ;;  %v5945_v13 = vunpack.c.h.bf16 %v6034_v8  ;;  %v6037_v29 = vld [vmem:[%s7872_s8 + $0x20] sm:$0xff]   ;;  %v6038_v33 = vld [vmem:[%s7872_s8 + $0x28] sm:$0xff]   ;;  %6909 = vmatprep.subr.bf16.mxu1 %v7728_v51 }
  0x15   : > { %v5948_v14 = vunpack.c.l.bf16 %v6035_v9  ;;  %v5949_v15 = vunpack.c.h.bf16 %v6035_v9  ;;  %v5952_v18 = vunpack.c.l.bf16 %v6036_v10  ;;  %v5953_v19 = vunpack.c.h.bf16 %v6036_v10  ;;  %v6039_v36 = vld [vmem:[%s7872_s8 + $0x30] sm:$0xff]   ;;  %v6040_v41 = vld [vmem:[%s7872_s8 + $0x38] sm:$0xff]   ;;  %v6041_v61 = vld [vmem:[%s7872_s8 + $0x40] sm:$0xff]  }
  0x16   : > { %v356_v16 = vmul.f32 %v5940_v6, %v7881_v5  ;;  %v357_v17 = vmul.f32 %v5941_v7, %v7881_v5  ;;  %v358_v21 = vmul.f32 %v5944_v12, %v7881_v5  ;;  %v359_v22 = vmul.f32 %v5945_v13, %v7881_v5  ;;  %v7730_v4 = vld [vmem:[%s12320_s5 + $0x110] sm:$0xff]  }
  0x17   : > { %6592 = vmatpush3.bf16.msra.mxu0 %v7721_v2  ;;  %v360_v25 = vmul.f32 %v5948_v14, %v7881_v5  ;;  %v361_v26 = vmul.f32 %v5949_v15, %v7881_v5  ;;  %v362_v27 = vmul.f32 %v5952_v18, %v7881_v5  ;;  %v363_v28 = vmul.f32 %v5953_v19, %v7881_v5  ;;  %v6043_v15 = vld [vmem:[%s7872_s8 + $0x50] sm:$0xff]   ;;  %v6044_v19 = vld [vmem:[%s7872_s8 + $0x58] sm:$0xff]  }
  0x18   : > { %6593 = vmatprep.subr.bf16.mxu0 %v7722_v3  ;;  %v411_v23 = vadd.f32 %v7889_v11, %v356_v16  ;;  %v412_v24 = vadd.f32 %v7889_v11, %v357_v17  ;;  %v7906_v32 = vadd.f32 %v7889_v11, %v358_v21  ;;  %v7913_v35 = vadd.f32 %v7889_v11, %v359_v22 }
  0x19   : > { %v7917_v38 = vadd.f32 %v7889_v11, %v360_v25  ;;  %v7920_v39 = vadd.f32 %v7889_v11, %v361_v26  ;;  %v5956_v40 = vunpack.c.l.bf16 %v6037_v29  ;;  %v7924_v42 = vadd.f32 %v7889_v11, %v362_v27  ;;  %6910 = vmatpush3.bf16.msra.mxu1 %v7728_v51  ;;  %v7732_v25 = vld [vmem:[%s12320_s5 + $0x118] sm:$0xff]  }
  0x1a   : > { %v459_v30 = vmax.f32 %v411_v23, 0.0  ;;  %v460_v31 = vmax.f32 %v412_v24, 0.0  ;;  %v7927_v43 = vadd.f32 %v7889_v11, %v363_v28  ;;  %v5957_v44 = vunpack.c.h.bf16 %v6037_v29  ;;  %v7729_v24 = vld [vmem:[%s12320_s5 + $0xc0] sm:$0xff]   ;;  %6911 = vmatprep.subr.bf16.mxu1 %v7730_v4 }
  0x1b   : > { %6594 = vmatpush3.bf16.msra.mxu0 %v7722_v3  ;;  %v5960_v45 = vunpack.c.l.bf16 %v6038_v33  ;;  %v461_v47 = vmax.f32 %v7906_v32, 0.0  ;;  %v364_v48 = vmul.f32 %v5956_v40, %v7881_v5  ;;  %v5961_v49 = vunpack.c.h.bf16 %v6038_v33  ;;  %v6042_v3 = vld [vmem:[%s7872_s8 + $0x48] sm:$0xff]  }
  0x1c   : > { %6595 = vmatprep.subr.bf16.mxu0 %v7723_v20  ;;  %v507_v37 = vpack.c.bf16 %v460_v31, %v459_v30  ;;  %v5964_v50 = vunpack.c.l.bf16 %v6039_v36  ;;  %v365_v53 = vmul.f32 %v5957_v44, %v7881_v5  ;;  %v5965_v55 = vunpack.c.h.bf16 %v6039_v36 }
  0x1d   : > { %v366_v54 = vmul.f32 %v5960_v45, %v7881_v5  ;;  %v5968_v56 = vunpack.c.l.bf16 %v6040_v41  ;;  %v7943_v57 = vadd.f32 %v7889_v11, %v364_v48  ;;  %v367_v58 = vmul.f32 %v5961_v49, %v7881_v5  ;;  %6912 = vmatpush3.bf16.msra.mxu1 %v7730_v4  ;;  %v8008_v48 = vld [vmem:[%s7872_s8 + $0x68] sm:$0xff]  }
  0x1e   : > { %6603 = vmatprep.mubr.bf16.mxu0 %v507_v37  ;;  %v368_v59 = vmul.f32 %v5964_v50, %v7881_v5  ;;  %v5969_v60 = vunpack.c.h.bf16 %v6040_v41  ;;  %v7952_v63 = vadd.f32 %v7889_v11, %v365_v53  ;;  %v369_v1 = vmul.f32 %v5965_v55, %v7881_v5  ;;  %6913 = vmatprep.subr.bf16.mxu1 %v7732_v25  ;;  %v7731_v53 = vld [vmem:[%s12320_s5 + $0xc8] sm:$0xff]  }
  0x1f   : > { %6596 = vmatpush3.bf16.msra.mxu0 %v7723_v20  ;;  %v7955_v0 = vadd.f32 %v7889_v11, %v366_v54  ;;  %v370_v2 = vmul.f32 %v5968_v56, %v7881_v5  ;;  %v462_v6 = vmax.f32 %v7913_v35, 0.0  ;;  %v463_v7 = vmax.f32 %v7917_v38, 0.0  ;;  %v7734_v35 = vld [vmem:[%s12320_s5 + $0x120] sm:$0xff]  }
  0x20   : > { %6597 = vmatprep.subr.bf16.mxu0 %v7724_v34  ;;  %v7966_v8 = vadd.f32 %v7889_v11, %v367_v58  ;;  %v7969_v9 = vadd.f32 %v7889_v11, %v368_v59  ;;  %v464_v10 = vmax.f32 %v7920_v39, 0.0  ;;  %v465_v12 = vmax.f32 %v7924_v42, 0.0  ;;  %v6047_v58 = vld [vmem:[%s7872_s8 + $0x70] sm:$0xff]  }
  0x21   : > { %v466_v13 = vmax.f32 %v7927_v43, 0.0  ;;  %v371_v14 = vmul.f32 %v5969_v60, %v7881_v5  ;;  %v467_v16 = vmax.f32 %v7943_v57, 0.0  ;;  %v468_v17 = vmax.f32 %v7952_v63, 0.0  ;;  %6914 = vmatpush3.bf16.msra.mxu1 %v7732_v25  ;;  %v6048_v63 = vld [vmem:[%s7872_s8 + $0x78] sm:$0xff]  }
  0x22   : > { %v5972_v18 = vunpack.c.l.bf16 %v6041_v61  ;;  %v469_v20 = vmax.f32 %v7955_v0, 0.0  ;;  %v424_v21 = vadd.f32 %v7889_v11, %v369_v1  ;;  %v7982_v22 = vadd.f32 %v7889_v11, %v370_v2  ;;  %6915 = vmatprep.subr.bf16.mxu1 %v7734_v35  ;;  %v7736_v0 = vld [vmem:[%s12320_s5 + $0x128] sm:$0xff]  }
  0x23   : > { %6598 = vmatpush3.bf16.msra.mxu0 %v7724_v34  ;;  %v5973_v23 = vunpack.c.h.bf16 %v6041_v61  ;;  %v470_v26 = vmax.f32 %v7966_v8, 0.0  ;;  %v471_v27 = vmax.f32 %v7969_v9, 0.0  ;;  %v5976_v29 = vunpack.c.l.bf16 %v6042_v3  ;;  %v7996_v34 = vld [vmem:[%s7872_s8 + $0x60] sm:$0xff]  }
  0x24   : > { %6599 = vmatprep.subr.bf16.mxu0 %v7725_v52  ;;  %v372_v28 = vmul.f32 %v5972_v18, %v7881_v5  ;;  %v426_v30 = vadd.f32 %v7889_v11, %v371_v14  ;;  %v5977_v32 = vunpack.c.h.bf16 %v6042_v3  ;;  %v5980_v33 = vunpack.c.l.bf16 %v6043_v15 }
  0x25   : > { %v373_v31 = vmul.f32 %v5973_v23, %v7881_v5  ;;  %v508_v36 = vpack.c.bf16 %v462_v6, %v461_v47  ;;  %v509_v37 = vpack.c.bf16 %v464_v10, %v463_v7  ;;  %v374_v38 = vmul.f32 %v5976_v29, %v7881_v5  ;;  %v7733_v6 = vld [vmem:[%s12320_s5 + $0xd0] sm:$0xff]   ;;  %6916 = vmatpush3.bf16.msra.mxu1 %v7734_v35 }
  0x26   : > { %v5981_v39 = vunpack.c.h.bf16 %v6043_v15  ;;  %v427_v40 = vadd.f32 %v7889_v11, %v372_v28  ;;  %v375_v41 = vmul.f32 %v5977_v32, %v7881_v5  ;;  %v376_v42 = vmul.f32 %v5980_v33, %v7881_v5  ;;  %6917 = vmatprep.subr.bf16.mxu1 %v7736_v0  ;;  %v6051_v35 = vld [vmem:[%s7872_s8 + $0x90] sm:$0xff]  }
  0x27   : > { %6600 = vmatpush3.bf16.msra.mxu0 %v7725_v52  ;;  %v5984_v43 = vunpack.c.l.bf16 %v6044_v19  ;;  %v472_v44 = vmax.f32 %v424_v21, 0.0  ;;  %v473_v45 = vmax.f32 %v7982_v22, 0.0  ;;  %v5985_v47 = vunpack.c.h.bf16 %v6044_v19  ;;  %v7735_v21 = vld [vmem:[%s12320_s5 + $0xd8] sm:$0xff]  }
  0x28   : > { %6601 = vmatprep.subr.bf16.mxu0 %v7726_v62  ;;  %v377_v46 = vmul.f32 %v5981_v39, %v7881_v5  ;;  %v474_v49 = vmax.f32 %v426_v30, 0.0  ;;  %v428_v50 = vadd.f32 %v7889_v11, %v373_v31  ;;  %v8012_v51 = vadd.f32 %v7889_v11, %v374_v38  ;;  %v6050_v30 = vld [vmem:[%s7872_s8 + $0x88] sm:$0xff]  }
  0x29   : > { %v378_v52 = vmul.f32 %v5984_v43, %v7881_v5  ;;  %v8019_v54 = vadd.f32 %v7889_v11, %v375_v41  ;;  %v8022_v55 = vadd.f32 %v7889_v11, %v376_v42  ;;  %v379_v56 = vmul.f32 %v5985_v47, %v7881_v5  ;;  %6918 = vmatpush3.bf16.msra.mxu1 %v7736_v0 }
  0x2a   : > { %v5988_v57 = vunpack.c.l.bf16 %v7996_v34  ;;  %v510_v59 = vpack.c.bf16 %v466_v13, %v465_v12  ;;  %v511_v60 = vpack.c.bf16 %v468_v17, %v467_v16  ;;  %v8027_v61 = vpack.c.bf16 %v470_v26, %v469_v20  ;;  %v6049_v12 = vld [vmem:[%s7872_s8 + $0x80] sm:$0xff]  }
  0x2b   : > { %6602 = vmatpush3.bf16.msra.mxu0 %v7726_v62  ;;  %v475_v62 = vmax.f32 %v427_v40, 0.0  ;;  %v8034_v1 = vadd.f32 %v7889_v11, %v377_v46  ;;  %v8037_v2 = vadd.f32 %v7889_v11, %v378_v52  ;;  %v5989_v3 = vunpack.c.h.bf16 %v7996_v34  ;;  %v7737_v40 = vld [vmem:[%s12320_s5 + $0xe0] sm:$0xff]  }
  0x2c   : > { %6651 = vmatprep.subr.bf16.mxu0 %v7729_v24  ;;  %v380_v4 = vmul.f32 %v5988_v57, %v7881_v5  ;;  %v8044_v7 = vpack.c.bf16 %v472_v44, %v471_v27  ;;  %v476_v8 = vmax.f32 %v428_v50, 0.0  ;;  %v477_v9 = vmax.f32 %v8012_v51, 0.0 }
  0x2d   : > { %v5992_v10 = vunpack.c.l.bf16 %v8008_v48  ;;  %v8049_v13 = vpack.c.bf16 %v474_v49, %v473_v45  ;;  %v478_v14 = vmax.f32 %v8019_v54, 0.0  ;;  %v479_v15 = vmax.f32 %v8022_v55, 0.0 }
  0x2e   : > { %6604 = vmatmul.mubr.bf16.vlgmr.msra.gmra.mrb[0].mxu0 %v508_v36  ;;  %v8054_v16 = vadd.f32 %v7889_v11, %v379_v56  ;;  %v8057_v17 = vadd.f32 %v7889_v11, %v380_v4  ;;  %v5993_v18 = vunpack.c.h.bf16 %v8008_v48  ;;  %v5996_v19 = vunpack.c.l.bf16 %v6047_v58  ;;  %v6052_v56 = vld [vmem:[%s7872_s8 + $0x98] sm:$0xff]  }
  0x2f   : > { %6607 = vmatprep.mubr.bf16.mxu0 %v509_v37  ;;  %6652 = vmatpush3.bf16.msra.mxu0 %v7729_v24  ;;  %v5997_v20 = vunpack.c.h.bf16 %v6047_v58  ;;  %v480_v22 = vmax.f32 %v8034_v1, 0.0  ;;  %v481_v23 = vmax.f32 %v8037_v2, 0.0  ;;  %v381_v24 = vmul.f32 %v5989_v3, %v7881_v5 }
  0x30   : > { %6653 = vmatprep.subr.bf16.mxu0 %v7731_v53  ;;  %v6000_v25 = vunpack.c.l.bf16 %v6048_v63  ;;  %v8066_v26 = vpack.c.bf16 %v476_v8, %v475_v62  ;;  %v382_v27 = vmul.f32 %v5992_v10, %v7881_v5  ;;  %v384_v28 = vmul.f32 %v5996_v19, %v7881_v5 }
  0x31   : > { %v385_v29 = vmul.f32 %v5997_v20, %v7881_v5  ;;  %v482_v31 = vmax.f32 %v8054_v16, 0.0  ;;  %v6001_v32 = vunpack.c.h.bf16 %v6048_v63  ;;  %v6004_v34 = vunpack.c.l.bf16 %v6049_v12  ;;  %v7739_v16 = vld [vmem:[%s12320_s5 + $0xe8] sm:$0xff]  }
  0x32   : > { %v386_v33 = vmul.f32 %v6000_v25, %v7881_v5  ;;  %v483_v36 = vmax.f32 %v8057_v17, 0.0  ;;  %v8077_v37 = vmul.f32 %v5993_v18, %v7881_v5  ;;  %v439_v38 = vadd.f32 %v7889_v11, %v384_v28  ;;  %v6054_v25 = vld [vmem:[%s7872_s8 + $0xa8] sm:$0xff]  }
  0x33   : > { %6654 = vmatpush3.bf16.msra.mxu0 %v7731_v53  ;;  %v440_v39 = vadd.f32 %v7889_v11, %v385_v29  ;;  %v8085_v41 = vadd.f32 %v7889_v11, %v381_v24  ;;  %v387_v42 = vmul.f32 %v6001_v32, %v7881_v5  ;;  %v6005_v44 = vunpack.c.h.bf16 %v6049_v12  ;;  %v6053_v12 = vld [vmem:[%s7872_s8 + $0xa0] sm:$0xff]  }
  0x34   : > { %6655 = vmatprep.subr.bf16.mxu0 %v7733_v6  ;;  %v441_v43 = vadd.f32 %v7889_v11, %v386_v33  ;;  %v8090_v45 = vadd.f32 %v7889_v11, %v382_v27  ;;  %v487_v46 = vmax.f32 %v439_v38, 0.0  ;;  %v388_v48 = vmul.f32 %v6004_v34, %v7881_v5 }
  0x35   : > { %v488_v47 = vmax.f32 %v440_v39, 0.0  ;;  %v442_v49 = vadd.f32 %v7889_v11, %v387_v42  ;;  %v389_v52 = vmul.f32 %v6005_v44, %v7881_v5  ;;  %v6008_v53 = vunpack.c.l.bf16 %v6050_v30 }
  0x36   : > { %6608 = vmatmul.mubr.bf16.gmra.mrb[4].mxu0 %v510_v59  ;;  %v489_v50 = vmax.f32 %v441_v43, 0.0  ;;  %v443_v58 = vadd.f32 %v7889_v11, %v388_v48  ;;  %v6009_v59 = vunpack.c.h.bf16 %v6050_v30  ;;  %v6013_v3 = vunpack.c.h.bf16 %v6051_v35 }
  0x37   : > { %6611 = vmatprep.mubr.bf16.mxu0 %v511_v60  ;;  %6656 = vmatpush3.bf16.msra.mxu0 %v7733_v6  ;;  %v8096_v57 = vpack.c.bf16 %v488_v47, %v487_v46  ;;  %v6012_v60 = vunpack.c.l.bf16 %v6051_v35  ;;  %v490_v62 = vmax.f32 %v442_v49, 0.0  ;;  %v444_v63 = vadd.f32 %v7889_v11, %v389_v52  ;;  %v6056_v52 = vld [vmem:[%s7872_s8 + $0xb8] sm:$0xff]  }
  0x38   : > { %6657 = vmatprep.subr.bf16.mxu0 %v7735_v21  ;;  %v390_v0 = vmul.f32 %v6008_v53, %v7881_v5  ;;  %v491_v4 = vmax.f32 %v443_v58, 0.0  ;;  %v391_v6 = vmul.f32 %v6009_v59, %v7881_v5  ;;  %v6016_v10 = vunpack.c.l.bf16 %v6052_v56 }
  0x39   : > { %v392_v8 = vmul.f32 %v6012_v60, %v7881_v5  ;;  %v8104_v18 = vpack.c.bf16 %v490_v62, %v489_v50  ;;  %v492_v19 = vmax.f32 %v444_v63, 0.0  ;;  %v393_v24 = vmul.f32 %v6013_v3, %v7881_v5 }
  0x3a   : > { %v445_v20 = vadd.f32 %v7889_v11, %v390_v0  ;;  %v6017_v28 = vunpack.c.h.bf16 %v6052_v56  ;;  %v394_v29 = vmul.f32 %v6016_v10, %v7881_v5  ;;  %v6020_v34 = vunpack.c.l.bf16 %v6053_v12 }
  0x3b   : > { %6658 = vmatpush3.bf16.msra.mxu0 %v7735_v21  ;;  %v446_v21 = vadd.f32 %v7889_v11, %v391_v6  ;;  %v447_v27 = vadd.f32 %v7889_v11, %v392_v8  ;;  %v8114_v30 = vpack.c.bf16 %v492_v19, %v491_v4  ;;  %v448_v33 = vadd.f32 %v7889_v11, %v393_v24 }
  0x3c   : > { %6659 = vmatprep.subr.bf16.mxu0 %v7737_v40  ;;  %v493_v32 = vmax.f32 %v445_v20, 0.0  ;;  %v395_v38 = vmul.f32 %v6017_v28, %v7881_v5  ;;  %v449_v39 = vadd.f32 %v7889_v11, %v394_v29  ;;  %v6021_v43 = vunpack.c.h.bf16 %v6053_v12 }
  0x3d   : > { %v494_v35 = vmax.f32 %v446_v21, 0.0  ;;  %v496_v42 = vmax.f32 %v448_v33, 0.0  ;;  %v396_v44 = vmul.f32 %v6020_v34, %v7881_v5  ;;  %v6024_v46 = vunpack.c.l.bf16 %v6054_v25 }
  0x3e   : > { %6612 = vmatmul.mubr.bf16.gmra.mrb[8].mxu0 %v8027_v61  ;;  %v495_v61 = vmax.f32 %v447_v27, 0.0  ;;  %v450_v48 = vadd.f32 %v7889_v11, %v395_v38  ;;  %v497_v49 = vmax.f32 %v449_v39, 0.0  ;;  %v6025_v50 = vunpack.c.h.bf16 %v6054_v25 }
  0x3f   : > { %6615 = vmatprep.mubr.bf16.mxu0 %v8044_v7  ;;  %6660 = vmatpush3.bf16.msra.mxu0 %v7737_v40  ;;  %v6055_v7 = vld [vmem:[%s7872_s8 + $0xb0] sm:$0xff]   ;;  %v524_v47 = vpack.c.bf16 %v494_v35, %v493_v32  ;;  %v397_v40 = vmul.f32 %v6021_v43, %v7881_v5  ;;  %v451_v56 = vadd.f32 %v7889_v11, %v396_v44  ;;  %v6032_v6 = vunpack.c.l.bf16 %v6056_v52 }
  0x40   : > { %v525_v53 = vpack.c.bf16 %v496_v42, %v495_v61  ;;  %v398_v58 = vmul.f32 %v6024_v46, %v7881_v5  ;;  %v498_v59 = vmax.f32 %v450_v48, 0.0  ;;  %v399_v60 = vmul.f32 %v6025_v50, %v7881_v5  ;;  %6661 = vmatprep.subr.bf16.mxu0 %v7739_v16  ;;  %v7743_v48 = vld [vmem:[%s12320_s5 + $0xf8] sm:$0xff]  }
  0x41   : > { %v6028_v62 = vunpack.c.l.bf16 %v6055_v7  ;;  %v6029_v63 = vunpack.c.h.bf16 %v6055_v7  ;;  %v452_v0 = vadd.f32 %v7889_v11, %v397_v40  ;;  %v499_v3 = vmax.f32 %v451_v56, 0.0 }
  0x42   : > { %v453_v4 = vadd.f32 %v7889_v11, %v398_v58  ;;  %v526_v8 = vpack.c.bf16 %v498_v59, %v497_v49  ;;  %v454_v10 = vadd.f32 %v7889_v11, %v399_v60  ;;  %v6033_v25 = vunpack.c.h.bf16 %v6056_v52 }
  0x43   : > { %v400_v12 = vmul.f32 %v6028_v62, %v7881_v5  ;;  %v401_v19 = vmul.f32 %v6029_v63, %v7881_v5  ;;  %v500_v20 = vmax.f32 %v452_v0, 0.0  ;;  %v402_v21 = vmul.f32 %v6032_v6, %v7881_v5  ;;  %6662 = vmatpush3.bf16.msra.mxu0 %v7739_v16  ;;  %v7742_v62 = vld [vmem:[%s12320_s5 + $0x1c0] sm:$0xff]  }
  0x44   : > { %v501_v24 = vmax.f32 %v453_v4, 0.0  ;;  %v484_v27 = vmax.f32 %v8085_v41, 0.0  ;;  %v502_v28 = vmax.f32 %v454_v10, 0.0  ;;  %v438_v32 = vadd.f32 %v7889_v11, %v8077_v37 }
  0x45   : > { %v455_v29 = vadd.f32 %v7889_v11, %v400_v12  ;;  %v527_v33 = vpack.c.bf16 %v500_v20, %v499_v3  ;;  %v403_v34 = vmul.f32 %v6033_v25, %v7881_v5  ;;  %v516_v35 = vpack.c.bf16 %v478_v14, %v477_v9 }
  0x46   : > { %6616 = vmatmul.mubr.bf16.gmra.mrb[12].mxu0 %v8049_v13  ;;  %v456_v13 = vadd.f32 %v7889_v11, %v401_v19  ;;  %v528_v61 = vpack.c.bf16 %v502_v28, %v501_v24  ;;  %v517_v39 = vpack.c.bf16 %v480_v22, %v479_v15  ;;  %v485_v37 = vmax.f32 %v8090_v45, 0.0  ;;  %v7738_v15 = vld [vmem:[%s12320_s5 + $0x130] sm:$0xff]  }
  0x47   : > { %6619 = vmatprep.mubr.bf16.mxu0 %v8066_v26  ;;  %v457_v26 = vadd.f32 %v7889_v11, %v402_v21  ;;  %v503_v41 = vmax.f32 %v455_v29, 0.0  ;;  %v458_v42 = vadd.f32 %v7889_v11, %v403_v34  ;;  %v486_v44 = vmax.f32 %v438_v32, 0.0  ;;  %6919 = vmatprep.subr.bf16.mxu1 %v7738_v15  ;;  %v7741_v45 = vld [vmem:[%s12320_s5 + $0xf0] sm:$0xff]  }
  0x48   : > { %v504_v38 = vmax.f32 %v456_v13, 0.0  ;;  %v518_v54 = vpack.c.bf16 %v482_v31, %v481_v23  ;;  %v519_v55 = vpack.c.bf16 %v484_v27, %v483_v36  ;;  %v875_v11 = vlaneseq  ;;  %6920 = vmatpush3.bf16.msra.mxu1 %v7738_v15  ;;  %v7740_v36 = vld [vmem:[%s12320_s5 + $0x138] sm:$0xff]   ;;  %6663 = vmatprep.subr.bf16.mxu0 %v7741_v45 }
  0x49   : > { %v505_v5 = vmax.f32 %v457_v26, 0.0  ;;  %v506_v46 = vmax.f32 %v458_v42, 0.0  ;;  %v520_v1 = vpack.c.bf16 %v486_v44, %v485_v37  ;;  %6921 = vmatprep.subr.bf16.mxu1 %v7740_v36  ;;  %6664 = vmatpush3.bf16.msra.mxu0 %v7741_v45  ;;  %v13119_v44 = vmov 0 }
  0x4a   : > { %v529_v43 = vpack.c.bf16 %v504_v38, %v503_v41  ;;  %v8161_v2 = vshrl.u32 %v875_v11, 7  ;;  %6665 = vmatprep.subr.bf16.mxu0 %v7743_v48 }
  0x4b   : > { %v530_v51 = vpack.c.bf16 %v506_v46, %v505_v5 }
  0x4c   : > { %v878_v9 = vadd.s32 16, %v8161_v2  ;;  %v879_v14 = vadd.s32 24, %v8161_v2  ;;  %6922 = vmatpush3.bf16.msra.mxu1 %v7740_v36  ;;  %v8201_v58 = vadd.s32 32, %v8161_v2  ;;  %v8204_v59 = vadd.s32 56, %v8161_v2 }
  0x4d   : > { %6666 = vmatpush3.bf16.msra.mxu0 %v7743_v48  ;;  %v8211_v0 = vadd.s32 40, %v8161_v2  ;;  %6971 = vmatprep.subr.bf16.mxu1 %v7742_v62  ;;  %v8224_v19 = vadd.s32 80, %v8161_v2  ;;  %v8237_v28 = vadd.s32 64, %v8161_v2  ;;  %v8260_v38 = vadd.s32 88, %v8161_v2 }
  0x4e   : > { %6620 = vmatmul.mubr.bf16.gmra.mrb[16].mxu0 %v516_v35  ;;  %v8171_v17 = vmul.u32.u64.low 2863311531, %v878_v9  ;;  %v8172_v22 = vmul.u32.u64.high 2863311531, %v878_v9, %v8171_v17  ;;  %v8174_v23 = vmul.u32.u64.low 2863311531, %v879_v14  ;;  %v8175_v31 = vmul.u32.u64.high 2863311531, %v879_v14, %v8174_v23 }
  0x4f   : > { %6623 = vmatprep.mubr.bf16.mxu0 %v517_v39  ;;  %v8216_v4 = vmul.u32.u64.low 2863311531, %v8201_v58  ;;  %v8217_v6 = vmul.u32.u64.high 2863311531, %v8201_v58, %v8216_v4  ;;  %v8230_v25 = vmul.u32.u64.low 2863311531, %v8211_v0  ;;  %v8231_v21 = vmul.u32.u64.high 2863311531, %v8211_v0, %v8230_v25 }
  0x50   : > { %v952_v7 = vshrl.u32 %v8172_v22, 4  ;;  %v963_v49 = vshrl.u32 %v8175_v31, 4  ;;  %v8264_v37 = vmul.u32.u64.low 2863311531, %v8237_v28  ;;  %v8265_v42 = vmul.u32.u64.high 2863311531, %v8237_v28, %v8264_v37 }
  0x51   : > { %v974_v41 = vshrl.u32 %v8217_v6, 4  ;;  %v8268_v5 = vadd.s32 72, %v8161_v2  ;;  %v8281_v46 = vadd.s32 112, %v8161_v2  ;;  %v12888_v17 = vmov 0 }
  0x52   : > { %v964_v63 = vmul.u32 24, %v963_v49  ;;  %v8360_v6 = vadd.s32 128, %v8161_v2  ;;  %v12903_v37 = vmov 0  ;;  %v8563_v48 = vadd.s32 208, %v8161_v2 }
  0x53   : > { %v975_v11 = vmul.u32 24, %v974_v41  ;;  %v8304_v22 = vmul.u32.u64.low 2863311531, %v8268_v5  ;;  %v8305_v23 = vmul.u32.u64.high 2863311531, %v8268_v5, %v8304_v22 }
  0x54   : > { %v8226_v20 = vsub.s32 %v879_v14, %v964_v63  ;;  %v8309_v36 = vmul.u32.u64.low 2863311531, %v8281_v46  ;;  %v8310_v45 = vmul.u32.u64.high 2863311531, %v8281_v46, %v8309_v36 }
  0x55   : > { %v8444_v36 = vadd.s32 152, %v8161_v2 }
  0x56   : > { %6624 = vmatmul.mubr.bf16.gmra.mrb[20].mxu0 %v518_v54  ;;  %vm1455_vm3 = vcmp.ne.s32.totalorder %v8226_v20, 0  ;;  %vm1503_vm4 = vcmp.lt.s32.totalorder %v8226_v20, 0  ;;  %v8256_v35 = vadd.s32 24, %v8226_v20 }
  0x57   : > { %6627 = vmatprep.mubr.bf16.mxu0 %v519_v55  ;;  %vm8274_vm5 = vmand %vm1503_vm4, %vm1455_vm3  ;;  %v985_v55 = vshrl.u32 %v8231_v21, 4 }
  0x5e   : > { %6628 = vmatmul.mubr.bf16.gmra.mrb[24].mxu0 %v520_v1 }
  0x5f   : > { %6631 = vmatprep.mubr.bf16.mxu0 %v8096_v57 }
  0x66   : > { %6632 = vmatmul.mubr.bf16.gmra.mrb[28].mxu0 %v8104_v18  ;;  %v8184_v57 = vmul.u32.u64.low 2863311531, %v8161_v2  ;;  %v8185_v18 = vmul.u32.u64.high 2863311531, %v8161_v2, %v8184_v57 }
  0x67   : > { %6635 = vmatprep.mubr.bf16.mxu0 %v8114_v30  ;;  %v877_v30 = vadd.s32 8, %v8161_v2  ;;  %v8313_v57 = vadd.s32 96, %v8161_v2 }
  0x68   : > { %v930_v60 = vshrl.u32 %v8185_v18, 4  ;;  %v986_v18 = vmul.u32 24, %v985_v55 }
  0x69   : > { %v8194_v50 = vmul.u32.u64.low 2863311531, %v877_v30  ;;  %v8195_v52 = vmul.u32.u64.high 2863311531, %v877_v30, %v8194_v50 }
  0x6a   : > { %v931_v12 = vmul.u32 24, %v930_v60  ;;  %v8347_v60 = vsub.s32 %v8211_v0, %v986_v18  ;;  %v12322_v18 = vmov 0.0  }
  0x6b   : > { %v941_v24 = vshrl.u32 %v8195_v52, 4  ;;  %v1018_v52 = vshrl.u32 %v8265_v42, 4 }
  0x6c   : > { %v8243_v13 = vsub.s32 %v8161_v2, %v931_v12  ;;  %12893 = vst [vmem:[#allocation7_spill] sm:$0xff] %v8347_v60  ;;  %vm1457_vm4 = vcmp.ne.s32.totalorder %v8347_v60, 0  ;;  %v8422_v55 = vadd.s32 24, %v8347_v60 }
  0x6d   : > { %v942_v26 = vmul.u32 24, %v941_v24  ;;  %v1019_v0 = vmul.u32 24, %v1018_v52  ;;  %v1084_v24 = vshrl.u32 %v8310_v45, 4  ;;  %v8451_v52 = vrot.slane %v12322_v18, 7 }
  0x6e   : > { %6636 = vmatmul.mubr.bf16.gmra.mrb[32].mxu0 %v524_v47  ;;  %v882_v47 = vadd.s32 48, %v8161_v2  ;;  %vm1452_vm6 = vcmp.ne.s32.totalorder %v8243_v13, 0  ;;  %vm1500_vm7 = vcmp.lt.s32.totalorder %v8243_v13, 0  ;;  %v8286_v54 = vadd.s32 24, %v8243_v13  ;;  %12907 = vst [vmem:[#allocation13_spill] sm:$0xff] %v8422_v55 }
  0x6f   : > { %6639 = vmatprep.mubr.bf16.mxu0 %v525_v53  ;;  %v953_v53 = vmul.u32 24, %v952_v7  ;;  %vm8299_vm8 = vmand %vm1500_vm7, %vm1452_vm6  ;;  %v8322_v7 = vsub.s32 %v8201_v58, %v975_v11  ;;  %v8344_v58 = vadd.s32 104, %v8161_v2  ;;  %vm1505_vm6 = vcmp.lt.s32.totalorder %v8347_v60, 0  ;;  %12912 = vst [vmem:[#allocation16_spill] sm:$0xff] %v8451_v52 }
  0x70   : > { %v8197_v40 = vmul.u32.u64.low 2863311531, %v882_v47  ;;  %v8198_v56 = vmul.u32.u64.high 2863311531, %v882_v47, %v8197_v40  ;;  %v12889_v17 = vsel %vm8299_vm8, 4294967295, %v12888_v17  ;;  %v8425_v11 = vsub.s32 %v8237_v28, %v1019_v0 }
  0x71   : > { %v8213_v3 = vsub.s32 %v878_v9, %v953_v53  ;;  %v8292_v9 = vmul.u32.u64.low 2863311531, %v8260_v38  ;;  %v8293_v14 = vmul.u32.u64.high 2863311531, %v8260_v38, %v8292_v9  ;;  %12890 = vst [vmem:[#allocation4_spill] sm:$0xff] %v8322_v7  ;;  %vm1456_vm13 = vcmp.ne.s32.totalorder %v8322_v7, 0 }
  0x72   : > { %v996_v27 = vshrl.u32 %v8198_v56, 4  ;;  %v8340_v40 = vmul.u32.u64.low 2863311531, %v8313_v57  ;;  %v8341_v56 = vmul.u32.u64.high 2863311531, %v8313_v57, %v8340_v40  ;;  %vm1504_vm14 = vcmp.lt.s32.totalorder %v8322_v7, 0  ;;  %12908 = vst [vmem:[#allocation14_spill] sm:$0xff] %v8425_v11 }
  0x73   : > { %vm1454_vm0 = vcmp.ne.s32.totalorder %v8213_v3, 0  ;;  %vm1502_vm1 = vcmp.lt.s32.totalorder %v8213_v3, 0  ;;  %v8240_v29 = vadd.s32 24, %v8213_v3  ;;  %v1051_v4 = vshrl.u32 %v8293_v14, 4  ;;  %vm8399_vm7 = vmand %vm1504_vm14, %vm1456_vm13 }
  0x74   : > { %vm8249_vm2 = vmand %vm1502_vm1, %vm1454_vm0  ;;  %v8378_v25 = vmul.u32.u64.low 2863311531, %v8344_v58  ;;  %v8379_v21 = vmul.u32.u64.high 2863311531, %v8344_v58, %v8378_v25  ;;  %v12909_v14 = vmov 0  ;;  %v1062_v22 = vshrl.u32 %v8341_v56, 4 }
  0x75   : > { %vm1460_vm14 = vcmp.ne.s32.totalorder %v8425_v11, 0  ;;  %v8488_v25 = vadd.s32 136, %v8161_v2  ;;  %v8536_v56 = vadd.s32 184, %v8161_v2 }
  0x76   : > { %6640 = vmatmul.mubr.bf16.gmra.mrb[36].mxu0 %v526_v8  ;;  %v8220_v8 = vmul.u32.u64.low 2863311531, %v8204_v59  ;;  %v8221_v10 = vmul.u32.u64.high 2863311531, %v8204_v59, %v8220_v8 }
  0x77   : > { %6643 = vmatprep.mubr.bf16.mxu0 %v527_v33  ;;  %v8246_v32 = vmul.u32.u64.low 2863311531, %v8224_v19  ;;  %v8247_v33 = vmul.u32.u64.high 2863311531, %v8224_v19, %v8246_v32  ;;  %v1029_v8 = vshrl.u32 %v8305_v23, 4 }
  0x78   : > { %v1007_v39 = vshrl.u32 %v8221_v10, 4  ;;  %v12894_v10 = vmov 0 }
  0x79   : > { %v1040_v31 = vshrl.u32 %v8247_v33, 4  ;;  %v12899_v33 = vmov 0  ;;  %v1030_v9 = vmul.u32 24, %v1029_v8  ;;  %v1063_v8 = vmul.u32 24, %v1062_v22 }
  0x7a   : > { %v1008_v16 = vmul.u32 24, %v1007_v39  ;;  %v12900_v33 = vsel %vm8399_vm7, 4294967295, %v12899_v33  ;;  %v8407_v41 = vmul.u32.u64.low 2863311531, %v8360_v6  ;;  %v8408_v39 = vmul.u32.u64.high 2863311531, %v8360_v6, %v8407_v41 }
  0x7b   : > { %v1041_v53 = vmul.u32 24, %v1040_v31  ;;  %12901 = vst [vmem:[#allocation9_spill] sm:$0xff] %v12900_v33 }
  0x7c   : > { %v8336_v50 = vsub.s32 %v8204_v59, %v1008_v16  ;;  %v8354_v59 = vadd.s32 144, %v8161_v2  ;;  %v1085_v16 = vmul.u32 24, %v1084_v24  ;;  %v1073_v24 = vshrl.u32 %v8379_v21, 4 }
  0x7d   : > { %v8374_v12 = vsub.s32 %v8224_v19, %v1041_v53 }
  0x7e   : > { %6644 = vmatmul.mubr.bf16.gmra.mrb[40].mxu0 %v528_v61  ;;  %v997_v61 = vmul.u32 24, %v996_v27  ;;  %12892 = vst [vmem:[#allocation6_spill] sm:$0xff] %v8336_v50  ;;  %vm1459_vm15 = vcmp.ne.s32.totalorder %v8336_v50, 0  ;;  %vm1507_vm0 = vcmp.lt.s32.totalorder %v8336_v50, 0  ;;  %v12897_v27 = vmov 0 }
  0x7f   : > { %6647 = vmatprep.mubr.bf16.mxu0 %v529_v43  ;;  %12896 = vst [vmem:[#allocation8_spill] sm:$0xff] %v8374_v12  ;;  %v8392_v19 = vmul.u32.u64.low 2863311531, %v8354_v59  ;;  %v8393_v32 = vmul.u32.u64.high 2863311531, %v8354_v59, %v8392_v19  ;;  %v8419_v42 = vadd.s32 24, %v8336_v50  ;;  %v8454_v53 = vadd.s32 24, %v8374_v12 }
  0x80   : > { %v8289_v1 = vsub.s32 %v882_v47, %v997_v61  ;;  %v1052_v61 = vmul.u32 24, %v1051_v4  ;;  %v8479_v4 = vsub.s32 %v8268_v5, %v1030_v9  ;;  %v8484_v0 = vsub.s32 %v8281_v46, %v1085_v16 }
  0x81   : > { %12906 = vst [vmem:[#allocation12_spill] sm:$0xff] %v8419_v42  ;;  %12913 = vst [vmem:[#allocation17_spill] sm:$0xff] %v8454_v53  ;;  %v8492_v41 = vmul.u32.u64.low 2863311531, %v8444_v36  ;;  %v8493_v5 = vmul.u32.u64.high 2863311531, %v8444_v36, %v8492_v41  ;;  %v1106_v46 = vshrl.u32 %v8408_v39, 4  ;;  %v8511_v16 = vsub.s32 %v8313_v57, %v1063_v8 }
  0x82   : > { %12887 = vst [vmem:[#allocation3_spill] sm:$0xff] %v8289_v1  ;;  %vm1458_vm11 = vcmp.ne.s32.totalorder %v8289_v1, 0  ;;  %vm1506_vm12 = vcmp.lt.s32.totalorder %v8289_v1, 0  ;;  %v8333_v49 = vadd.s32 24, %v8289_v1  ;;  %v8457_v40 = vsub.s32 %v8260_v38, %v1052_v61  ;;  %12919 = vst [vmem:[#allocation21_spill] sm:$0xff] %v8479_v4 }
  0x83   : > { %vm8385_vm3 = vmand %vm1506_vm12, %vm1458_vm11  ;;  %vm1462_vm11 = vcmp.ne.s32.totalorder %v8374_v12, 0  ;;  %vm1510_vm12 = vcmp.lt.s32.totalorder %v8374_v12, 0  ;;  %v8476_v38 = vadd.s32 24, %v8425_v11  ;;  %12920 = vst [vmem:[#allocation22_spill] sm:$0xff] %v8484_v0  ;;  %v1128_v61 = vshrl.u32 %v8393_v32, 4 }
  0x84   : > { %12891 = vst [vmem:[#allocation5_spill] sm:$0xff] %v8333_v49  ;;  %v12898_v27 = vsel %vm8385_vm3, 4294967295, %v12897_v27  ;;  %12914 = vst [vmem:[#allocation18_spill] sm:$0xff] %v8457_v40  ;;  %v8503_v21 = vadd.s32 24, %v8457_v40  ;;  %v8508_v32 = vadd.s32 176, %v8161_v2  ;;  %v1074_v22 = vmul.u32 24, %v1073_v24 }
  0x85   : > { %vm8471_vm13 = vmand %vm1510_vm12, %vm1462_vm11  ;;  %12918 = vst [vmem:[#allocation20_spill] sm:$0xff] %v8476_v38  ;;  %v8518_v39 = vadd.s32 24, %v8479_v4  ;;  %v1129_v9 = vmul.u32 24, %v1128_v61  ;;  %v1107_v57 = vmul.u32 24, %v1106_v46  ;;  %v8529_v8 = vadd.s32 160, %v8161_v2 }
  0x86   : > { %6648 = vmatmul.mubr.bf16.gmra.mrb[44].mxu0 %v530_v51  ;;  %v8283_v51 = vsub.s32 %v877_v30, %v942_v26  ;;  %v8318_v30 = vadd.s32 120, %v8161_v2  ;;  %v8404_v26 = vadd.s32 24, %v8322_v7  ;;  %12921 = vst [vmem:[#allocation23_spill] sm:$0xff] %v8503_v21  ;;  %12922 = vst [vmem:[#allocation24_spill] sm:$0xff] %v8511_v16  ;;  %v8547_v61 = vsub.s32 %v8344_v58, %v1074_v22 }
  0x87   : > { %12923 = vst [vmem:[#allocation25_spill] sm:$0xff] %v8518_v39  ;;  %v8552_v46 = vsub.s32 %v8354_v59, %v1129_v9  ;;  %v8556_v45 = vsub.s32 %v8360_v6, %v1107_v57  ;;  %v8559_v23 = vmul.u32.u64.low 2863311531, %v8529_v8  ;;  %v8560_v28 = vmul.u32.u64.high 2863311531, %v8529_v8, %v8559_v23 }
  0x88   : > { %vm1453_vm9 = vcmp.ne.s32.totalorder %v8283_v51, 0  ;;  %vm1501_vm10 = vcmp.lt.s32.totalorder %v8283_v51, 0  ;;  %v8325_v47 = vadd.s32 24, %v8283_v51  ;;  %12902 = vst [vmem:[#allocation10_spill] sm:$0xff] %v8404_v26  ;;  %12927 = vst [vmem:[#allocation29_spill] sm:$0xff] %v8547_v61  ;;  %v12930_v58 = vmov 0 }
  0x89   : > { %v8350_v62 = vmul.u32.u64.low 2863311531, %v8318_v30  ;;  %v8351_v63 = vmul.u32.u64.high 2863311531, %v8318_v30, %v8350_v62  ;;  %vm8369_vm1 = vmand %vm1501_vm10, %vm1453_vm9  ;;  %12928 = vst [vmem:[#allocation30_spill] sm:$0xff] %v8552_v46  ;;  %v8581_v23 = vadd.s32 192, %v8161_v2  ;;  %v12935_v9 = vmov 0 }
  0x8a   : > { %v12895_v10 = vsel %vm8369_vm1, 4294967295, %v12894_v10  ;;  %vm8414_vm9 = vmand %vm1507_vm0, %vm1459_vm15  ;;  %vm1508_vm15 = vcmp.lt.s32.totalorder %v8425_v11, 0  ;;  %vm1463_vm0 = vcmp.ne.s32.totalorder %v8457_v40, 0  ;;  %v8526_v62 = vadd.s32 24, %v8484_v0  ;;  %12929 = vst [vmem:[#allocation31_spill] sm:$0xff] %v8556_v45 }
  0x8b   : > { %v12904_v37 = vsel %vm8414_vm9, 4294967295, %v12903_v37  ;;  %vm8427_vm10 = vmand %vm1505_vm6, %vm1457_vm4  ;;  %v1095_v31 = vshrl.u32 %v8351_v63, 4  ;;  %v12915_v63 = vmov 0  ;;  %vm12934_vm6 = vcmp.lt.s32.totalorder %v8457_v40, 0 }
  0x8c   : > { %12905 = vst [vmem:[#allocation11_spill] sm:$0xff] %v12904_v37  ;;  %v12910_v14 = vsel %vm8427_vm10, 4294967295, %v12909_v14  ;;  %v12916_v63 = vsel %vm8471_vm13, 4294967295, %v12915_v63  ;;  %12925 = vst [vmem:[#allocation27_spill] sm:$0xff] %v8526_v62  ;;  %v8595_v57 = vadd.s32 216, %v8161_v2  ;;  %vm12938_vm12 = vcmp.ne.s32.totalorder %v8479_v4, 0 }
  0x8d   : > { %12911 = vst [vmem:[#allocation15_spill] sm:$0xff] %v12910_v14  ;;  %12917 = vst [vmem:[#allocation19_spill] sm:$0xff] %v12916_v63  ;;  %v1096_v19 = vmul.u32 24, %v1095_v31  ;;  %v8514_v31 = vmul.u32.u64.low 2863311531, %v8488_v25  ;;  %v8515_v41 = vmul.u32.u64.high 2863311531, %v8488_v25, %v8514_v31  ;;  %vm12939_vm13 = vcmp.lt.s32.totalorder %v8479_v4, 0 }
  0x8e   : > { %v8532_v24 = vmul.u32.u64.low 2863311531, %v8508_v32  ;;  %v8533_v31 = vmul.u32.u64.high 2863311531, %v8508_v32, %v8532_v24  ;;  %vm8569_vm4 = vmand %vm1508_vm15, %vm1460_vm14  ;;  %vm12944_vm15 = vcmp.lt.s32.totalorder %v8484_v0, 0  ;;  %vm12949_vm9 = vcmp.lt.s32.totalorder %v8511_v16, 0 }
  0x8f   : > { %v8522_v18 = vsub.s32 %v8318_v30, %v1096_v19  ;;  %v8539_v30 = vadd.s32 168, %v8161_v2  ;;  %v8544_v19 = vadd.s32 24, %v8511_v16  ;;  %v1139_v24 = vshrl.u32 %v8493_v5, 4  ;;  %vm8587_vm11 = vmand %vm12934_vm6, %vm1463_vm0 }
  0x90   : > { %v12931_v58 = vsel %vm8569_vm4, 4294967295, %v12930_v58  ;;  %v8577_v6 = vmul.u32.u64.low 2863311531, %v8536_v56  ;;  %v8578_v5 = vmul.u32.u64.high 2863311531, %v8536_v56, %v8577_v6  ;;  %v12936_v9 = vsel %vm8587_vm11, 4294967295, %v12935_v9  ;;  %vm8601_vm10 = vmand %vm12939_vm13, %vm12938_vm12 }
  0x91   : > { %12924 = vst [vmem:[#allocation26_spill] sm:$0xff] %v8522_v18  ;;  %12926 = vst [vmem:[#allocation28_spill] sm:$0xff] %v8544_v19  ;;  %v8574_v59 = vadd.s32 24, %v8522_v18  ;;  %v1117_v22 = vshrl.u32 %v8515_v41, 4  ;;  %v12940_v6 = vmov 0  ;;  %v1140_v15 = vmul.u32 24, %v1139_v24 }
  0x92   : > { %12932 = vst [vmem:[#allocation32_spill] sm:$0xff] %v12931_v58  ;;  %12937 = vst [vmem:[#allocation34_spill] sm:$0xff] %v12936_v9  ;;  %v12941_v6 = vsel %vm8601_vm10, 4294967295, %v12940_v6  ;;  %v8607_v43 = vmul.u32.u64.low 2863311531, %v8539_v30  ;;  %v8608_v12 = vmul.u32.u64.high 2863311531, %v8539_v30, %v8607_v43  ;;  %vm12943_vm6 = vcmp.ne.s32.totalorder %v8484_v0, 0 }
  0x93   : > { %12933 = vst [vmem:[#allocation33_spill] sm:$0xff] %v8574_v59  ;;  %12942 = vst [vmem:[#allocation35_spill] sm:$0xff] %v12941_v6  ;;  %v12945_v41 = vmov 0  ;;  %vm1518_vm13 = vcmp.lt.s32.totalorder %v8552_v46, 0  ;;  %v8621_v53 = vmul.u32.u64.low 2863311531, %v8563_v48  ;;  %v8622_v63 = vmul.u32.u64.high 2863311531, %v8563_v48, %v8621_v53 }
  0x94   : > { %vm8614_vm14 = vmand %vm12944_vm15, %vm12943_vm6  ;;  %vm12948_vm0 = vcmp.ne.s32.totalorder %v8511_v16, 0  ;;  %v12950_v43 = vmov 0  ;;  %v1172_v24 = vshrl.u32 %v8533_v31, 4  ;;  %v8638_v14 = vadd.s32 200, %v8161_v2 }
  0x95   : > { %v12946_v41 = vsel %vm8614_vm14, 4294967295, %v12945_v41  ;;  %vm8628_vm7 = vmand %vm12949_vm9, %vm12948_vm0  ;;  %v8634_v60 = vmul.u32.u64.low 2863311531, %v8581_v23  ;;  %v8635_v55 = vmul.u32.u64.high 2863311531, %v8581_v23, %v8634_v60  ;;  %vm12953_vm15 = vcmp.ne.s32.totalorder %v8522_v18, 0 }
  0x96   : > { %12947 = vst [vmem:[#allocation36_spill] sm:$0xff] %v12946_v41  ;;  %v12951_v43 = vsel %vm8628_vm7, 4294967295, %v12950_v43  ;;  %vm12954_vm6 = vcmp.lt.s32.totalorder %v8522_v18, 0  ;;  %v12955_v53 = vmov 0  ;;  %v1118_v52 = vmul.u32 24, %v1117_v22 }
  0x97   : > { %12952 = vst [vmem:[#allocation37_spill] sm:$0xff] %v12951_v43  ;;  %vm8644_vm12 = vmand %vm12954_vm6, %vm12953_vm15  ;;  %v8650_v31 = vmul.u32.u64.low 2863311531, %v8595_v57  ;;  %v8651_v50 = vmul.u32.u64.high 2863311531, %v8595_v57, %v8650_v31  ;;  %vm12958_vm0 = vcmp.ne.s32.totalorder %v8547_v61, 0  ;;  %vm12959_vm15 = vcmp.lt.s32.totalorder %v8547_v61, 0 }
  0x98   : > { %v12956_v53 = vsel %vm8644_vm12, 4294967295, %v12955_v53  ;;  %vm8665_vm6 = vmand %vm12959_vm15, %vm12958_vm0  ;;  %v12960_v22 = vmov 0  ;;  %v8670_v31 = vadd.s32 24, %v8547_v61  ;;  %v8673_v37 = vadd.s32 24, %v8552_v46 }
  0x99   : > { %12957 = vst [vmem:[#allocation38_spill] sm:$0xff] %v12956_v53  ;;  %v12961_v22 = vsel %vm8665_vm6, 4294967295, %v12960_v22  ;;  %vm12965_vm9 = vcmp.ne.s32.totalorder %v8552_v46, 0  ;;  %v12966_v42 = vmov 0  ;;  %v8688_v40 = vadd.s32 24, %v8556_v45 }
  0x9a   : > { %12962 = vst [vmem:[#allocation39_spill] sm:$0xff] %v12961_v22  ;;  %12963 = vst [vmem:[#allocation40_spill] sm:$0xff] %v8670_v31  ;;  %v8691_v21 = vsub.s32 %v8444_v36, %v1140_v15  ;;  %v1150_v9 = vshrl.u32 %v8560_v28, 4  ;;  %vm12970_vm0 = vcmp.ne.s32.totalorder %v8556_v45, 0  ;;  %vm12971_vm15 = vcmp.lt.s32.totalorder %v8556_v45, 0 }
  0x9b   : > { %12964 = vst [vmem:[#allocation41_spill] sm:$0xff] %v8673_v37  ;;  %vm8683_vm11 = vmand %vm1518_vm13, %vm12965_vm9  ;;  %v12972_v60 = vmov 0  ;;  %v1173_v4 = vmul.u32 24, %v1172_v24  ;;  %v1183_v39 = vshrl.u32 %v8578_v5, 4  ;;  %v8720_v5 = vsub.s32 %v8488_v25, %v1118_v52 }
  0x9c   : > { %v12967_v42 = vsel %vm8683_vm11, 4294967295, %v12966_v42  ;;  %12969 = vst [vmem:[#allocation43_spill] sm:$0xff] %v8688_v40  ;;  %vm8698_vm10 = vmand %vm12971_vm15, %vm12970_vm0  ;;  %v8704_v6 = vmul.u32.u64.low 2863311531, %v8638_v14  ;;  %v8705_v11 = vmul.u32.u64.high 2863311531, %v8638_v14, %v8704_v6  ;;  %v1161_v28 = vshrl.u32 %v8608_v12, 4 }
  0x9d   : > { %12968 = vst [vmem:[#allocation42_spill] sm:$0xff] %v12967_v42  ;;  %v12973_v60 = vsel %vm8698_vm10, 4294967295, %v12972_v60  ;;  %v8732_v15 = vadd.s32 240, %v8161_v2  ;;  %v1151_v25 = vmul.u32 24, %v1150_v9  ;;  %v1216_v6 = vshrl.u32 %v8622_v63, 4 }
  0x9e   : > { %12974 = vst [vmem:[#allocation44_spill] sm:$0xff] %v12973_v60  ;;  %v8742_v36 = vsub.s32 %v8508_v32, %v1173_v4  ;;  %v1184_v24 = vmul.u32 24, %v1183_v39  ;;  %v1194_v12 = vshrl.u32 %v8635_v55, 4  ;;  %v8746_v46 = vadd.s32 24, %v8691_v21 }
  0x9f   : > { %v1227_v52 = vshrl.u32 %v8651_v50, 4  ;;  %v8751_v45 = vadd.s32 224, %v8161_v2  ;;  %v1162_v9 = vmul.u32 24, %v1161_v28  ;;  %v8758_v4 = vadd.s32 248, %v8161_v2 }
  0xa0   : > { %12975 = vst [vmem:[#allocation45_spill] sm:$0xff] %v8742_v36  ;;  %v8754_v63 = vmul.u32.u64.low 2863311531, %v8732_v15  ;;  %v8755_v40 = vmul.u32.u64.high 2863311531, %v8732_v15, %v8754_v63  ;;  %v8762_v55 = vadd.s32 24, %v8720_v5  ;;  %v8765_v32 = vsub.s32 %v8529_v8, %v1151_v25 }
  0xa1   : > { %v1217_v50 = vmul.u32 24, %v1216_v6  ;;  %v8769_v39 = vsub.s32 %v8536_v56, %v1184_v24  ;;  %v1195_v28 = vmul.u32 24, %v1194_v12  ;;  %v1205_v63 = vshrl.u32 %v8705_v11, 4 }
  0xa2   : > { %v1228_v60 = vmul.u32 24, %v1227_v52  ;;  %v8774_v37 = vmul.u32.u64.low 2863311531, %v8751_v45  ;;  %v8775_v42 = vmul.u32.u64.high 2863311531, %v8751_v45, %v8774_v37  ;;  %v8778_v61 = vsub.s32 %v8539_v30, %v1162_v9 }
  0xa3   : > { %12976 = vst [vmem:[#allocation46_spill] sm:$0xff] %v8769_v39  ;;  %v8781_v8 = vmul.u32.u64.low 2863311531, %v8758_v4  ;;  %v8782_v6 = vmul.u32.u64.high 2863311531, %v8758_v4, %v8781_v8  ;;  %v8785_v56 = vadd.s32 232, %v8161_v2  ;;  %v8788_v24 = vadd.s32 24, %v8742_v36 }
  0xa4   : > { %12977 = vst [vmem:[#allocation47_spill] sm:$0xff] %v8778_v61  ;;  %v8793_v11 = vsub.s32 %v8563_v48, %v1217_v50  ;;  %v8796_v37 = vadd.s32 24, %v8765_v32  ;;  %v8800_v30 = vsub.s32 %v8581_v23, %v1195_v28  ;;  %v1206_v52 = vmul.u32 24, %v1205_v63 }
  0xa5   : > { %v8804_v25 = vadd.s32 24, %v8769_v39  ;;  %v8807_v12 = vsub.s32 %v8595_v57, %v1228_v60  ;;  %v8810_v48 = vadd.s32 272, %v8161_v2  ;;  %vm12981_vm0 = vcmp.ne.s32.totalorder %v8691_v21, 0 }
  0xa6   : > { %12978 = vst [vmem:[#allocation48_spill] sm:$0xff] %v8793_v11  ;;  %12979 = vst [vmem:[#allocation49_spill] sm:$0xff] %v8800_v30  ;;  %vm12982_vm9 = vcmp.lt.s32.totalorder %v8691_v21, 0  ;;  %v1260_v23 = vshrl.u32 %v8755_v40, 4  ;;  %v8823_v50 = vmul.u32.u64.low 2863311531, %v8785_v56  ;;  %v8824_v28 = vmul.u32.u64.high 2863311531, %v8785_v56, %v8823_v50 }
  0xa7   : > { %12980 = vst [vmem:[#allocation50_spill] sm:$0xff] %v8807_v12  ;;  %vm8816_vm15 = vmand %vm12982_vm9, %vm12981_vm0  ;;  %vm12985_vm13 = vcmp.ne.s32.totalorder %v8720_v5, 0  ;;  %vm12986_vm11 = vcmp.lt.s32.totalorder %v8720_v5, 0  ;;  %v12987_v57 = vmov 0  ;;  %v8837_v60 = vadd.s32 256, %v8161_v2 }
  0xa8   : > { %vm8830_vm6 = vmand %vm12986_vm11, %vm12985_vm13  ;;  %v8840_v40 = vadd.s32 280, %v8161_v2  ;;  %vm12989_vm10 = vcmp.ne.s32.totalorder %v8742_v36, 0  ;;  %vm12990_vm12 = vcmp.lt.s32.totalorder %v8742_v36, 0  ;;  %v12991_v63 = vmov 0 }
  0xa9   : > { %v12988_v57 = vsel %vm8830_vm6, 4294967295, %v12987_v57  ;;  %vm8846_vm7 = vmand %vm12990_vm12, %vm12989_vm10  ;;  %v8854_v8 = vsub.s32 %v8638_v14, %v1206_v52  ;;  %vm12994_vm9 = vcmp.ne.s32.totalorder %v8765_v32, 0  ;;  %vm12995_vm14 = vcmp.lt.s32.totalorder %v8765_v32, 0  ;;  %v8873_v14 = vld [vmem:[%s12320_s5] sm:$0xff]  }
  0xaa   : > { %v12992_v63 = vsel %vm8846_vm7, 4294967295, %v12991_v63  ;;  %vm8860_vm4 = vmand %vm12995_vm14, %vm12994_vm9  ;;  %v12996_v50 = vmov 0  ;;  %v1238_v31 = vshrl.u32 %v8775_v42, 4  ;;  %12998 = vst [vmem:[#allocation52_spill] sm:$0xff] %v8873_v14  ;;  %vm12999_vm12 = vcmp.ne.s32.totalorder %v8769_v39, 0  ;;  %6715 = vmatprep.subr.bf16.mxu0 %v8873_v14 }
  0xab   : > { %12993 = vst [vmem:[#allocation51_spill] sm:$0xff] %v8854_v8  ;;  %v12997_v50 = vsel %vm8860_vm4, 4294967295, %v12996_v50  ;;  %v8867_v22 = vmul.u32.u64.low 2863311531, %v8810_v48  ;;  %v8868_v18 = vmul.u32.u64.high 2863311531, %v8810_v48, %v8867_v22  ;;  %vm13000_vm14 = vcmp.lt.s32.totalorder %v8769_v39, 0 }
  0xac   : > { %vm8879_vm9 = vmand %vm13000_vm14, %vm12999_vm12  ;;  %v13001_v52 = vmov 0  ;;  %v1261_v42 = vmul.u32 24, %v1260_v23  ;;  %v1271_v59 = vshrl.u32 %v8782_v6, 4  ;;  %v8886_v22 = vadd.s32 264, %v8161_v2 }
  0xad   : > { %v13002_v52 = vsel %vm8879_vm9, 4294967295, %v13001_v52  ;;  %vm13003_vm0 = vcmp.ne.s32.totalorder %v8778_v61, 0  ;;  %vm13004_vm13 = vcmp.lt.s32.totalorder %v8778_v61, 0  ;;  %v13005_v53 = vmov 0 }
  0xae   : > { %vm8892_vm11 = vmand %vm13004_vm13, %vm13003_vm0  ;;  %v8897_v16 = vmul.u32.u64.low 2863311531, %v8837_v60  ;;  %v8898_v19 = vmul.u32.u64.high 2863311531, %v8837_v60, %v8897_v16  ;;  %v8901_v43 = vmul.u32.u64.low 2863311531, %v8840_v40  ;;  %v8902_v23 = vmul.u32.u64.high 2863311531, %v8840_v40, %v8901_v43 }
  0xaf   : > { %v13006_v53 = vsel %vm8892_vm11, 4294967295, %v13005_v53  ;;  %v8906_v6 = vadd.s32 24, %v8778_v61  ;;  %vm13009_vm12 = vcmp.ne.s32.totalorder %v8793_v11, 0  ;;  %vm13010_vm0 = vcmp.lt.s32.totalorder %v8793_v11, 0 }
  0xb0   : > { %13007 = vst [vmem:[#allocation53_spill] sm:$0xff] %v13006_v53  ;;  %vm8912_vm13 = vmand %vm13010_vm0, %vm13009_vm12  ;;  %v13011_v0 = vmov 0  ;;  %v8917_v62 = vadd.s32 24, %v8793_v11  ;;  %vm1525_vm10 = vcmp.lt.s32.totalorder %v8854_v8, 0  ;;  %vm13015_vm3 = vcmp.ne.s32.totalorder %v8800_v30, 0 }
  0xb1   : > { %13008 = vst [vmem:[#allocation54_spill] sm:$0xff] %v8906_v6  ;;  %v13012_v0 = vsel %vm8912_vm13, 4294967295, %v13011_v0  ;;  %vm13016_vm1 = vcmp.lt.s32.totalorder %v8800_v30, 0  ;;  %v13017_v16 = vmov 0  ;;  %v8930_v43 = vadd.s32 24, %v8800_v30 }
  0xb2   : > { %13013 = vst [vmem:[#allocation55_spill] sm:$0xff] %v13012_v0  ;;  %13014 = vst [vmem:[#allocation56_spill] sm:$0xff] %v8917_v62  ;;  %v8933_v14 = vadd.s32 24, %v8807_v12  ;;  %v8936_v41 = vadd.s32 24, %v8854_v8  ;;  %v1239_v38 = vmul.u32 24, %v1238_v31  ;;  %vm13023_vm12 = vcmp.ne.s32.totalorder %v8807_v12, 0 }
  0xb3   : > { %vm8925_vm8 = vmand %vm13016_vm1, %vm13015_vm3  ;;  %13020 = vst [vmem:[#allocation58_spill] sm:$0xff] %v8930_v43  ;;  %vm13024_vm0 = vcmp.lt.s32.totalorder %v8807_v12, 0  ;;  %v13025_v58 = vmov 0  ;;  %v1272_v7 = vmul.u32 24, %v1271_v59  ;;  %v1249_v26 = vshrl.u32 %v8824_v28, 4 }
  0xb4   : > { %v13018_v16 = vsel %vm8925_vm8, 4294967295, %v13017_v16  ;;  %13021 = vst [vmem:[#allocation59_spill] sm:$0xff] %v8933_v14  ;;  %13022 = vst [vmem:[#allocation60_spill] sm:$0xff] %v8936_v41  ;;  %v8948_v33 = vmul.u32.u64.low 2863311531, %v8886_v22  ;;  %v8949_v1 = vmul.u32.u64.high 2863311531, %v8886_v22, %v8948_v33  ;;  %vm13028_vm1 = vcmp.ne.s32.totalorder %v8854_v8, 0 }
  0xb5   : > { %13019 = vst [vmem:[#allocation57_spill] sm:$0xff] %v13018_v16  ;;  %vm8942_vm14 = vmand %vm13024_vm0, %vm13023_vm12  ;;  %v13029_v28 = vmov 0  ;;  %v8970_v33 = vsub.s32 %v8732_v15, %v1261_v42  ;;  %v8985_v36 = vadd.s32 304, %v8161_v2  ;;  %v8996_v49 = vsub.s32 %v8751_v45, %v1239_v38 }
  0xb6   : > { %v13026_v58 = vsel %vm8942_vm14, 4294967295, %v13025_v58  ;;  %vm8965_vm3 = vmand %vm1525_vm10, %vm13028_vm1  ;;  %v1304_v31 = vshrl.u32 %v8868_v18, 4  ;;  %v9008_v11 = vsub.s32 %v8758_v4, %v1272_v7  ;;  %v1250_v16 = vmul.u32 24, %v1249_v26 }
  0xb7   : > { %13027 = vst [vmem:[#allocation61_spill] sm:$0xff] %v13026_v58  ;;  %v13030_v28 = vsel %vm8965_vm3, 4294967295, %v13029_v28  ;;  %13032 = vst [vmem:[#allocation63_spill] sm:$0xff] %v8970_v33  ;;  %v1282_v45 = vshrl.u32 %v8898_v19, 4  ;;  %v1315_v18 = vshrl.u32 %v8902_v23, 4  ;;  %v9015_v38 = vadd.s32 24, %v8970_v33 }
  0xb8   : > { %13031 = vst [vmem:[#allocation62_spill] sm:$0xff] %v13030_v28  ;;  %13033 = vst [vmem:[#allocation64_spill] sm:$0xff] %v8996_v49  ;;  %v9018_v59 = vmul.u32.u64.low 2863311531, %v8985_v36  ;;  %v9019_v42 = vmul.u32.u64.high 2863311531, %v8985_v36, %v9018_v59  ;;  %v9022_v15 = vadd.s32 288, %v8161_v2  ;;  %v1305_v7 = vmul.u32 24, %v1304_v31 }
  0xb9   : > { %13034 = vst [vmem:[#allocation65_spill] sm:$0xff] %v9008_v11  ;;  %13035 = vst [vmem:[#allocation66_spill] sm:$0xff] %v9015_v38  ;;  %v9027_v26 = vadd.s32 312, %v8161_v2  ;;  %v9030_v19 = vadd.s32 24, %v8996_v49  ;;  %v9034_v4 = vsub.s32 %v8785_v56, %v1250_v16  ;;  %v1293_v23 = vshrl.u32 %v8949_v1, 4 }
  0xba   : > { %v1283_v59 = vmul.u32 24, %v1282_v45  ;;  %v1316_v8 = vmul.u32 24, %v1315_v18  ;;  %v9039_v41 = vadd.s32 296, %v8161_v2  ;;  %v9042_v31 = vadd.s32 24, %v9008_v11 }
  0xbb   : > { %13036 = vst [vmem:[#allocation67_spill] sm:$0xff] %v9030_v19  ;;  %13037 = vst [vmem:[#allocation68_spill] sm:$0xff] %v9034_v4  ;;  %v9045_v28 = vmul.u32.u64.low 2863311531, %v9022_v15  ;;  %v9046_v12 = vmul.u32.u64.high 2863311531, %v9022_v15, %v9045_v28  ;;  %v9049_v14 = vadd.s32 336, %v8161_v2  ;;  %v9052_v56 = vsub.s32 %v8810_v48, %v1305_v7 }
  0xbc   : > { %13038 = vst [vmem:[#allocation69_spill] sm:$0xff] %v9042_v31  ;;  %v9055_v1 = vmul.u32.u64.low 2863311531, %v9027_v26  ;;  %v9056_v16 = vmul.u32.u64.high 2863311531, %v9027_v26, %v9055_v1  ;;  %v9059_v45 = vadd.s32 320, %v8161_v2  ;;  %v1294_v18 = vmul.u32 24, %v1293_v23 }
  0xbd   : > { %13039 = vst [vmem:[#allocation70_spill] sm:$0xff] %v9052_v56  ;;  %v9064_v28 = vadd.s32 344, %v8161_v2  ;;  %v9067_v58 = vsub.s32 %v8837_v60, %v1283_v59  ;;  %v9070_v48 = vsub.s32 %v8840_v40, %v1316_v8  ;;  %v1348_v30 = vshrl.u32 %v9019_v42, 4 }
  0xbe   : > { %v9073_v7 = vmul.u32.u64.low 2863311531, %v9039_v41  ;;  %v9074_v1 = vmul.u32.u64.high 2863311531, %v9039_v41, %v9073_v7  ;;  %v9078_v43 = vmul.u32.u64.low 2863311531, %v9049_v14  ;;  %v9079_v62 = vmul.u32.u64.high 2863311531, %v9049_v14, %v9078_v43 }
  0xbf   : > { %13040 = vst [vmem:[#allocation71_spill] sm:$0xff] %v9067_v58  ;;  %13041 = vst [vmem:[#allocation72_spill] sm:$0xff] %v9070_v48  ;;  %v9082_v23 = vadd.s32 328, %v8161_v2  ;;  %vm13042_vm12 = vcmp.ne.s32.totalorder %v8970_v33, 0  ;;  %vm13043_vm10 = vcmp.lt.s32.totalorder %v8970_v33, 0  ;;  %v13044_v60 = vmov 0 }
  0xc0   : > { %vm9088_vm1 = vmand %vm13043_vm10, %vm13042_vm12  ;;  %v9093_v40 = vadd.s32 24, %v9034_v4  ;;  %v9097_v8 = vmul.u32.u64.low 2863311531, %v9059_v45  ;;  %v9098_v42 = vmul.u32.u64.high 2863311531, %v9059_v45, %v9097_v8  ;;  %vm13047_vm3 = vcmp.ne.s32.totalorder %v8996_v49, 0 }
  0xc1   : > { %v13045_v60 = vsel %vm9088_vm1, 4294967295, %v13044_v60  ;;  %vm13048_vm14 = vcmp.lt.s32.totalorder %v8996_v49, 0  ;;  %v13049_v43 = vmov 0  ;;  %v9110_v59 = vsub.s32 %v8886_v22, %v1294_v18 }
  0xc2   : > { %13046 = vst [vmem:[#allocation73_spill] sm:$0xff] %v9093_v40  ;;  %vm9104_vm8 = vmand %vm13048_vm14, %vm13047_vm3  ;;  %v9113_v7 = vmul.u32.u64.low 2863311531, %v9064_v28  ;;  %v9114_v0 = vmul.u32.u64.high 2863311531, %v9064_v28, %v9113_v7  ;;  %vm13053_vm12 = vcmp.ne.s32.totalorder %v9008_v11, 0  ;;  %vm13054_vm0 = vcmp.lt.s32.totalorder %v9008_v11, 0 }
  0xc3   : > { %v13050_v43 = vsel %vm9104_vm8, 4294967295, %v13049_v43  ;;  %13052 = vst [vmem:[#allocation75_spill] sm:$0xff] %v9110_v59  ;;  %vm9120_vm13 = vmand %vm13054_vm0, %vm13053_vm12  ;;  %v13055_v8 = vmov 0  ;;  %vm1484_vm14 = vcmp.ne.s32.totalorder %v9067_v58, 0  ;;  %vm1532_vm3 = vcmp.lt.s32.totalorder %v9067_v58, 0 }
  0xc4   : > { %13051 = vst [vmem:[#allocation74_spill] sm:$0xff] %v13050_v43  ;;  %v13056_v8 = vsel %vm9120_vm13, 4294967295, %v13055_v8  ;;  %v9127_v61 = vmul.u32.u64.low 2863311531, %v9082_v23  ;;  %v9128_v22 = vmul.u32.u64.high 2863311531, %v9082_v23, %v9127_v61  ;;  %vm13058_vm10 = vcmp.ne.s32.totalorder %v9034_v4, 0  ;;  %vm9165_vm12 = vmand %vm1532_vm3, %vm1484_vm14 }
  0xc5   : > { %13057 = vst [vmem:[#allocation76_spill] sm:$0xff] %v13056_v8  ;;  %vm13059_vm11 = vcmp.lt.s32.totalorder %v9034_v4, 0  ;;  %v13060_v18 = vmov 0  ;;  %v1349_v7 = vmul.u32 24, %v1348_v30  ;;  %v1326_v6 = vshrl.u32 %v9046_v12, 4 }
  0xc6   : > { %vm9134_vm9 = vmand %vm13059_vm11, %vm13058_vm10  ;;  %vm13063_vm11 = vcmp.ne.s32.totalorder %v9052_v56, 0  ;;  %vm13064_vm10 = vcmp.lt.s32.totalorder %v9052_v56, 0  ;;  %v13065_v39 = vmov 0  ;;  %v9158_v30 = vadd.s32 24, %v9052_v56 }
  0xc7   : > { %v13061_v18 = vsel %vm9134_vm9, 4294967295, %v13060_v18  ;;  %vm9153_vm0 = vmand %vm13064_vm10, %vm13063_vm11  ;;  %v1359_v12 = vshrl.u32 %v9056_v16, 4  ;;  %v13069_v61 = vmov 0  ;;  %v9170_v53 = vadd.s32 24, %v9067_v58 }
  0xc8   : > { %13062 = vst [vmem:[#allocation77_spill] sm:$0xff] %v13061_v18  ;;  %v13066_v39 = vsel %vm9153_vm0, 4294967295, %v13065_v39  ;;  %13068 = vst [vmem:[#allocation79_spill] sm:$0xff] %v9158_v30  ;;  %v13070_v61 = vsel %vm9165_vm12, 4294967295, %v13069_v61  ;;  %v9173_v49 = vadd.s32 24, %v9070_v48  ;;  %vm1485_vm11 = vcmp.ne.s32.totalorder %v9110_v59, 0 }
  0xc9   : > { %13067 = vst [vmem:[#allocation78_spill] sm:$0xff] %v13066_v39  ;;  %13071 = vst [vmem:[#allocation80_spill] sm:$0xff] %v13070_v61  ;;  %vm1533_vm10 = vcmp.lt.s32.totalorder %v9110_v59, 0  ;;  %vm13074_vm14 = vcmp.ne.s32.totalorder %v9070_v48, 0  ;;  %vm13075_vm3 = vcmp.lt.s32.totalorder %v9070_v48, 0  ;;  %v13076_v43 = vmov 0 }
  0xca   : > { %13072 = vst [vmem:[#allocation81_spill] sm:$0xff] %v9170_v53  ;;  %13073 = vst [vmem:[#allocation82_spill] sm:$0xff] %v9173_v49  ;;  %v1337_v33 = vshrl.u32 %v9074_v1, 4  ;;  %v9195_v38 = vadd.s32 368, %v8161_v2  ;;  %v9198_v16 = vadd.s32 24, %v9110_v59  ;;  %v9201_v11 = vsub.s32 %v8985_v36, %v1349_v7  ;;  %v7746_v39 = vld [vmem:[%s12320_s5 + $0x1d8] sm:$0xff]  }
  0xcb   : > { %vm9189_vm8 = vmand %vm13075_vm3, %vm13074_vm14  ;;  %v1327_v19 = vmul.u32 24, %v1326_v6  ;;  %v1392_v4 = vshrl.u32 %v9079_v62, 4  ;;  %v13081_v18 = vmov 0  ;;  %v1360_v1 = vmul.u32 24, %v1359_v12 }
  0xcc   : > { %v13077_v43 = vsel %vm9189_vm8, 4294967295, %v13076_v43  ;;  %13079 = vst [vmem:[#allocation84_spill] sm:$0xff] %v9198_v16  ;;  %13080 = vst [vmem:[#allocation85_spill] sm:$0xff] %v9201_v11  ;;  %v1370_v31 = vshrl.u32 %v9098_v42, 4  ;;  %v9214_v8 = vadd.s32 352, %v8161_v2  ;;  %v1403_v6 = vshrl.u32 %v9114_v0, 4 }
  0xcd   : > { %13078 = vst [vmem:[#allocation83_spill] sm:$0xff] %v13077_v43  ;;  %vm9208_vm14 = vmand %vm1533_vm10, %vm1485_vm11  ;;  %v9226_v7 = vadd.s32 376, %v8161_v2  ;;  %v1338_v12 = vmul.u32 24, %v1337_v33  ;;  %v1381_v42 = vshrl.u32 %v9128_v22, 4  ;;  %v9239_v36 = vsub.s32 %v9022_v15, %v1327_v19 }
  0xce   : > { %v13082_v18 = vsel %vm9208_vm14, 4294967295, %v13081_v18  ;;  %v9230_v40 = vmul.u32.u64.low 2863311531, %v9195_v38  ;;  %v9231_v56 = vmul.u32.u64.high 2863311531, %v9195_v38, %v9230_v40  ;;  %v1393_v0 = vmul.u32 24, %v1392_v4 }
  0xcf   : > { %13083 = vst [vmem:[#allocation86_spill] sm:$0xff] %v13082_v18  ;;  %13084 = vst [vmem:[#allocation87_spill] sm:$0xff] %v9239_v36  ;;  %v9242_v48 = vsub.s32 %v9027_v26, %v1360_v1  ;;  %v1371_v33 = vmul.u32 24, %v1370_v31  ;;  %v9245_v22 = vmul.u32.u64.low 2863311531, %v9214_v8  ;;  %v9246_v49 = vmul.u32.u64.high 2863311531, %v9214_v8, %v9245_v22  ;;  %v13266_v18 = vld [vmem:[#allocation36_spill] sm:$0xff] }
  0xd0   : > { %v1404_v40 = vmul.u32 24, %v1403_v6  ;;  %v9249_v43 = vmul.u32.u64.low 2863311531, %v9226_v7  ;;  %v9250_v58 = vmul.u32.u64.high 2863311531, %v9226_v7, %v9249_v43  ;;  %v9253_v62 = vadd.s32 360, %v8161_v2 }
  0xd1   : > { %13085 = vst [vmem:[#allocation88_spill] sm:$0xff] %v9242_v48  ;;  %v9257_v15 = vadd.s32 24, %v9201_v11  ;;  %v9260_v26 = vsub.s32 %v9039_v41, %v1338_v12  ;;  %v1382_v19 = vmul.u32 24, %v1381_v42  ;;  %v9265_v4 = vsub.s32 %v9049_v14, %v1393_v0 }
  0xd2   : > { %v1436_v31 = vshrl.u32 %v9231_v56, 4  ;;  %v9270_v43 = vsub.s32 %v9059_v45, %v1371_v33  ;;  %v9273_v1 = vmul.u32.u64.low 2863311531, %v9253_v62  ;;  %v9274_v6 = vmul.u32.u64.high 2863311531, %v9253_v62, %v9273_v1 }
  0xd3   : > { %13086 = vst [vmem:[#allocation89_spill] sm:$0xff] %v9257_v15  ;;  %13087 = vst [vmem:[#allocation90_spill] sm:$0xff] %v9260_v26  ;;  %v9278_v41 = vsub.s32 %v9064_v28, %v1404_v40  ;;  %v1414_v14 = vshrl.u32 %v9246_v49, 4  ;;  %v13091_v56 = vsel %vm8249_vm2, %v8240_v29, %v8213_v3  ;;  %v13092_v45 = vmov 0 }
  0xd4   : > { %13088 = vst [vmem:[#allocation91_spill] sm:$0xff] %v9265_v4  ;;  %13089 = vst [vmem:[#allocation92_spill] sm:$0xff] %v9270_v43  ;;  %v1437_v12 = vmul.u32 24, %v1436_v31  ;;  %vm9286_vm14 = vcmp.lt.s32.totalorder %v13091_v56, 16  ;;  %vm13095_vm11 = vcmp.ne.s32.totalorder %v9201_v11, 0  ;;  %vm13096_vm3 = vcmp.lt.s32.totalorder %v9201_v11, 0 }
  0xd5   : > { %13090 = vst [vmem:[#allocation93_spill] sm:$0xff] %v9278_v41  ;;  %v13093_v45 = vsel %vm9286_vm14, 4294967295, %v13092_v45  ;;  %vm9294_vm10 = vmand %vm13096_vm3, %vm13095_vm11  ;;  %v13097_v42 = vmov 0  ;;  %v9301_v34 = vsub.s32 %v9082_v23, %v1382_v19  ;;  %v1447_v3 = vshrl.u32 %v9250_v58, 4 }
  0xd6   : > { %13094 = vst [vmem:[#allocation94_spill] sm:$0xff] %v13093_v45  ;;  %v13098_v42 = vsel %vm9294_vm10, 4294967295, %v13097_v42  ;;  %vm13101_vm2 = vcmp.ne.s32.totalorder %v9239_v36, 0  ;;  %vm13102_vm0 = vcmp.lt.s32.totalorder %v9239_v36, 0  ;;  %v13103_v29 = vmov 0 }
  0xd7   : > { %13099 = vst [vmem:[#allocation95_spill] sm:$0xff] %v13098_v42  ;;  %13100 = vst [vmem:[#allocation96_spill] sm:$0xff] %v9301_v34  ;;  %v9313_v49 = vadd.s32 24, %v9239_v36  ;;  %v9316_v28 = vadd.s32 24, %v9242_v48  ;;  %v13108_v58 = vsel %vm8274_vm5, %v8256_v35, %v8226_v20  ;;  %v13109_v23 = vmov 0 }
  0xd8   : > { %vm9308_vm9 = vmand %vm13102_vm0, %vm13101_vm2  ;;  %vm9325_vm12 = vcmp.lt.s32.totalorder %v13108_v58, 16  ;;  %vm13112_vm0 = vnez %v12889_v17  ;;  %v13114_v33 = vmov 0  ;;  %vm13117_vm3 = vcmp.ne.s32.totalorder %v9242_v48, 0 }
  0xd9   : > { %v13104_v29 = vsel %vm9308_vm9, 4294967295, %v13103_v29  ;;  %13106 = vst [vmem:[#allocation98_spill] sm:$0xff] %v9313_v49  ;;  %13107 = vst [vmem:[#allocation99_spill] sm:$0xff] %v9316_v28  ;;  %v13110_v23 = vsel %vm9325_vm12, 4294967295, %v13109_v23  ;;  %v13113_v0 = vsel %vm13112_vm0, %v8286_v54, %v8243_v13  ;;  %vm13118_vm11 = vcmp.lt.s32.totalorder %v9242_v48, 0  ;;  %v13209_v28 = vld [vmem:[#allocation19_spill] sm:$0xff] }
  0xda   : > { %13105 = vst [vmem:[#allocation97_spill] sm:$0xff] %v13104_v29  ;;  %13111 = vst [vmem:[#allocation100_spill] sm:$0xff] %v13110_v23  ;;  %vm9334_vm2 = vcmp.lt.s32.totalorder %v13113_v0, 16  ;;  %v9347_v20 = vadd.s32 24, %v9260_v26  ;;  %v9352_v13 = vsub.s32 %v9195_v38, %v1437_v12  ;;  %vm13124_vm0 = vnez %v12895_v10  ;;  %v7744_v49 = vld [vmem:[%s12320_s5 + $0x1c8] sm:$0xff]   ;;  %v13230_v29 = vld [vmem:[#allocation14_spill] sm:$0xff] }
  0xdb   : > { %v13115_v33 = vsel %vm9334_vm2, 4294967295, %v13114_v33  ;;  %vm9342_vm8 = vmand %vm13118_vm11, %vm13117_vm3  ;;  %v13125_v35 = vsel %vm13124_vm0, %v8325_v47, %v8283_v51  ;;  %v13126_v54 = vmov 0  ;;  %vm13129_vm11 = vcmp.ne.s32.totalorder %v9260_v26, 0  ;;  %v9379_v47 = vld [vmem:[%s12319_s4] ss:$0 sm:$0xff] }
  0xdc   : > { %13116 = vst [vmem:[#allocation101_spill] sm:$0xff] %v13115_v33  ;;  %v13120_v44 = vsel %vm9342_vm8, 4294967295, %v13119_v44  ;;  %13122 = vst [vmem:[#allocation103_spill] sm:$0xff] %v9347_v20  ;;  %vm9359_vm1 = vcmp.lt.s32.totalorder %v13125_v35, 16  ;;  %vm13130_vm3 = vcmp.lt.s32.totalorder %v9260_v26, 0  ;;  %v13131_v17 = vmov 0 }
  0xdd   : > { %13121 = vst [vmem:[#allocation102_spill] sm:$0xff] %v13120_v44  ;;  %13123 = vst [vmem:[#allocation104_spill] sm:$0xff] %v9352_v13  ;;  %v13127_v54 = vsel %vm9359_vm1, 4294967295, %v13126_v54  ;;  %v9372_v38 = vadd.s32 24, %v9265_v4  ;;  %v1415_v51 = vmul.u32 24, %v1414_v14  ;;  %vm13135_vm0 = vcmp.ne.s32.totalorder %v9265_v4, 0 }
  0xde   : > { %13128 = vst [vmem:[#allocation105_spill] sm:$0xff] %v13127_v54  ;;  %vm9367_vm4 = vmand %vm13130_vm3, %vm13129_vm11  ;;  %vm13136_vm11 = vcmp.lt.s32.totalorder %v9265_v4, 0  ;;  %v13137_v10 = vmov 0  ;;  %v9390_v22 = vadd.s32 24, %v9270_v43  ;;  %v1448_v40 = vmul.u32 24, %v1447_v3  ;;  %v13169_v3 = vld [vmem:[#allocation9_spill] sm:$0xff] }
  0xdf   : > { %v13132_v17 = vsel %vm9367_vm4, 4294967295, %v13131_v17  ;;  %13134 = vst [vmem:[#allocation107_spill] sm:$0xff] %v9372_v38  ;;  %vm9385_vm3 = vmand %vm13136_vm11, %vm13135_vm0  ;;  %vm13141_vm0 = vcmp.ne.s32.totalorder %v9270_v43, 0  ;;  %vm13142_vm11 = vcmp.lt.s32.totalorder %v9270_v43, 0  ;;  %v13143_v1 = vmov 0  ;;  %v13171_v43 = vld [vmem:[#allocation10_spill] sm:$0xff] }
  0xe0   : > { %13133 = vst [vmem:[#allocation106_spill] sm:$0xff] %v13132_v17  ;;  %v13138_v10 = vsel %vm9385_vm3, 4294967295, %v13137_v10  ;;  %13140 = vst [vmem:[#allocation109_spill] sm:$0xff] %v9390_v22  ;;  %v9412_v12 = vadd.s32 24, %v9278_v41  ;;  %v1425_v14 = vshrl.u32 %v9274_v6, 4  ;;  %vm13147_vm7 = vcmp.ne.s32.totalorder %v9278_v41, 0 }
  0xe1   : > { %13139 = vst [vmem:[#allocation108_spill] sm:$0xff] %v13138_v10  ;;  %vm9407_vm13 = vmand %vm13142_vm11, %vm13141_vm0  ;;  %vm13148_vm5 = vcmp.lt.s32.totalorder %v9278_v41, 0  ;;  %v13149_v58 = vmov 0  ;;  %v9428_v0 = vadd.s32 24, %v9301_v34  ;;  %v13155_v19 = vmov 0  ;;  %v13172_v22 = vld [vmem:[#allocation4_spill] sm:$0xff] }
  0xe2   : > { %v13144_v1 = vsel %vm9407_vm13, 4294967295, %v13143_v1  ;;  %13146 = vst [vmem:[#allocation111_spill] sm:$0xff] %v9412_v12  ;;  %vm9423_vm9 = vmand %vm13148_vm5, %vm13147_vm7  ;;  %vm13153_vm7 = vcmp.ne.s32.totalorder %v9301_v34, 0  ;;  %vm13154_vm5 = vcmp.lt.s32.totalorder %v9301_v34, 0  ;;  %v9458_v31 = vadd.s32 24, %v9352_v13  ;;  %v13191_v41 = vld [vmem:[#allocation16_spill] sm:$0xff] }
  0xe3   : > { %13145 = vst [vmem:[#allocation110_spill] sm:$0xff] %v13144_v1  ;;  %v13150_v58 = vsel %vm9423_vm9, 4294967295, %v13149_v58  ;;  %13152 = vst [vmem:[#allocation113_spill] sm:$0xff] %v9428_v0  ;;  %v9461_v4 = vsub.s32 %v9226_v7, %v1448_v40  ;;  %v13166_v20 = vmov 0  ;;  %vm13170_vm11 = vnez %v13169_v3  ;;  %v13183_v3 = vld [vmem:[#allocation11_spill] sm:$0xff]  ;;  %v13211_v44 = vld [vmem:[#allocation17_spill] sm:$0xff] }
  0xe4   : > { %13151 = vst [vmem:[#allocation112_spill] sm:$0xff] %v13150_v58  ;;  %vm9445_vm0 = vmand %vm13154_vm5, %vm13153_vm7  ;;  %vm13162_vm7 = vnez %v12898_v27  ;;  %v13173_v7 = vsel %vm13170_vm11, %v13171_v43, %v13172_v22  ;;  %v13174_v40 = vmov 0  ;;  %vm13178_vm4 = vcmp.lt.s32.totalorder %v9352_v13, 0  ;;  %v13227_v1 = vld [vmem:[#allocation32_spill] sm:$0xff] }
  0xe5   : > { %v13156_v19 = vsel %vm9445_vm0, 4294967295, %v13155_v19  ;;  %13159 = vst [vmem:[#allocation116_spill] sm:$0xff] %v9458_v31  ;;  %13160 = vst [vmem:[#allocation117_spill] sm:$0xff] %v9461_v4  ;;  %vm9480_vm13 = vcmp.lt.s32.totalorder %v13173_v7, 16  ;;  %v1426_v43 = vmul.u32 24, %v1425_v14  ;;  %vm13184_vm11 = vnez %v13183_v3 }
  0xe6   : > { %13157 = vst [vmem:[#allocation114_spill] sm:$0xff] %v13156_v19  ;;  %v13175_v40 = vsel %vm9480_vm13, 4294967295, %v13174_v40  ;;  %v13188_v7 = vmov 0  ;;  %v13200_v34 = vmov 0  ;;  %v13214_v36 = vmov 0  ;;  %vm13224_vm10 = vmpackc.low %vm9359_vm1, %vm9334_vm2 }
  0xe7   : > { %v13232_v11 = vmov 0  ;;  %v13261_v23 = vmov 0  ;;  %v13271_v61 = vmov 0  ;;  %v13279_v30 = vmov 0 }
 0x101   : > { %v6605_v56 = vpop.f32.mrb[0].mxu0 }
 0x102   : > { %v645_v6 = vadd.f32 %v6605_v56, %v9379_v47  ;;  %v636_v35 = vpop.f32.mrb[1].mxu0  ;;  %v9450_v56 = vsub.s32 %v9214_v8, %v1415_v51  ;;  %v13163_v51 = vld [vmem:[#allocation5_spill] sm:$0xff] }
 0x103   : > { %v637_v48 = vadd.f32 %v9379_v47, %v636_v35  ;;  %v6606_v17 = vpop.f32.mrb[2].mxu0  ;;  %v13164_v35 = vld [vmem:[#allocation3_spill] sm:$0xff] }
 0x104   : > { %13158 = vst [vmem:[#allocation115_spill] sm:$0xff] %v9450_v56  ;;  %v9463_v38 = vmax.f32 %v645_v6, 0.0  ;;  %v648_v10 = vadd.f32 %v6606_v17, %v9379_v47  ;;  %v639_v8 = vpop.f32.mrb[3].mxu0  ;;  %v13165_v26 = vsel %vm13162_vm7, %v13163_v51, %v13164_v35  ;;  %13176 = vst [vmem:[#allocation3_spill] sm:$0xff] %v13175_v40  ;;  %vm13177_vm7 = vcmp.ne.s32.totalorder %v9352_v13, 0  ;;  %v13185_v6 = vld [vmem:[#allocation12_spill] sm:$0xff] }
 0x105   : > { %vm9471_vm5 = vcmp.lt.s32.totalorder %v13165_v26, 16  ;;  %vm9493_vm8 = vmand %vm13178_vm4, %vm13177_vm7  ;;  %v13179_v26 = vmov 0  ;;  %v9497_v17 = vmax.f32 %v637_v48, 0.0  ;;  %v640_v22 = vadd.f32 %v9379_v47, %v639_v8  ;;  %v13186_v51 = vld [vmem:[#allocation6_spill] sm:$0xff] }
 0x106   : > { %13161 = vst [vmem:[#allocation118_spill] sm:$0xff] %v9463_v38  ;;  %v13167_v20 = vsel %vm9471_vm5, 4294967295, %v13166_v20  ;;  %v13180_v26 = vsel %vm9493_vm8, 4294967295, %v13179_v26  ;;  %v13187_v35 = vsel %vm13184_vm11, %v13185_v6, %v13186_v51  ;;  %v9515_v48 = vpack.c.bf16 %v13191_v41, %v13191_v41  ;;  %v13195_v6 = vld [vmem:[#allocation15_spill] sm:$0xff]  ;;  %v13197_v51 = vld [vmem:[#allocation13_spill] sm:$0xff] }
 0x107   : > { %13168 = vst [vmem:[#allocation5_spill] sm:$0xff] %v13167_v20  ;;  %13181 = vst [vmem:[#allocation9_spill] sm:$0xff] %v13180_v26  ;;  %vm9505_vm3 = vcmp.lt.s32.totalorder %v13187_v35, 16  ;;  %v9520_v14 = vsel %vm9286_vm14, %v9463_v38, 0.0  ;;  %v830_v8 = vmax.f32 %v648_v10, 0.0  ;;  %v9524_v3 = vmax.f32 %v640_v22, 0.0 }
 0x108   : > { %13182 = vst [vmem:[#allocation10_spill] sm:$0xff] %v9497_v17  ;;  %v13189_v7 = vsel %vm9505_vm3, 4294967295, %v13188_v7  ;;  %13192 = vst [vmem:[#allocation11_spill] sm:$0xff] %v9515_v48  ;;  %vm13196_vm11 = vnez %v13195_v6  ;;  %v13198_v35 = vld [vmem:[#allocation7_spill] sm:$0xff]  ;;  %v9540_v48 = vadd.s32 24, %v9450_v56  ;;  %vm13208_vm4 = vcmp.lt.s32.totalorder %v8161_v2, 1 }
 0x109   : > { %13190 = vst [vmem:[#allocation4_spill] sm:$0xff] %v13189_v7  ;;  %13193 = vst [vmem:[#allocation12_spill] sm:$0xff] %v9520_v14  ;;  %v13199_v27 = vsel %vm13196_vm11, %v13197_v51, %v13198_v35  ;;  %v9545_v22 = vsel %vm9325_vm12, %v830_v8, 0.0  ;;  %v6130_v6 = vpack.c.bf16 %v830_v8, %v9463_v38  ;;  %v9554_v51 = vsub.s32 %v9253_v62, %v1426_v43  ;;  %v6609_v31 = vpop.f32.mrb[4].mxu0 }
 0x10a   : > { %13194 = vst [vmem:[#allocation6_spill] sm:$0xff] %v9524_v3  ;;  %vm9531_vm0 = vcmp.lt.s32.totalorder %v13199_v27, 16  ;;  %13203 = vst [vmem:[#allocation13_spill] sm:$0xff] %v9540_v48  ;;  %v9551_v27 = vsel %vm9334_vm2, %v9497_v17, 0.0  ;;  %v1999_v35 = vrot.slane %v9520_v14, 7  ;;  %v2000_v10 = vrot.slane %v9545_v22, 7 }
 0x10b   : > { %v13201_v34 = vsel %vm9531_vm0, 4294967295, %v13200_v34  ;;  %13204 = vst [vmem:[#allocation7_spill] sm:$0xff] %v9545_v22  ;;  %13205 = vst [vmem:[#allocation119_spill] sm:$0xff] %v9551_v27  ;;  %v9563_v26 = vsel %vm9359_vm1, %v9524_v3, 0.0  ;;  %v661_v62 = vadd.f32 %v6609_v31, %v9379_v47  ;;  %v652_v43 = vpop.f32.mrb[5].mxu0  ;;  %v1997_v0 = vrot.slane %v9551_v27, 7 }
 0x10c   : > { %13202 = vst [vmem:[#allocation15_spill] sm:$0xff] %v13201_v34  ;;  %13206 = vst [vmem:[#allocation120_spill] sm:$0xff] %v9554_v51  ;;  %v1998_v19 = vrot.slane %v9563_v26, 7  ;;  %v6127_v13 = vpack.c.bf16 %v9524_v3, %v9497_v17  ;;  %v9580_v38 = vsel %vm13208_vm4, %v1999_v35, %v2000_v10  ;;  %v653_v12 = vadd.f32 %v9379_v47, %v652_v43  ;;  %v6610_v31 = vpop.f32.mrb[6].mxu0  ;;  %v13212_v3 = vld [vmem:[#allocation8_spill] sm:$0xff] }
 0x10d   : > { %13207 = vst [vmem:[#allocation121_spill] sm:$0xff] %v9563_v26  ;;  %vm13210_vm11 = vnez %v13209_v28  ;;  %vm13217_vm4 = vcmp.ne.s32.totalorder %v9450_v56, 0  ;;  %vm13218_vm7 = vcmp.lt.s32.totalorder %v9450_v56, 0  ;;  %v13219_v43 = vmov 0 }
 0x10e   : > { %v13213_v17 = vsel %vm13210_vm11, %v13211_v44, %v13212_v3  ;;  %vm9601_vm9 = vmand %vm13218_vm7, %vm13217_vm4  ;;  %v9605_v28 = vmax.f32 %v661_v62, 0.0  ;;  %v664_v44 = vadd.f32 %v6610_v31, %v9379_v47  ;;  %vm13222_vm11 = vcmp.lt.s32.totalorder %v8161_v2, 1  ;;  %6923 = vmatprep.mubr.msk.bf16.mxu1 %vm13224_vm10, %v6127_v13  ;;  %v655_v3 = vpop.f32.mrb[7].mxu0  ;;  %v13229_v62 = vld [vmem:[#allocation20_spill] sm:$0xff] }
 0x10f   : > { %vm9590_vm8 = vcmp.lt.s32.totalorder %v13213_v17, 16  ;;  %v13220_v43 = vsel %vm9601_vm9, 4294967295, %v13219_v43  ;;  %v9610_v17 = vsel %vm13222_vm11, %v1998_v19, %v1999_v35  ;;  %vm13225_vm7 = vmmov %vm13222_vm11  ;;  %vm13228_vm4 = vnez %v13227_v1  ;;  %v13242_v1 = vld [vmem:[#allocation23_spill] sm:$0xff] }
 0x110   : > { %v13215_v36 = vsel %vm9590_vm8, 4294967295, %v13214_v36  ;;  %13221 = vst [vmem:[#allocation17_spill] sm:$0xff] %v13220_v43  ;;  %13223 = vst [vmem:[#allocation8_spill] sm:$0xff] %v9610_v17  ;;  %v9619_v58 = vsel %vm13225_vm7, %v1997_v0, %v1998_v19  ;;  %v13231_v31 = vsel %vm13228_vm4, %v13229_v62, %v13230_v29  ;;  %v831_v35 = vmax.f32 %v653_v12, 0.0  ;;  %v13240_v29 = vld [vmem:[#allocation34_spill] sm:$0xff] }
 0x111   : > { %13216 = vst [vmem:[#allocation19_spill] sm:$0xff] %v13215_v36  ;;  %13226 = vst [vmem:[#allocation122_spill] sm:$0xff] %v9619_v58  ;;  %vm9626_vm6 = vcmp.lt.s32.totalorder %v13231_v31, 16  ;;  %v2144_v54 = vpack.c.bf16 %v9580_v38, %v9610_v17  ;;  %v13235_v13 = vrot.slane %v9563_v26, 1  ;;  %v13236_v33 = vrot.slane %v9551_v27, 1  ;;  %v13243_v12 = vld [vmem:[#allocation18_spill] sm:$0xff] }
 0x112   : > { %v13233_v11 = vsel %vm9626_vm6, 4294967295, %v13232_v11  ;;  %vm13237_vm10 = vcmp.lt.s32.totalorder %v8161_v2, 7  ;;  %vm13239_vm11 = vmpackc.low %vm9325_vm12, %vm9286_vm14  ;;  %vm13241_vm7 = vnez %v13240_v29  ;;  %v13245_v31 = vmov 0 }
 0x113   : > { %13234 = vst [vmem:[#allocation32_spill] sm:$0xff] %v13233_v11  ;;  %v9638_v19 = vsel %vm13237_vm10, %v13236_v33, %v13235_v13  ;;  %6924 = vmatmul.mubr.msk.bf16.vlgmr.msra.gmra.mrb[0].mxu1 %vm13239_vm11, %v6130_v6  ;;  %v13244_v62 = vsel %vm13241_vm7, %v13242_v1, %v13243_v12  ;;  %v9655_v27 = vmax.f32 %v664_v44, 0.0  ;;  %v656_v33 = vadd.f32 %v9379_v47, %v655_v3  ;;  %v7799_v13 = vld [vmem:[%s12320_s5 + $0x1c0] sm:$0xff]  }
 0x114   : > { %13238 = vst [vmem:[#allocation20_spill] sm:$0xff] %v9638_v19  ;;  %vm9650_vm4 = vcmp.lt.s32.totalorder %v13244_v62, 16  ;;  %6972 = vmatpush3.bf16.msra.mxu1 %v7799_v13  ;;  %v9666_v29 = vadd.s32 24, %v9461_v4  ;;  %v9671_v44 = vsel %vm9471_vm5, %v9605_v28, 0.0  ;;  %v9675_v3 = vsel %vm9480_vm13, %v831_v35, 0.0  ;;  %v13249_v12 = vld [vmem:[#allocation35_spill] sm:$0xff] }
 0x115   : > { %v13246_v31 = vsel %vm9650_vm4, 4294967295, %v13245_v31  ;;  %v9677_v1 = vpack.c.bf16 %v831_v35, %v830_v8  ;;  %vm13250_vm10 = vnez %v13249_v12  ;;  %v13251_v62 = vld [vmem:[#allocation25_spill] sm:$0xff]  ;;  %v13254_v6 = vmov 0  ;;  %6973 = vmatprep.subr.bf16.mxu1 %v7744_v49 }
 0x116   : > { %13247 = vst [vmem:[#allocation14_spill] sm:$0xff] %v13246_v31  ;;  %v13252_v13 = vld [vmem:[#allocation21_spill] sm:$0xff]  ;;  %v2001_v26 = vrot.slane %v9675_v3, 7  ;;  %v9696_v8 = vsel %vm9505_vm3, %v9655_v27, 0.0  ;;  %vm13257_vm1 = vcmp.lt.s32.totalorder %v8161_v2, 1  ;;  %vm13259_vm7 = vcmp.ne.s32.totalorder %v9461_v4, 0 }
 0x117   : > { %13248 = vst [vmem:[#allocation34_spill] sm:$0xff] %v9677_v1  ;;  %v13253_v45 = vsel %vm13250_vm10, %v13251_v62, %v13252_v13  ;;  %v7745_v19 = vld [vmem:[%s12320_s5 + $0x1d0] sm:$0xff]   ;;  %v832_v62 = vmax.f32 %v656_v33, 0.0  ;;  %v9705_v13 = vsel %vm13257_vm1, %v13191_v41, %v1997_v0  ;;  %v6613_v1 = vpop.f32.mrb[8].mxu0  ;;  %vm13260_vm14 = vcmp.lt.s32.totalorder %v9461_v4, 0  ;;  %v13292_v4 = vld [vmem:[#allocation26_spill] sm:$0xff] }
 0x118   : > { %vm9684_vm11 = vcmp.lt.s32.totalorder %v13253_v45, 16  ;;  %v6136_v45 = vpack.c.bf16 %v9655_v27, %v9605_v28  ;;  %13258 = vst [vmem:[#allocation18_spill] sm:$0xff] %v9705_v13  ;;  %vm9711_vm2 = vmand %vm13260_vm14, %vm13259_vm7  ;;  %v9716_v56 = vadd.s32 24, %v9554_v51  ;;  %v2003_v12 = vrot.slane %v9671_v44, 7  ;;  %v668_v48 = vpop.f32.mrb[9].mxu0  ;;  %6974 = vmatpush3.bf16.msra.mxu1 %v7744_v49  ;;  %v13269_v49 = vld [vmem:[#allocation22_spill] sm:$0xff] }
 0x119   : > { %v13255_v6 = vsel %vm9684_vm11, 4294967295, %v13254_v6  ;;  %v13262_v23 = vsel %vm9711_vm2, 4294967295, %v13261_v23  ;;  %v2143_v33 = vpack.c.bf16 %v9619_v58, %v9705_v13  ;;  %v677_v0 = vadd.f32 %v6613_v1, %v9379_v47  ;;  %vm13264_vm14 = vmmov %vm13257_vm1  ;;  %v6614_v16 = vpop.f32.mrb[10].mxu0  ;;  %6975 = vmatprep.subr.bf16.mxu1 %v7745_v19  ;;  %v13305_v58 = vld [vmem:[#allocation29_spill] sm:$0xff]  ;;  %v13444_v31 = vld [vmem:[#allocation64_spill] sm:$0xff] }
 0x11a   : > { %13256 = vst [vmem:[#allocation23_spill] sm:$0xff] %v13255_v6  ;;  %13263 = vst [vmem:[#allocation35_spill] sm:$0xff] %v9716_v56  ;;  %v2095_v43 = vsel %vm13264_vm14, %v2000_v10, %v2001_v26  ;;  %v9730_v15 = vsel %vm9531_vm0, %v832_v62, 0.0  ;;  %v9733_v42 = vpack.c.bf16 %v9605_v28, %v832_v62  ;;  %v6133_v59 = vpack.c.bf16 %v832_v62, %v831_v35  ;;  %v13268_v10 = vld [vmem:[#allocation27_spill] sm:$0xff] }
 0x11b   : > { %v669_v1 = vadd.f32 %v9379_v47, %v668_v48  ;;  %vm13267_vm1 = vnez %v13266_v18  ;;  %v7751_v48 = vld [vmem:[%s12320_s5 + $0x8] sm:$0xff]   ;;  %v2002_v28 = vrot.slane %v9730_v15, 7  ;;  %6667 = vmatprep.mubr.bf16.mxu0 %v2143_v33  ;;  %v9753_v35 = vmax.f32 %v677_v0, 0.0  ;;  %v671_v18 = vpop.f32.mrb[11].mxu0  ;;  %v13291_v33 = vld [vmem:[#allocation33_spill] sm:$0xff] }
 0x11c   : > { %13265 = vst [vmem:[#allocation25_spill] sm:$0xff] %v9733_v42  ;;  %v13270_v53 = vsel %vm13267_vm1, %v13268_v10, %v13269_v49  ;;  %v680_v62 = vadd.f32 %v6614_v16, %v9379_v47  ;;  %v13274_v42 = vld [vmem:[#allocation37_spill] sm:$0xff]  ;;  %v13276_v10 = vld [vmem:[#allocation28_spill] sm:$0xff]  ;;  %vm13282_vm10 = vcmp.ne.s32.totalorder %v9554_v51, 0  ;;  %vm13283_vm12 = vcmp.lt.s32.totalorder %v9554_v51, 0  ;;  %6668 = vmatmul.mubr.bf16.vlgmr.msra.gmra.mrb[48].mxu0 %v2144_v54  ;;  %6976 = vmatpush3.bf16.msra.mxu1 %v7745_v19 }
 0x11d   : > { %vm9745_vm14 = vcmp.lt.s32.totalorder %v13270_v53, 16  ;;  %vm13275_vm7 = vnez %v13274_v42  ;;  %v13277_v53 = vld [vmem:[#allocation24_spill] sm:$0xff]  ;;  %vm9776_vm9 = vmand %vm13283_vm12, %vm13282_vm10  ;;  %v835_v42 = vmax.f32 %v669_v1, 0.0  ;;  %v672_v0 = vadd.f32 %v9379_v47, %v671_v18  ;;  %6977 = vmatprep.subr.bf16.mxu1 %v7746_v39  ;;  %v7752_v19 = vld [vmem:[%s12320_s5 + $0x10] sm:$0xff]  }
 0x11e   : > { %v13272_v61 = vsel %vm9745_vm14, 4294967295, %v13271_v61  ;;  %v13278_v49 = vsel %vm13275_vm7, %v13276_v10, %v13277_v53  ;;  %vm13286_vm7 = vmpackc.low %vm9531_vm0, %vm9480_vm13  ;;  %v13287_v10 = vrot.slane %v9696_v8, 7  ;;  %vm13288_vm2 = vcmp.lt.s32.totalorder %v8161_v2, 1 }
 0x11f   : > { %13273 = vst [vmem:[#allocation21_spill] sm:$0xff] %v13272_v61  ;;  %vm9761_vm1 = vcmp.lt.s32.totalorder %v13278_v49, 16  ;;  %6927 = vmatprep.mubr.msk.bf16.mxu1 %vm13286_vm7, %v6133_v59  ;;  %v13289_v49 = vld [vmem:[#allocation38_spill] sm:$0xff]  ;;  %v13294_v1 = vmov 0  ;;  %v9806_v18 = vsel %vm9590_vm8, %v9753_v35, 0.0  ;;  %v9808_v34 = vmax.f32 %v680_v62, 0.0 }
 0x120   : > { %v13280_v30 = vsel %vm9761_vm1, 4294967295, %v13279_v30  ;;  %v9790_v53 = vsel %vm13288_vm2, %v2003_v12, %v13287_v10  ;;  %vm13290_vm12 = vnez %v13289_v49  ;;  %vm13297_vm2 = vmpackc.low %vm9505_vm3, %vm9471_vm5  ;;  %vm13298_vm7 = vcmp.lt.s32.totalorder %v8161_v2, 1  ;;  %v13300_v10 = vld [vmem:[#allocation52_spill] sm:$0xff]  ;;  %v13302_v59 = vld [vmem:[#allocation39_spill] sm:$0xff]  ;;  %6978 = vmatpush3.bf16.msra.mxu1 %v7746_v39 }
 0x121   : > { %13281 = vst [vmem:[#allocation36_spill] sm:$0xff] %v13280_v30  ;;  %v13293_v54 = vsel %vm13290_vm12, %v13291_v33, %v13292_v4  ;;  %6928 = vmatmul.mubr.msk.bf16.gmra.mrb[4].mxu1 %vm13297_vm2, %v6136_v45  ;;  %v2094_v4 = vsel %vm13298_vm7, %v2001_v26, %v2002_v28  ;;  %vm13299_vm12 = vmmov %vm13298_vm7  ;;  %6716 = vmatpush3.bf16.msra.mxu0 %v13300_v10  ;;  %v9823_v62 = vsel %vm9626_vm6, %v835_v42, 0.0  ;;  %vm13303_vm3 = vnez %v13302_v59  ;;  %v13304_v45 = vld [vmem:[#allocation40_spill] sm:$0xff] }
 0x122   : > { %vm9797_vm10 = vcmp.lt.s32.totalorder %v13293_v54, 16  ;;  %v2093_v33 = vsel %vm13299_vm12, %v2002_v28, %v2003_v12  ;;  %v9826_v54 = vpack.c.bf16 %v835_v42, %v9655_v27  ;;  %v13306_v17 = vsel %vm13303_vm3, %v13304_v45, %v13305_v58  ;;  %6717 = vmatprep.subr.bf16.mxu0 %v7751_v48  ;;  %v6617_v12 = vpop.f32.mrb[12].mxu0  ;;  %vm13329_vm5 = vmpackc.low %vm9684_vm11, %vm9626_vm6 }
 0x123   : > { %v13295_v1 = vsel %vm9797_vm10, 4294967295, %v13294_v1  ;;  %vm9833_vm2 = vcmp.lt.s32.totalorder %v13306_v17, 16  ;;  %v13307_v26 = vmov 0  ;;  %v2005_v27 = vrot.slane %v9823_v62, 7  ;;  %v7747_v17 = vld [vmem:[%s12320_s5 + $0x1e0] sm:$0xff]   ;;  %v684_v20 = vpop.f32.mrb[13].mxu0 }
 0x124   : > { %13296 = vst [vmem:[#allocation27_spill] sm:$0xff] %v13295_v1  ;;  %13301 = vst [vmem:[#allocation22_spill] sm:$0xff] %v9826_v54  ;;  %v13308_v26 = vsel %vm9833_vm2, 4294967295, %v13307_v26  ;;  %v9846_v59 = vsel %vm9650_vm4, %v9808_v34, 0.0  ;;  %v6142_v58 = vpack.c.bf16 %v9808_v34, %v9753_v35  ;;  %v2007_v10 = vrot.slane %v9806_v18, 7  ;;  %v6618_v56 = vpop.f32.mrb[14].mxu0  ;;  %6979 = vmatprep.subr.bf16.mxu1 %v7747_v17 }
 0x125   : > { %13309 = vst [vmem:[#allocation37_spill] sm:$0xff] %v13308_v26  ;;  %v836_v49 = vmax.f32 %v672_v0, 0.0  ;;  %v2145_v28 = vpack.c.bf16 %v2094_v4, %v2095_v43  ;;  %v2146_v54 = vpack.c.bf16 %v9790_v53, %v2093_v33  ;;  %v693_v7 = vadd.f32 %v6617_v12, %v9379_v47  ;;  %6718 = vmatpush3.bf16.msra.mxu0 %v7751_v48 }
 0x126   : > { %v13310_v14 = vrot.slane %v9696_v8, 7  ;;  %v9871_v0 = vpack.c.bf16 %v2095_v43, %v9580_v38  ;;  %v685_v51 = vadd.f32 %v9379_v47, %v684_v20  ;;  %v13315_v38 = vld [vmem:[#allocation41_spill] sm:$0xff]  ;;  %v13316_v43 = vld [vmem:[#allocation30_spill] sm:$0xff]  ;;  %v13326_v39 = vmov 0  ;;  %6719 = vmatprep.subr.bf16.mxu0 %v7752_v19  ;;  %6980 = vmatpush3.bf16.msra.mxu1 %v7747_v17 }
 0x127   : > { %v9875_v45 = vsel %vm9684_vm11, %v836_v49, 0.0  ;;  %v9878_v12 = vpack.c.bf16 %v9753_v35, %v836_v49  ;;  %v6139_v40 = vpack.c.bf16 %v836_v49, %v835_v42  ;;  %6671 = vmatprep.mubr.bf16.mxu0 %v2145_v28  ;;  %v7753_v20 = vld [vmem:[%s12320_s5 + $0x18] sm:$0xff]   ;;  %v9899_v49 = vmax.f32 %v693_v7, 0.0  ;;  %v7748_v35 = vld [vmem:[%s12320_s5 + $0x1e8] sm:$0xff]  }
 0x128   : > { %v9868_v22 = vsel %vm13298_vm7, %v13310_v14, %v2005_v27  ;;  %13311 = vst [vmem:[#allocation28_spill] sm:$0xff] %v9871_v0  ;;  %v13313_v14 = vld [vmem:[#allocation42_spill] sm:$0xff]  ;;  %v13318_v0 = vmov 0  ;;  %v2006_v42 = vrot.slane %v9875_v45, 7  ;;  %v696_v28 = vadd.f32 %v6618_v56, %v9379_v47  ;;  %6672 = vmatmul.mubr.bf16.gmra.mrb[52].mxu0 %v2146_v54  ;;  %6981 = vmatprep.subr.bf16.mxu1 %v7748_v35 }
 0x129   : > { %13312 = vst [vmem:[#allocation24_spill] sm:$0xff] %v9878_v12  ;;  %vm13314_vm7 = vnez %v13313_v14  ;;  %v687_v14 = vpop.f32.mrb[15].mxu0  ;;  %v13321_v12 = vld [vmem:[#allocation44_spill] sm:$0xff]  ;;  %v839_v7 = vmax.f32 %v685_v51, 0.0  ;;  %6931 = vmatprep.mubr.msk.bf16.mxu1 %vm13329_vm5, %v6139_v40  ;;  %v13332_v54 = vsel %vm8816_vm15, %v8746_v46, %v8691_v21  ;;  %v13333_v51 = vmov 0  ;;  %vm13337_vm5 = vmpackc.low %vm9650_vm4, %vm9590_vm8  ;;  %6720 = vmatpush3.bf16.msra.mxu0 %v7752_v19 }
 0x12a   : > { %v13317_v48 = vsel %vm13314_vm7, %v13315_v38, %v13316_v43  ;;  %vm13322_vm7 = vnez %v13321_v12  ;;  %v13323_v38 = vld [vmem:[#allocation43_spill] sm:$0xff]  ;;  %v688_v56 = vadd.f32 %v9379_v47, %v687_v14  ;;  %v13330_v12 = vrot.slane %v9846_v59, 7  ;;  %6932 = vmatmul.mubr.msk.bf16.gmra.mrb[8].mxu1 %vm13337_vm5, %v6142_v58  ;;  %6721 = vmatprep.subr.bf16.mxu0 %v7753_v20  ;;  %vm13360_vm8 = vmpackc.low %vm9833_vm2, %vm9761_vm1 }
 0x12b   : > { %vm9890_vm3 = vcmp.lt.s32.totalorder %v13317_v48, 16  ;;  %v13324_v43 = vld [vmem:[#allocation31_spill] sm:$0xff]  ;;  %vm9931_vm0 = vcmp.lt.s32.totalorder %v13332_v54, 16  ;;  %v9940_v40 = vsel %vm9745_vm14, %v9899_v49, 0.0  ;;  %v9942_v14 = vmax.f32 %v696_v28, 0.0  ;;  %v6621_v54 = vpop.f32.mrb[16].mxu0  ;;  %6982 = vmatpush3.bf16.msra.mxu1 %v7748_v35 }
 0x12c   : > { %v13319_v0 = vsel %vm9890_vm3, 4294967295, %v13318_v0  ;;  %v13325_v48 = vsel %vm13322_vm7, %v13323_v38, %v13324_v43  ;;  %vm13331_vm7 = vcmp.lt.s32.totalorder %v8161_v2, 1  ;;  %v13334_v51 = vsel %vm9931_vm0, 4294967295, %v13333_v51 }
 0x12d   : > { %13320 = vst [vmem:[#allocation38_spill] sm:$0xff] %v13319_v0  ;;  %vm9907_vm12 = vcmp.lt.s32.totalorder %v13325_v48, 16  ;;  %v9924_v38 = vsel %vm13331_vm7, %v2007_v10, %v13330_v12  ;;  %13335 = vst [vmem:[#allocation26_spill] sm:$0xff] %v13334_v51  ;;  %v9935_v43 = vpack.c.bf16 %v2093_v33, %v2094_v4  ;;  %v2089_v46 = vsel %vm13331_vm7, %v2006_v42, %v2007_v10  ;;  %v700_v4 = vpop.f32.mrb[17].mxu0 }
 0x12e   : > { %v13327_v39 = vsel %vm9907_vm12, 4294967295, %v13326_v39  ;;  %vm13338_vm15 = vmmov %vm13331_vm7  ;;  %v9957_v33 = vsel %vm9761_vm1, %v839_v7, 0.0  ;;  %v9960_v28 = vpack.c.bf16 %v839_v7, %v9808_v34  ;;  %vm13340_vm5 = vnez %v12988_v57  ;;  %6722 = vmatpush3.bf16.msra.mxu0 %v7753_v20  ;;  %v6622_v13 = vpop.f32.mrb[18].mxu0 }
 0x12f   : > { %13328 = vst [vmem:[#allocation33_spill] sm:$0xff] %v13327_v39  ;;  %13336 = vst [vmem:[#allocation52_spill] sm:$0xff] %v9935_v43  ;;  %v2090_v21 = vsel %vm13338_vm15, %v2005_v27, %v2006_v42  ;;  %v13341_v27 = vsel %vm13340_vm5, %v8762_v55, %v8720_v5  ;;  %v13342_v58 = vmov 0  ;;  %v2009_v10 = vrot.slane %v9957_v33, 7  ;;  %v7750_v5 = vld [vmem:[%s12320_s5 + $0x1f0] sm:$0xff]   ;;  %v7755_v55 = vld [vmem:[%s12320_s5 + $0x20] sm:$0xff]  }
 0x130   : > { %13339 = vst [vmem:[#allocation39_spill] sm:$0xff] %v9960_v28  ;;  %vm9967_vm15 = vcmp.lt.s32.totalorder %v13341_v27, 16  ;;  %v9977_v34 = vsel %vm9797_vm10, %v9942_v14, 0.0  ;;  %v6148_v57 = vpack.c.bf16 %v9942_v14, %v9899_v49  ;;  %v2011_v17 = vrot.slane %v9940_v40, 7  ;;  %vm13346_vm5 = vmmov %vm13331_vm7  ;;  %6983 = vmatprep.subr.bf16.mxu1 %v7750_v5  ;;  %6723 = vmatprep.subr.bf16.mxu0 %v7755_v55 }
 0x131   : > { %v13343_v58 = vsel %vm9967_vm15, 4294967295, %v13342_v58  ;;  %v840_v48 = vmax.f32 %v688_v56, 0.0  ;;  %v2147_v12 = vpack.c.bf16 %v2090_v21, %v9868_v22  ;;  %v2148_v27 = vpack.c.bf16 %v9924_v38, %v2089_v46  ;;  %6984 = vmatpush3.bf16.msra.mxu1 %v7750_v5  ;;  %v10119_v5 = vld [vmem:[%s12320_s5 + $0x80] sm:$0xff]  }
 0x132   : > { %13344 = vst [vmem:[#allocation40_spill] sm:$0xff] %v13343_v58  ;;  %v709_v19 = vadd.f32 %v6621_v54, %v9379_v47  ;;  %v13345_v9 = vrot.slane %v9846_v59, 7  ;;  %v10004_v56 = vpack.c.bf16 %v9868_v22, %v9790_v53  ;;  %v701_v41 = vadd.f32 %v9379_v47, %v700_v4  ;;  %v13350_v22 = vld [vmem:[#allocation45_spill] sm:$0xff]  ;;  %6724 = vmatpush3.bf16.msra.mxu0 %v7755_v55 }
 0x133   : > { %v10008_v54 = vsel %vm9833_vm2, %v840_v48, 0.0  ;;  %v10011_v42 = vpack.c.bf16 %v9899_v49, %v840_v48  ;;  %v6145_v28 = vpack.c.bf16 %v840_v48, %v839_v7  ;;  %6675 = vmatprep.mubr.bf16.mxu0 %v2147_v12  ;;  %vm13349_vm7 = vnez %v12992_v63  ;;  %v7756_v49 = vld [vmem:[%s12320_s5 + $0x28] sm:$0xff]   ;;  %v703_v48 = vpop.f32.mrb[19].mxu0  ;;  %v7754_v12 = vld [vmem:[%s12320_s5 + $0x1f8] sm:$0xff]  }
 0x134   : > { %v10000_v43 = vsel %vm13346_vm5, %v13345_v9, %v2009_v10  ;;  %13347 = vst [vmem:[#allocation29_spill] sm:$0xff] %v10004_v56  ;;  %v13351_v53 = vsel %vm13349_vm7, %v8788_v24, %v13350_v22  ;;  %v13352_v20 = vmov 0  ;;  %v2010_v9 = vrot.slane %v10008_v54, 7  ;;  %6676 = vmatmul.mubr.bf16.gmra.mrb[56].mxu0 %v2148_v27  ;;  %6725 = vmatprep.subr.bf16.mxu0 %v7756_v49 }
 0x135   : > { %13348 = vst [vmem:[#allocation42_spill] sm:$0xff] %v10011_v42  ;;  %vm10023_vm4 = vcmp.lt.s32.totalorder %v13351_v53, 16  ;;  %v10032_v4 = vmax.f32 %v709_v19, 0.0  ;;  %v712_v63 = vadd.f32 %v6622_v13, %v9379_v47  ;;  %vm13355_vm7 = vnez %v12997_v50  ;;  %6935 = vmatprep.mubr.msk.bf16.mxu1 %vm13360_vm8, %v6145_v28  ;;  %v13364_v13 = vld [vmem:[#allocation46_spill] sm:$0xff]  ;;  %vm13371_vm8 = vmpackc.low %vm9797_vm10, %vm9745_vm14  ;;  %6985 = vmatprep.subr.bf16.mxu1 %v7754_v12 }
 0x136   : > { %v13353_v20 = vsel %vm10023_vm4, 4294967295, %v13352_v20  ;;  %v13356_v24 = vsel %vm13355_vm7, %v8796_v37, %v8765_v32  ;;  %v13357_v35 = vmov 0  ;;  %v843_v19 = vmax.f32 %v701_v41, 0.0  ;;  %6936 = vmatmul.mubr.msk.bf16.gmra.mrb[12].mxu1 %vm13371_vm8, %v6148_v57  ;;  %v13377_v57 = vld [vmem:[#allocation54_spill] sm:$0xff]  ;;  %6726 = vmatpush3.bf16.msra.mxu0 %v7756_v49  ;;  %v13389_v49 = vld [vmem:[#allocation55_spill] sm:$0xff]  ;;  %vm13405_vm14 = vmpackc.low %vm9967_vm15, %vm9907_vm12 }
 0x137   : > { %13354 = vst [vmem:[#allocation41_spill] sm:$0xff] %v13353_v20  ;;  %vm10040_vm5 = vcmp.lt.s32.totalorder %v13356_v24, 16  ;;  %v704_v32 = vadd.f32 %v9379_v47, %v703_v48  ;;  %v13361_v37 = vrot.slane %v9977_v34, 7  ;;  %vm13362_vm7 = vcmp.lt.s32.totalorder %v8161_v2, 1  ;;  %v13375_v24 = vld [vmem:[#allocation53_spill] sm:$0xff]  ;;  %6986 = vmatpush3.bf16.msra.mxu1 %v7754_v12 }
 0x138   : > { %v13358_v35 = vsel %vm10040_vm5, 4294967295, %v13357_v35  ;;  %vm13363_vm11 = vnez %v13002_v52  ;;  %v13366_v41 = vmov 0  ;;  %v10068_v22 = vpack.c.bf16 %v2089_v46, %v2090_v21  ;;  %v6625_v21 = vpop.f32.mrb[20].mxu0  ;;  %7035 = vmatprep.subr.bf16.mxu1 %v10119_v5 }
 0x139   : > { %13359 = vst [vmem:[#allocation30_spill] sm:$0xff] %v13358_v35  ;;  %v10057_v50 = vsel %vm13362_vm7, %v2011_v17, %v13361_v37  ;;  %v13365_v27 = vsel %vm13363_vm11, %v8804_v25, %v13364_v13  ;;  %v10073_v28 = vsel %vm9890_vm3, %v10032_v4, 0.0  ;;  %v10075_v53 = vmax.f32 %v712_v63, 0.0  ;;  %vm13372_vm11 = vmmov %vm13362_vm7  ;;  %v13378_v37 = vld [vmem:[#allocation47_spill] sm:$0xff]  ;;  %v716_v7 = vpop.f32.mrb[21].mxu0 }
 0x13a   : > { %vm10064_vm6 = vcmp.lt.s32.totalorder %v13365_v27, 16  ;;  %13369 = vst [vmem:[#allocation43_spill] sm:$0xff] %v10068_v22  ;;  %13370 = vst [vmem:[#allocation31_spill] sm:$0xff] %v10073_v28  ;;  %v2086_v25 = vsel %vm13372_vm11, %v2009_v10, %v2010_v9  ;;  %v2085_v52 = vsel %vm13362_vm7, %v2010_v9, %v2011_v17  ;;  %v10090_v63 = vsel %vm9907_vm12, %v843_v19, 0.0  ;;  %v7757_v27 = vld [vmem:[%s12320_s5 + $0x30] sm:$0xff]   ;;  %v6626_v61 = vpop.f32.mrb[22].mxu0 }
 0x13b   : > { %v13367_v41 = vsel %vm10064_vm6, 4294967295, %v13366_v41  ;;  %13373 = vst [vmem:[#allocation45_spill] sm:$0xff] %v10090_v63  ;;  %v10093_v48 = vpack.c.bf16 %v843_v19, %v9942_v14  ;;  %vm13376_vm8 = vnez %v13375_v24  ;;  %v13380_v13 = vmov 0  ;;  %13384 = vst [vmem:[#allocation47_spill] sm:$0xff] %v10119_v5  ;;  %6727 = vmatprep.subr.bf16.mxu0 %v7757_v27  ;;  %v13490_v5 = vld [vmem:[#allocation81_spill] sm:$0xff] }
 0x13c   : > { %13368 = vst [vmem:[#allocation44_spill] sm:$0xff] %v13367_v41  ;;  %v13379_v10 = vsel %vm13376_vm8, %v13377_v57, %v13378_v37  ;;  %v2013_v17 = vrot.slane %v10090_v63, 7  ;;  %v10109_v14 = vsel %vm9931_vm0, %v10075_v53, 0.0  ;;  %v6154_v9 = vpack.c.bf16 %v10075_v53, %v10032_v4  ;;  %vm13386_vm8 = vmmov %vm13362_vm7  ;;  %6728 = vmatpush3.bf16.msra.mxu0 %v7757_v27 }
 0x13d   : > { %13374 = vst [vmem:[#allocation46_spill] sm:$0xff] %v10093_v48  ;;  %vm10100_vm11 = vcmp.lt.s32.totalorder %v13379_v10, 16  ;;  %13383 = vst [vmem:[#allocation54_spill] sm:$0xff] %v10109_v14  ;;  %v2015_v24 = vrot.slane %v10073_v28, 7  ;;  %v2016_v57 = vrot.slane %v10109_v14, 7  ;;  %v844_v37 = vmax.f32 %v704_v32, 0.0 }
 0x13e   : > { %v13381_v13 = vsel %vm10100_vm11, 4294967295, %v13380_v13  ;;  %v2149_v10 = vpack.c.bf16 %v2086_v25, %v10000_v43  ;;  %v2150_v55 = vpack.c.bf16 %v10057_v50, %v2085_v52  ;;  %v725_v46 = vadd.f32 %v6625_v21, %v9379_v47  ;;  %v13491_v28 = vld [vmem:[#allocation71_spill] sm:$0xff] }
 0x13f   : > { %13382 = vst [vmem:[#allocation53_spill] sm:$0xff] %v13381_v13  ;;  %v13385_v22 = vrot.slane %v9977_v34, 7  ;;  %v10136_v32 = vpack.c.bf16 %v10000_v43, %v9924_v38  ;;  %v10140_v48 = vsel %vm9967_vm15, %v844_v37, 0.0  ;;  %v10143_v21 = vpack.c.bf16 %v10032_v4, %v844_v37  ;;  %v13391_v38 = vld [vmem:[#allocation56_spill] sm:$0xff] }
 0x140   : > { %v6151_v42 = vpack.c.bf16 %v844_v37, %v843_v19  ;;  %6679 = vmatprep.mubr.bf16.mxu0 %v2149_v10  ;;  %v717_v1 = vadd.f32 %v9379_v47, %v716_v7  ;;  %vm13390_vm7 = vnez %v13389_v49  ;;  %v13392_v43 = vld [vmem:[#allocation48_spill] sm:$0xff]  ;;  %v7759_v7 = vld [vmem:[%s12320_s5 + $0x38] sm:$0xff]   ;;  %v2014_v19 = vrot.slane %v10140_v48, 7  ;;  %v719_v49 = vpop.f32.mrb[23].mxu0 }
 0x141   : > { %v2083_v56 = vsel %vm13386_vm8, %v13385_v22, %v2013_v17  ;;  %13387 = vst [vmem:[#allocation123_spill] sm:$0xff] %v10136_v32  ;;  %13388 = vst [vmem:[#allocation124_spill] sm:$0xff] %v10143_v21  ;;  %v13393_v22 = vsel %vm13390_vm7, %v13391_v38, %v13392_v43  ;;  %v13394_v32 = vmov 0  ;;  %v10164_v37 = vmax.f32 %v725_v46, 0.0  ;;  %v13397_v21 = vld [vmem:[#allocation57_spill] sm:$0xff]  ;;  %v13399_v38 = vld [vmem:[#allocation58_spill] sm:$0xff]  ;;  %6680 = vmatmul.mubr.bf16.gmra.mrb[60].mxu0 %v2150_v55  ;;  %6729 = vmatprep.subr.bf16.mxu0 %v7759_v7 }
 0x142   : > { %vm10155_vm10 = vcmp.lt.s32.totalorder %v13393_v22, 16  ;;  %v728_v10 = vadd.f32 %v6626_v61, %v9379_v47  ;;  %vm13398_vm7 = vnez %v13397_v21  ;;  %v13400_v43 = vld [vmem:[#allocation49_spill] sm:$0xff]  ;;  %v13402_v12 = vmov 0  ;;  %6939 = vmatprep.mubr.msk.bf16.mxu1 %vm13405_vm14, %v6151_v42  ;;  %vm13417_vm14 = vmpackc.low %vm9931_vm0, %vm9890_vm3  ;;  %6730 = vmatpush3.bf16.msra.mxu0 %v7759_v7 }
 0x143   : > { %v13395_v32 = vsel %vm10155_vm10, 4294967295, %v13394_v32  ;;  %v13401_v22 = vsel %vm13398_vm7, %v13399_v38, %v13400_v43  ;;  %v847_v4 = vmax.f32 %v717_v1, 0.0  ;;  %v720_v61 = vadd.f32 %v9379_v47, %v719_v49  ;;  %v13407_v21 = vld [vmem:[#allocation61_spill] sm:$0xff]  ;;  %v13409_v38 = vld [vmem:[#allocation59_spill] sm:$0xff]  ;;  %v13410_v43 = vld [vmem:[#allocation50_spill] sm:$0xff]  ;;  %6940 = vmatmul.mubr.msk.bf16.gmra.mrb[16].mxu1 %vm13417_vm14, %v6154_v9 }
 0x144   : > { %13396 = vst [vmem:[#allocation55_spill] sm:$0xff] %v13395_v32  ;;  %vm10172_vm8 = vcmp.lt.s32.totalorder %v13401_v22, 16  ;;  %vm13406_vm2 = vcmp.lt.s32.totalorder %v8161_v2, 1  ;;  %vm13408_vm7 = vnez %v13407_v21  ;;  %v13412_v55 = vmov 0  ;;  %v13423_v9 = vld [vmem:[#allocation60_spill] sm:$0xff] }
 0x145   : > { %v13403_v12 = vsel %vm10172_vm8, 4294967295, %v13402_v12  ;;  %v10185_v46 = vsel %vm13406_vm2, %v2015_v24, %v2016_v57  ;;  %v13411_v22 = vsel %vm13408_vm7, %v13409_v38, %v13410_v43  ;;  %v10196_v1 = vpack.c.bf16 %v2085_v52, %v2086_v25  ;;  %vm13418_vm7 = vmmov %vm13406_vm2 }
 0x146   : > { %13404 = vst [vmem:[#allocation56_spill] sm:$0xff] %v13403_v12  ;;  %vm10192_vm1 = vcmp.lt.s32.totalorder %v13411_v22, 16  ;;  %v10201_v42 = vsel %vm10023_vm4, %v10164_v37, 0.0  ;;  %v850_v49 = vmax.f32 %v728_v10, 0.0  ;;  %v2082_v21 = vsel %vm13406_vm2, %v2013_v17, %v2014_v19  ;;  %v13421_v22 = vld [vmem:[#allocation62_spill] sm:$0xff] }
 0x147   : > { %v13413_v55 = vsel %vm10192_vm1, 4294967295, %v13412_v55  ;;  %13415 = vst [vmem:[#allocation57_spill] sm:$0xff] %v10196_v1  ;;  %13416 = vst [vmem:[#allocation58_spill] sm:$0xff] %v10201_v42  ;;  %v2081_v38 = vsel %vm13418_vm7, %v2014_v19, %v2015_v24  ;;  %v10216_v10 = vsel %vm10040_vm5, %v847_v4, 0.0  ;;  %v10219_v43 = vpack.c.bf16 %v847_v4, %v10075_v53  ;;  %v13424_v1 = vld [vmem:[#allocation51_spill] sm:$0xff] }
 0x148   : > { %13414 = vst [vmem:[#allocation48_spill] sm:$0xff] %v13413_v55  ;;  %13419 = vst [vmem:[#allocation49_spill] sm:$0xff] %v10216_v10  ;;  %vm13422_vm14 = vnez %v13421_v22  ;;  %v13426_v51 = vmov 0  ;;  %v2017_v24 = vrot.slane %v10216_v10, 7  ;;  %v10234_v19 = vsel %vm10064_vm6, %v850_v49, 0.0  ;;  %v13536_v10 = vld [vmem:[#allocation87_spill] sm:$0xff] }
 0x149   : > { %13420 = vst [vmem:[#allocation61_spill] sm:$0xff] %v10219_v43  ;;  %v13425_v17 = vsel %vm13422_vm14, %v13423_v9, %v13424_v1  ;;  %13429 = vst [vmem:[#allocation50_spill] sm:$0xff] %v10234_v19  ;;  %v6160_v53 = vpack.c.bf16 %v850_v49, %v10164_v37  ;;  %v2019_v22 = vrot.slane %v10201_v42, 7  ;;  %v2020_v25 = vrot.slane %v10234_v19, 7  ;;  %v13535_v19 = vld [vmem:[#allocation98_spill] sm:$0xff] }
 0x14a   : > { %vm10226_vm2 = vcmp.lt.s32.totalorder %v13425_v17, 16  ;;  %v848_v1 = vmax.f32 %v720_v61, 0.0  ;;  %v2151_v9 = vpack.c.bf16 %v2082_v21, %v2083_v56  ;;  %v6629_v17 = vpop.f32.mrb[24].mxu0  ;;  %v2152_v52 = vpack.c.bf16 %v10185_v46, %v2081_v38  ;;  %vm13430_vm14 = vmmov %vm13418_vm7 }
 0x14b   : > { %v13427_v51 = vsel %vm10226_vm2, 4294967295, %v13426_v51  ;;  %v741_v43 = vadd.f32 %v6629_v17, %v9379_v47  ;;  %v732_v27 = vpop.f32.mrb[25].mxu0  ;;  %v2079_v0 = vsel %vm13430_vm14, %v2016_v57, %v2017_v24  ;;  %v10248_v58 = vpack.c.bf16 %v2083_v56, %v10057_v50  ;;  %v13435_v56 = vld [vmem:[#allocation66_spill] sm:$0xff]  ;;  %v13436_v50 = vld [vmem:[#allocation63_spill] sm:$0xff] }
 0x14c   : > { %13428 = vst [vmem:[#allocation59_spill] sm:$0xff] %v13427_v51  ;;  %v10252_v61 = vsel %vm10100_vm11, %v848_v1, 0.0  ;;  %v10255_v39 = vpack.c.bf16 %v10164_v37, %v848_v1  ;;  %v6157_v17 = vpack.c.bf16 %v848_v1, %v847_v4  ;;  %6683 = vmatprep.mubr.bf16.mxu0 %v2151_v9  ;;  %v733_v26 = vadd.f32 %v9379_v47, %v732_v27  ;;  %v6630_v30 = vpop.f32.mrb[26].mxu0 }
 0x14d   : > { %13431 = vst [vmem:[#allocation62_spill] sm:$0xff] %v10248_v58  ;;  %13432 = vst [vmem:[#allocation60_spill] sm:$0xff] %v10252_v61  ;;  %vm13434_vm7 = vnez %v13045_v60  ;;  %v13438_v7 = vmov 0  ;;  %v2018_v37 = vrot.slane %v10252_v61, 7  ;;  %v853_v27 = vmax.f32 %v741_v43, 0.0  ;;  %v735_v9 = vpop.f32.mrb[27].mxu0  ;;  %6684 = vmatmul.mubr.bf16.gmra.mrb[64].mxu0 %v2152_v52 }
 0x14e   : > { %13433 = vst [vmem:[#allocation51_spill] sm:$0xff] %v10255_v39  ;;  %v13437_v57 = vsel %vm13434_vm7, %v13435_v56, %v13436_v50  ;;  %v744_v1 = vadd.f32 %v6630_v30, %v9379_v47  ;;  %v13441_v58 = vld [vmem:[#allocation74_spill] sm:$0xff]  ;;  %v13443_v39 = vld [vmem:[#allocation67_spill] sm:$0xff]  ;;  %v13446_v36 = vmov 0  ;;  %v851_v56 = vmax.f32 %v733_v26, 0.0  ;;  %vm13449_vm7 = vmpackc.low %vm10100_vm11, %vm10040_vm5 }
 0x14f   : > { %vm10267_vm0 = vcmp.lt.s32.totalorder %v13437_v57, 16  ;;  %vm13442_vm3 = vnez %v13441_v58  ;;  %6943 = vmatprep.mubr.msk.bf16.mxu1 %vm13449_vm7, %v6157_v17  ;;  %v736_v30 = vadd.f32 %v9379_v47, %v735_v9  ;;  %vm13450_vm15 = vcmp.lt.s32.totalorder %v8161_v2, 1  ;;  %v13451_v43 = vld [vmem:[#allocation76_spill] sm:$0xff]  ;;  %v10307_v17 = vld [vmem:[%s12320_s5 + $0x180] sm:$0xff]  }
 0x150   : > { %v13439_v7 = vsel %vm10267_vm0, 4294967295, %v13438_v7  ;;  %v13445_v60 = vsel %vm13442_vm3, %v13443_v39, %v13444_v31  ;;  %v10291_v58 = vsel %vm13450_vm15, %v2019_v22, %v2020_v25  ;;  %vm13452_vm3 = vnez %v13451_v43  ;;  %v13453_v31 = vld [vmem:[#allocation69_spill] sm:$0xff]  ;;  %13460 = vst [vmem:[#allocation64_spill] sm:$0xff] %v10307_v17  ;;  %vm13462_vm15 = vmpackc.low %vm10064_vm6, %vm10023_vm4  ;;  %6779 = vmatprep.subr.bf16.mxu0 %v10307_v17 }
 0x151   : > { %13440 = vst [vmem:[#allocation66_spill] sm:$0xff] %v13439_v7  ;;  %vm10279_vm14 = vcmp.lt.s32.totalorder %v13445_v60, 16  ;;  %v13454_v39 = vld [vmem:[#allocation65_spill] sm:$0xff]  ;;  %v13456_v52 = vmov 0  ;;  %v10302_v26 = vpack.c.bf16 %v2081_v38, %v2082_v21  ;;  %v10311_v57 = vsel %vm10155_vm10, %v853_v27, 0.0  ;;  %6944 = vmatmul.mubr.msk.bf16.gmra.mrb[20].mxu1 %vm13462_vm15, %v6160_v53  ;;  %v13470_v53 = vld [vmem:[#allocation68_spill] sm:$0xff] }
 0x152   : > { %v13447_v36 = vsel %vm10279_vm14, 4294967295, %v13446_v36  ;;  %v13455_v50 = vsel %vm13452_vm3, %v13453_v31, %v13454_v39  ;;  %13461 = vst [vmem:[#allocation76_spill] sm:$0xff] %v10311_v57  ;;  %v854_v9 = vmax.f32 %v744_v1, 0.0  ;;  %vm13463_vm7 = vcmp.lt.s32.totalorder %v8161_v2, 1  ;;  %v13467_v39 = vld [vmem:[#allocation77_spill] sm:$0xff] }
 0x153   : > { %13448 = vst [vmem:[#allocation63_spill] sm:$0xff] %v13447_v36  ;;  %vm10298_vm12 = vcmp.lt.s32.totalorder %v13455_v50, 16  ;;  %13459 = vst [vmem:[#allocation67_spill] sm:$0xff] %v10302_v26  ;;  %v2078_v21 = vsel %vm13463_vm7, %v2017_v24, %v2018_v37  ;;  %v10326_v31 = vsel %vm10172_vm8, %v851_v56, 0.0  ;;  %v10328_v1 = vpack.c.bf16 %v851_v56, %v850_v49  ;;  %v13469_v50 = vld [vmem:[#allocation73_spill] sm:$0xff] }
 0x154   : > { %v13457_v52 = vsel %vm10298_vm12, 4294967295, %v13456_v52  ;;  %vm13464_vm3 = vmmov %vm13463_vm7  ;;  %13465 = vst [vmem:[#allocation69_spill] sm:$0xff] %v10326_v31  ;;  %vm13468_vm11 = vnez %v13467_v39  ;;  %v13472_v24 = vmov 0  ;;  %v10344_v60 = vsel %vm10192_vm1, %v854_v9, 0.0 }
 0x155   : > { %13458 = vst [vmem:[#allocation74_spill] sm:$0xff] %v13457_v52  ;;  %v2077_v38 = vsel %vm13464_vm3, %v2018_v37, %v2019_v22  ;;  %13466 = vst [vmem:[#allocation65_spill] sm:$0xff] %v10328_v1  ;;  %v13471_v4 = vsel %vm13468_vm11, %v13469_v50, %v13470_v53  ;;  %v2021_v37 = vrot.slane %v10326_v31, 7  ;;  %v6166_v49 = vpack.c.bf16 %v854_v9, %v853_v27  ;;  %v6633_v53 = vpop.f32.mrb[28].mxu0  ;;  %v13578_v31 = vld [vmem:[#allocation92_spill] sm:$0xff] }
 0x156   : > { %vm10335_vm15 = vcmp.lt.s32.totalorder %v13471_v4, 16  ;;  %13475 = vst [vmem:[#allocation73_spill] sm:$0xff] %v10344_v60  ;;  %v2023_v39 = vrot.slane %v10311_v57, 7  ;;  %v2024_v43 = vrot.slane %v10344_v60, 7  ;;  %v852_v50 = vmax.f32 %v736_v30, 0.0  ;;  %v748_v41 = vpop.f32.mrb[29].mxu0  ;;  %vm13476_vm7 = vmmov %vm13464_vm3 }
 0x157   : > { %v13473_v24 = vsel %vm10335_vm15, 4294967295, %v13472_v24  ;;  %v2153_v4 = vpack.c.bf16 %v2078_v21, %v2079_v0  ;;  %v2154_v26 = vpack.c.bf16 %v10291_v58, %v2077_v38  ;;  %v757_v1 = vadd.f32 %v6633_v53, %v9379_v47  ;;  %v6634_v17 = vpop.f32.mrb[30].mxu0  ;;  %v13577_v60 = vld [vmem:[#allocation109_spill] sm:$0xff] }
 0x158   : > { %13474 = vst [vmem:[#allocation77_spill] sm:$0xff] %v13473_v24  ;;  %v2075_v22 = vsel %vm13476_vm7, %v2020_v25, %v2021_v37  ;;  %v10357_v20 = vpack.c.bf16 %v2079_v0, %v10185_v46  ;;  %v10361_v30 = vsel %vm10226_vm2, %v852_v50, 0.0  ;;  %v10363_v13 = vpack.c.bf16 %v853_v27, %v852_v50  ;;  %v13480_v25 = vld [vmem:[#allocation78_spill] sm:$0xff]  ;;  %v13482_v0 = vld [vmem:[#allocation79_spill] sm:$0xff] }
 0x159   : > { %13478 = vst [vmem:[#allocation125_spill] sm:$0xff] %v10361_v30  ;;  %v6163_v35 = vpack.c.bf16 %v852_v50, %v851_v56  ;;  %6687 = vmatprep.mubr.bf16.mxu0 %v2153_v4  ;;  %v749_v53 = vadd.f32 %v9379_v47, %v748_v41  ;;  %vm13481_vm7 = vnez %v13480_v25  ;;  %v13483_v46 = vld [vmem:[#allocation70_spill] sm:$0xff]  ;;  %v13485_v6 = vmov 0  ;;  %v751_v4 = vpop.f32.mrb[31].mxu0 }
 0x15a   : > { %13477 = vst [vmem:[#allocation68_spill] sm:$0xff] %v10357_v20  ;;  %13479 = vst [vmem:[#allocation126_spill] sm:$0xff] %v10363_v13  ;;  %v13484_v20 = vsel %vm13481_vm7, %v13482_v0, %v13483_v46  ;;  %v2022_v56 = vrot.slane %v10361_v30, 7  ;;  %v857_v41 = vmax.f32 %v757_v1, 0.0  ;;  %v760_v50 = vadd.f32 %v6634_v17, %v9379_v47  ;;  %v13488_v13 = vld [vmem:[#allocation80_spill] sm:$0xff]  ;;  %6688 = vmatmul.mubr.bf16.gmra.mrb[68].mxu0 %v2154_v26  ;;  %v13498_v1 = vld [vmem:[#allocation83_spill] sm:$0xff] }
 0x15b   : > { %vm10375_vm11 = vcmp.lt.s32.totalorder %v13484_v20, 16  ;;  %vm13489_vm6 = vnez %v13488_v13  ;;  %v13493_v14 = vmov 0  ;;  %v855_v20 = vmax.f32 %v749_v53, 0.0  ;;  %vm13496_vm7 = vmpackc.low %vm10226_vm2, %vm10172_vm8 }
 0x15c   : > { %v13486_v6 = vsel %vm10375_vm11, 4294967295, %v13485_v6  ;;  %v13492_v25 = vsel %vm13489_vm6, %v13490_v5, %v13491_v28  ;;  %6947 = vmatprep.mubr.msk.bf16.mxu1 %vm13496_vm7, %v6163_v35  ;;  %v752_v17 = vadd.f32 %v9379_v47, %v751_v4  ;;  %vm13497_vm4 = vcmp.lt.s32.totalorder %v8161_v2, 1  ;;  %v13500_v28 = vld [vmem:[#allocation82_spill] sm:$0xff]  ;;  %v13501_v5 = vld [vmem:[#allocation72_spill] sm:$0xff] }
 0x15d   : > { %13487 = vst [vmem:[#allocation78_spill] sm:$0xff] %v13486_v6  ;;  %vm10387_vm3 = vcmp.lt.s32.totalorder %v13492_v25, 16  ;;  %v10399_v13 = vsel %vm13497_vm4, %v2023_v39, %v2024_v43  ;;  %vm13499_vm6 = vnez %v13498_v1  ;;  %v13503_v26 = vmov 0  ;;  %vm13508_vm4 = vmpackc.low %vm10192_vm1, %vm10155_vm10 }
 0x15e   : > { %v13494_v14 = vsel %vm10387_vm3, 4294967295, %v13493_v14  ;;  %v13502_v0 = vsel %vm13499_vm6, %v13500_v28, %v13501_v5  ;;  %v10410_v53 = vpack.c.bf16 %v2077_v38, %v2078_v21  ;;  %v10414_v35 = vsel %vm10267_vm0, %v857_v41, 0.0  ;;  %6948 = vmatmul.mubr.msk.bf16.gmra.mrb[24].mxu1 %vm13508_vm4, %v6166_v49  ;;  %v13513_v28 = vld [vmem:[#allocation86_spill] sm:$0xff]  ;;  %v13515_v5 = vld [vmem:[#allocation84_spill] sm:$0xff]  ;;  %v13516_v49 = vld [vmem:[#allocation75_spill] sm:$0xff] }
 0x15f   : > { %13495 = vst [vmem:[#allocation79_spill] sm:$0xff] %v13494_v14  ;;  %vm10406_vm5 = vcmp.lt.s32.totalorder %v13502_v0, 16  ;;  %13507 = vst [vmem:[#allocation81_spill] sm:$0xff] %v10414_v35  ;;  %v858_v46 = vmax.f32 %v760_v50, 0.0  ;;  %vm13509_vm7 = vcmp.lt.s32.totalorder %v8161_v2, 1  ;;  %v10429_v1 = vsel %vm10279_vm14, %v855_v20, 0.0 }
 0x160   : > { %v13504_v26 = vsel %vm10406_vm5, 4294967295, %v13503_v26  ;;  %13506 = vst [vmem:[#allocation80_spill] sm:$0xff] %v10410_v53  ;;  %v2074_v4 = vsel %vm13509_vm7, %v2021_v37, %v2022_v56  ;;  %vm13510_vm6 = vmmov %vm13509_vm7  ;;  %v10431_v50 = vpack.c.bf16 %v855_v20, %v854_v9  ;;  %vm13514_vm2 = vnez %v13513_v28 }
 0x161   : > { %13505 = vst [vmem:[#allocation70_spill] sm:$0xff] %v13504_v26  ;;  %v2073_v25 = vsel %vm13510_vm6, %v2022_v56, %v2023_v39  ;;  %13511 = vst [vmem:[#allocation71_spill] sm:$0xff] %v10429_v1  ;;  %v13517_v0 = vsel %vm13514_vm2, %v13515_v5, %v13516_v49  ;;  %v13518_v37 = vmov 0  ;;  %v2025_v56 = vrot.slane %v10429_v1, 7  ;;  %v6637_v5 = vpop.f32.mrb[32].mxu0  ;;  %v13619_v1 = vld [vmem:[#allocation115_spill] sm:$0xff] }
 0x162   : > { %13512 = vst [vmem:[#allocation83_spill] sm:$0xff] %v10431_v50  ;;  %vm10438_vm4 = vcmp.lt.s32.totalorder %v13517_v0, 16  ;;  %v10446_v21 = vsel %vm10298_vm12, %v858_v46, 0.0  ;;  %v6172_v38 = vpack.c.bf16 %v858_v46, %v857_v41  ;;  %v2027_v9 = vrot.slane %v10414_v35, 7  ;;  %v764_v50 = vpop.f32.mrb[33].mxu0  ;;  %vm13522_vm7 = vmmov %vm13510_vm6 }
 0x163   : > { %v13519_v37 = vsel %vm10438_vm4, 4294967295, %v13518_v37  ;;  %13521 = vst [vmem:[#allocation72_spill] sm:$0xff] %v10446_v21  ;;  %v2028_v28 = vrot.slane %v10446_v21, 7  ;;  %v856_v27 = vmax.f32 %v752_v17, 0.0  ;;  %v2155_v53 = vpack.c.bf16 %v2074_v4, %v2075_v22  ;;  %v6638_v12 = vpop.f32.mrb[34].mxu0  ;;  %v13618_v21 = vld [vmem:[#allocation13_spill] sm:$0xff] }
 0x164   : > { %13520 = vst [vmem:[#allocation82_spill] sm:$0xff] %v13519_v37  ;;  %v2156_v49 = vpack.c.bf16 %v10399_v13, %v2073_v25  ;;  %v773_v0 = vadd.f32 %v6637_v5, %v9379_v47  ;;  %v2071_v39 = vsel %vm13522_vm7, %v2024_v43, %v2025_v56  ;;  %v10459_v55 = vpack.c.bf16 %v2075_v22, %v10291_v58  ;;  %v13525_v43 = vld [vmem:[#allocation95_spill] sm:$0xff]  ;;  %v13527_v58 = vld [vmem:[#allocation89_spill] sm:$0xff] }
 0x165   : > { %v10463_v17 = vsel %vm10335_vm15, %v856_v27, 0.0  ;;  %v10465_v32 = vpack.c.bf16 %v857_v41, %v856_v27  ;;  %v6169_v51 = vpack.c.bf16 %v856_v27, %v855_v20  ;;  %6691 = vmatprep.mubr.bf16.mxu0 %v2155_v53  ;;  %v765_v5 = vadd.f32 %v9379_v47, %v764_v50  ;;  %v13528_v22 = vld [vmem:[#allocation85_spill] sm:$0xff]  ;;  %v767_v50 = vpop.f32.mrb[35].mxu0 }
 0x166   : > { %13523 = vst [vmem:[#allocation86_spill] sm:$0xff] %v10459_v55  ;;  %vm13526_vm7 = vnez %v13525_v43  ;;  %v13530_v42 = vmov 0  ;;  %v2026_v41 = vrot.slane %v10463_v17, 7  ;;  %v861_v20 = vmax.f32 %v773_v0, 0.0  ;;  %6692 = vmatmul.mubr.bf16.gmra.mrb[72].mxu0 %v2156_v49  ;;  %v13543_v0 = vld [vmem:[#allocation102_spill] sm:$0xff] }
 0x167   : > { %13524 = vst [vmem:[#allocation84_spill] sm:$0xff] %v10465_v32  ;;  %v13529_v55 = vsel %vm13526_vm7, %v13527_v58, %v13528_v22  ;;  %v776_v53 = vadd.f32 %v6638_v12, %v9379_v47  ;;  %v13533_v32 = vld [vmem:[#allocation97_spill] sm:$0xff]  ;;  %v13538_v63 = vmov 0  ;;  %vm13541_vm7 = vmpackc.low %vm10335_vm15, %vm10279_vm14  ;;  %v768_v12 = vadd.f32 %v9379_v47, %v767_v50 }
 0x168   : > { %vm10477_vm2 = vcmp.lt.s32.totalorder %v13529_v55, 16  ;;  %vm13534_vm1 = vnez %v13533_v32  ;;  %v859_v55 = vmax.f32 %v765_v5, 0.0  ;;  %6951 = vmatprep.mubr.msk.bf16.mxu1 %vm13541_vm7, %v6169_v51  ;;  %vm13542_vm10 = vcmp.lt.s32.totalorder %v8161_v2, 1 }
 0x169   : > { %v13531_v42 = vsel %vm10477_vm2, 4294967295, %v13530_v42  ;;  %v13537_v43 = vsel %vm13534_vm1, %v13535_v19, %v13536_v10  ;;  %v10501_v32 = vsel %vm13542_vm10, %v2027_v9, %v2028_v28  ;;  %vm13544_vm1 = vnez %v13543_v0  ;;  %v13545_v10 = vld [vmem:[#allocation99_spill] sm:$0xff]  ;;  %v13546_v19 = vld [vmem:[#allocation88_spill] sm:$0xff]  ;;  %vm13552_vm10 = vmpackc.low %vm10298_vm12, %vm10267_vm0 }
 0x16a   : > { %13532 = vst [vmem:[#allocation75_spill] sm:$0xff] %v13531_v42  ;;  %vm10489_vm6 = vcmp.lt.s32.totalorder %v13537_v43, 16  ;;  %v13547_v58 = vsel %vm13544_vm1, %v13545_v10, %v13546_v19  ;;  %v13548_v49 = vmov 0  ;;  %v10512_v5 = vpack.c.bf16 %v2073_v25, %v2074_v4  ;;  %6952 = vmatmul.mubr.msk.bf16.gmra.mrb[28].mxu1 %vm13552_vm10, %v6172_v38  ;;  %v13556_v10 = vld [vmem:[#allocation106_spill] sm:$0xff]  ;;  %v13558_v19 = vld [vmem:[#allocation103_spill] sm:$0xff] }
 0x16b   : > { %v13539_v63 = vsel %vm10489_vm6, 4294967295, %v13538_v63  ;;  %vm10508_vm8 = vcmp.lt.s32.totalorder %v13547_v58, 16  ;;  %v10516_v51 = vsel %vm10375_vm11, %v861_v20, 0.0  ;;  %v862_v22 = vmax.f32 %v776_v53, 0.0  ;;  %v13559_v38 = vld [vmem:[#allocation90_spill] sm:$0xff] }
 0x16c   : > { %13540 = vst [vmem:[#allocation95_spill] sm:$0xff] %v13539_v63  ;;  %v13549_v49 = vsel %vm10508_vm8, 4294967295, %v13548_v49  ;;  %13551 = vst [vmem:[#allocation85_spill] sm:$0xff] %v10512_v5  ;;  %vm13553_vm7 = vcmp.lt.s32.totalorder %v8161_v2, 1  ;;  %v10531_v0 = vsel %vm10387_vm3, %v859_v55, 0.0  ;;  %v10533_v53 = vpack.c.bf16 %v859_v55, %v858_v46  ;;  %v13842_v63 = vld [vmem:[#allocation18_spill] sm:$0xff] }
 0x16d   : > { %13550 = vst [vmem:[#allocation89_spill] sm:$0xff] %v13549_v49  ;;  %v2070_v50 = vsel %vm13553_vm7, %v2025_v56, %v2026_v41  ;;  %vm13554_vm1 = vmmov %vm13553_vm7  ;;  %vm13557_vm15 = vnez %v13556_v10  ;;  %v13561_v56 = vmov 0  ;;  %v10548_v4 = vsel %vm10406_vm5, %v862_v22, 0.0 }
 0x16e   : > { %v2069_v43 = vsel %vm13554_vm1, %v2026_v41, %v2027_v9  ;;  %13555 = vst [vmem:[#allocation97_spill] sm:$0xff] %v10533_v53  ;;  %v13560_v58 = vsel %vm13557_vm15, %v13558_v19, %v13559_v38  ;;  %v2029_v41 = vrot.slane %v10531_v0, 7  ;;  %v6178_v25 = vpack.c.bf16 %v862_v22, %v861_v20  ;;  %v6641_v19 = vpop.f32.mrb[36].mxu0  ;;  %vm13564_vm7 = vmmov %vm13554_vm1 }
 0x16f   : > { %vm10540_vm10 = vcmp.lt.s32.totalorder %v13560_v58, 16  ;;  %v2031_v46 = vrot.slane %v10516_v51, 7  ;;  %v2032_v10 = vrot.slane %v10548_v4, 7  ;;  %v860_v27 = vmax.f32 %v768_v12, 0.0  ;;  %v780_v53 = vpop.f32.mrb[37].mxu0 }
 0x170   : > { %v13562_v56 = vsel %vm10540_vm10, 4294967295, %v13561_v56  ;;  %v2157_v5 = vpack.c.bf16 %v2070_v50, %v2071_v39  ;;  %v2158_v38 = vpack.c.bf16 %v10501_v32, %v2069_v43  ;;  %v789_v58 = vadd.f32 %v6641_v19, %v9379_v47  ;;  %v6642_v36 = vpop.f32.mrb[38].mxu0 }
 0x171   : > { %13563 = vst [vmem:[#allocation98_spill] sm:$0xff] %v13562_v56  ;;  %v2067_v9 = vsel %vm13564_vm7, %v2028_v28, %v2029_v41  ;;  %v10561_v52 = vpack.c.bf16 %v2071_v39, %v10399_v13  ;;  %v10565_v12 = vsel %vm10438_vm4, %v860_v27, 0.0  ;;  %v10567_v7 = vpack.c.bf16 %v861_v20, %v860_v27  ;;  %v13567_v28 = vld [vmem:[#allocation108_spill] sm:$0xff]  ;;  %v13569_v13 = vld [vmem:[#allocation107_spill] sm:$0xff] }
 0x172   : > { %v6175_v24 = vpack.c.bf16 %v860_v27, %v859_v55  ;;  %6695 = vmatprep.mubr.bf16.mxu0 %v2157_v5  ;;  %v781_v19 = vadd.f32 %v9379_v47, %v780_v53  ;;  %vm13568_vm7 = vnez %v13567_v28  ;;  %v13570_v39 = vld [vmem:[#allocation91_spill] sm:$0xff]  ;;  %v13572_v57 = vmov 0  ;;  %v783_v53 = vpop.f32.mrb[39].mxu0 }
 0x173   : > { %13565 = vst [vmem:[#allocation87_spill] sm:$0xff] %v10561_v52  ;;  %13566 = vst [vmem:[#allocation102_spill] sm:$0xff] %v10567_v7  ;;  %v13571_v52 = vsel %vm13568_vm7, %v13569_v13, %v13570_v39  ;;  %v2030_v20 = vrot.slane %v10565_v12, 7  ;;  %v865_v55 = vmax.f32 %v789_v58, 0.0  ;;  %v792_v5 = vadd.f32 %v6642_v36, %v9379_v47  ;;  %v13575_v7 = vld [vmem:[#allocation110_spill] sm:$0xff]  ;;  %6696 = vmatmul.mubr.bf16.gmra.mrb[76].mxu0 %v2158_v38  ;;  %v13585_v58 = vld [vmem:[#allocation112_spill] sm:$0xff] }
 0x174   : > { %vm10579_vm15 = vcmp.lt.s32.totalorder %v13571_v52, 16  ;;  %vm13576_vm12 = vnez %v13575_v7  ;;  %v13580_v61 = vmov 0  ;;  %v863_v52 = vmax.f32 %v781_v19, 0.0  ;;  %vm13583_vm7 = vmpackc.low %vm10438_vm4, %vm10387_vm3 }
 0x175   : > { %v13573_v57 = vsel %vm10579_vm15, 4294967295, %v13572_v57  ;;  %v13579_v28 = vsel %vm13576_vm12, %v13577_v60, %v13578_v31  ;;  %6955 = vmatprep.mubr.msk.bf16.mxu1 %vm13583_vm7, %v6175_v24  ;;  %v784_v36 = vadd.f32 %v9379_v47, %v783_v53  ;;  %vm13584_vm0 = vcmp.lt.s32.totalorder %v8161_v2, 1  ;;  %v13587_v60 = vld [vmem:[#allocation111_spill] sm:$0xff]  ;;  %v13588_v31 = vld [vmem:[#allocation93_spill] sm:$0xff] }
 0x176   : > { %13574 = vst [vmem:[#allocation99_spill] sm:$0xff] %v13573_v57  ;;  %vm10591_vm1 = vcmp.lt.s32.totalorder %v13579_v28, 16  ;;  %v10603_v7 = vsel %vm13584_vm0, %v2031_v46, %v2032_v10  ;;  %vm13586_vm12 = vnez %v13585_v58  ;;  %v13590_v38 = vmov 0  ;;  %vm13594_vm0 = vmpackc.low %vm10406_vm5, %vm10375_vm11  ;;  %v13598_v58 = vld [vmem:[#allocation114_spill] sm:$0xff] }
 0x177   : > { %v13581_v61 = vsel %vm10591_vm1, 4294967295, %v13580_v61  ;;  %v13589_v13 = vsel %vm13586_vm12, %v13587_v60, %v13588_v31  ;;  %v10614_v19 = vpack.c.bf16 %v2069_v43, %v2070_v50  ;;  %v10618_v24 = vsel %vm10477_vm2, %v865_v55, 0.0  ;;  %6956 = vmatmul.mubr.msk.bf16.gmra.mrb[32].mxu1 %vm13594_vm0, %v6178_v25  ;;  %v13600_v60 = vld [vmem:[#allocation113_spill] sm:$0xff]  ;;  %v13601_v25 = vld [vmem:[#allocation96_spill] sm:$0xff] }
 0x178   : > { %13582 = vst [vmem:[#allocation88_spill] sm:$0xff] %v13581_v61  ;;  %vm10610_vm14 = vcmp.lt.s32.totalorder %v13589_v13, 16  ;;  %v866_v47 = vmax.f32 %v792_v5, 0.0  ;;  %vm13595_vm7 = vcmp.lt.s32.totalorder %v8161_v2, 1  ;;  %v10633_v28 = vsel %vm10489_vm6, %v863_v52, 0.0 }
 0x179   : > { %v13591_v38 = vsel %vm10610_vm14, 4294967295, %v13590_v38  ;;  %13593 = vst [vmem:[#allocation103_spill] sm:$0xff] %v10614_v19  ;;  %v2066_v39 = vsel %vm13595_vm7, %v2029_v41, %v2030_v20  ;;  %vm13596_vm12 = vmmov %vm13595_vm7  ;;  %v10635_v5 = vpack.c.bf16 %v863_v52, %v862_v22  ;;  %vm13599_vm4 = vnez %v13598_v58 }
 0x17a   : > { %13592 = vst [vmem:[#allocation106_spill] sm:$0xff] %v13591_v38  ;;  %v2065_v53 = vsel %vm13596_vm12, %v2030_v20, %v2031_v46  ;;  %v13602_v31 = vsel %vm13599_vm4, %v13600_v60, %v13601_v25  ;;  %v13603_v41 = vmov 0  ;;  %v2033_v20 = vrot.slane %v10633_v28, 7  ;;  %v6645_v60 = vpop.f32.mrb[40].mxu0  ;;  %v13798_v38 = vld [vmem:[#allocation81_spill] sm:$0xff] }
 0x17b   : > { %13597 = vst [vmem:[#allocation90_spill] sm:$0xff] %v10635_v5  ;;  %vm10642_vm0 = vcmp.lt.s32.totalorder %v13602_v31, 16  ;;  %v10650_v13 = vsel %vm10508_vm8, %v866_v47, 0.0  ;;  %v6184_v50 = vpack.c.bf16 %v866_v47, %v865_v55  ;;  %v2035_v22 = vrot.slane %v10618_v24, 7  ;;  %v10658_v31 = vld [vmem:[%s12319_s4] ss:$0 sm:$0xff] }
 0x17c   : > { %v13604_v41 = vsel %vm10642_vm0, 4294967295, %v13603_v41  ;;  %v2036_v58 = vrot.slane %v10650_v13, 7  ;;  %v864_v43 = vmax.f32 %v784_v36, 0.0  ;;  %v2159_v27 = vpack.c.bf16 %v2066_v39, %v2067_v9  ;;  %v796_v19 = vpop.f32.mrb[41].mxu0 }
 0x17d   : > { %13605 = vst [vmem:[#allocation108_spill] sm:$0xff] %v13604_v41  ;;  %v2160_v25 = vpack.c.bf16 %v10603_v7, %v2065_v53  ;;  %v805_v46 = vadd.f32 %v10658_v31, %v6645_v60  ;;  %v2063_v36 = vsel %vm13595_vm7, %v2032_v10, %v2033_v20  ;;  %v10668_v5 = vpack.c.bf16 %v2067_v9, %v10501_v32  ;;  %v6646_v14 = vpop.f32.mrb[42].mxu0  ;;  %v13608_v10 = vld [vmem:[#allocation9_spill] sm:$0xff]  ;;  %v13610_v32 = vld [vmem:[#allocation116_spill] sm:$0xff] }
 0x17e   : > { %v10672_v26 = vsel %vm10540_vm10, %v864_v43, 0.0  ;;  %v10674_v6 = vpack.c.bf16 %v865_v55, %v864_v43  ;;  %v6181_v37 = vpack.c.bf16 %v864_v43, %v863_v52  ;;  %6699 = vmatprep.mubr.bf16.mxu0 %v2159_v27  ;;  %v797_v60 = vadd.f32 %v10658_v31, %v796_v19  ;;  %v13611_v9 = vld [vmem:[#allocation104_spill] sm:$0xff]  ;;  %v799_v43 = vpop.f32.mrb[43].mxu0 }
 0x17f   : > { %13606 = vst [vmem:[#allocation107_spill] sm:$0xff] %v10668_v5  ;;  %vm13609_vm7 = vnez %v13608_v10  ;;  %v13613_v35 = vmov 0  ;;  %v2034_v27 = vrot.slane %v10672_v26, 7  ;;  %v869_v52 = vmax.f32 %v805_v46, 0.0  ;;  %6700 = vmatmul.mubr.bf16.gmra.mrb[80].mxu0 %v2160_v25  ;;  %v13828_v41 = vld [vmem:[#allocation36_spill] sm:$0xff] }
 0x180   : > { %13607 = vst [vmem:[#allocation91_spill] sm:$0xff] %v10674_v6  ;;  %v13612_v5 = vsel %vm13609_vm7, %v13610_v32, %v13611_v9  ;;  %v808_v19 = vadd.f32 %v10658_v31, %v6646_v14  ;;  %v13616_v6 = vld [vmem:[#allocation17_spill] sm:$0xff]  ;;  %v13621_v30 = vmov 0  ;;  %vm13624_vm7 = vmpackc.low %vm10540_vm10, %vm10489_vm6  ;;  %v800_v14 = vadd.f32 %v10658_v31, %v799_v43 }
 0x181   : > { %vm10686_vm4 = vcmp.lt.s32.totalorder %v13612_v5, 16  ;;  %vm13617_vm5 = vnez %v13616_v6  ;;  %v867_v5 = vmax.f32 %v797_v60, 0.0  ;;  %6959 = vmatprep.mubr.msk.bf16.mxu1 %vm13624_vm7, %v6181_v37  ;;  %vm13625_vm11 = vcmp.lt.s32.totalorder %v8161_v2, 1 }
 0x182   : > { %v13614_v35 = vsel %vm10686_vm4, 4294967295, %v13613_v35  ;;  %v13620_v10 = vsel %vm13617_vm5, %v13618_v21, %v13619_v1  ;;  %v10710_v6 = vsel %vm13625_vm11, %v2035_v22, %v2036_v58  ;;  %vm13626_vm5 = vnez %v13262_v23  ;;  %v13627_v21 = vld [vmem:[#allocation117_spill] sm:$0xff]  ;;  %vm13633_vm11 = vmpackc.low %vm10508_vm8, %vm10477_vm2 }
 0x183   : > { %13615 = vst [vmem:[#allocation110_spill] sm:$0xff] %v13614_v35  ;;  %vm10698_vm12 = vcmp.lt.s32.totalorder %v13620_v10, 16  ;;  %v13628_v1 = vsel %vm13626_vm5, %v9666_v29, %v13627_v21  ;;  %v13629_v46 = vmov 0  ;;  %v10721_v25 = vpack.c.bf16 %v2065_v53, %v2066_v39  ;;  %6960 = vmatmul.mubr.msk.bf16.gmra.mrb[36].mxu1 %vm13633_vm11, %v6184_v50  ;;  %v13638_v50 = vld [vmem:[#allocation120_spill] sm:$0xff] }
 0x184   : > { %v13622_v30 = vsel %vm10698_vm12, 4294967295, %v13621_v30  ;;  %vm10717_vm3 = vcmp.lt.s32.totalorder %v13628_v1, 16  ;;  %v10725_v37 = vsel %vm10579_vm15, %v869_v52, 0.0  ;;  %v870_v60 = vmax.f32 %v808_v19, 0.0  ;;  %v13637_v19 = vld [vmem:[#allocation35_spill] sm:$0xff]  ;;  %v13664_v35 = vld [vmem:[#allocation12_spill] sm:$0xff] }
 0x185   : > { %13623 = vst [vmem:[#allocation109_spill] sm:$0xff] %v13622_v30  ;;  %v13630_v46 = vsel %vm10717_vm3, 4294967295, %v13629_v46  ;;  %13632 = vst [vmem:[#allocation112_spill] sm:$0xff] %v10721_v25  ;;  %vm13634_vm7 = vcmp.lt.s32.totalorder %v8161_v2, 1  ;;  %v10740_v32 = vsel %vm10591_vm1, %v867_v5, 0.0  ;;  %v10742_v9 = vpack.c.bf16 %v867_v5, %v866_v47 }
 0x186   : > { %13631 = vst [vmem:[#allocation92_spill] sm:$0xff] %v13630_v46  ;;  %v2062_v23 = vsel %vm13634_vm7, %v2033_v20, %v2034_v27  ;;  %vm13635_vm5 = vmmov %vm13634_vm7  ;;  %v13639_v43 = vsel %vm9776_vm9, %v13637_v19, %v13638_v50  ;;  %v13640_v20 = vmov 0  ;;  %v10757_v10 = vsel %vm10610_vm14, %v870_v60, 0.0  ;;  %v6649_v19 = vpop.f32.mrb[44].mxu0 }
 0x187   : > { %v2061_v29 = vsel %vm13635_vm5, %v2034_v27, %v2035_v22  ;;  %13636 = vst [vmem:[#allocation111_spill] sm:$0xff] %v10742_v9  ;;  %vm10749_vm11 = vcmp.lt.s32.totalorder %v13639_v43, 16  ;;  %v2037_v27 = vrot.slane %v10740_v32, 7  ;;  %v6190_v21 = vpack.c.bf16 %v870_v60, %v869_v52  ;;  %v812_v53 = vpop.f32.mrb[45].mxu0  ;;  %vm6186_vm9 = vmpackc.low %vm10642_vm0, %vm10591_vm1 }
 0x188   : > { %v13641_v20 = vsel %vm10749_vm11, 4294967295, %v13640_v20  ;;  %v2039_v47 = vrot.slane %v10725_v37, 7  ;;  %v2040_v16 = vrot.slane %v10757_v10, 7  ;;  %v868_v1 = vmax.f32 %v800_v14, 0.0  ;;  %vm13643_vm7 = vmmov %vm13635_vm5  ;;  %v6650_v49 = vpop.f32.mrb[46].mxu0 }
 0x189   : > { %13642 = vst [vmem:[#allocation93_spill] sm:$0xff] %v13641_v20  ;;  %v2161_v39 = vpack.c.bf16 %v2062_v23, %v2063_v36  ;;  %v2162_v50 = vpack.c.bf16 %v10710_v6, %v2061_v29  ;;  %v821_v43 = vadd.f32 %v10658_v31, %v6649_v19  ;;  %v2059_v22 = vsel %vm13643_vm7, %v2036_v58, %v2037_v27  ;;  %vm6189_vm5 = vmpackc.low %vm10610_vm14, %vm10579_vm15  ;;  %v13789_v20 = vld [vmem:[#allocation71_spill] sm:$0xff] }
 0x18a   : > { %v10770_v55 = vpack.c.bf16 %v2063_v36, %v10603_v7  ;;  %v10774_v14 = vsel %vm10642_vm0, %v868_v1, 0.0  ;;  %v10776_v25 = vpack.c.bf16 %v869_v52, %v868_v1  ;;  %v6187_v9 = vpack.c.bf16 %v868_v1, %v867_v5  ;;  %v815_v52 = vpop.f32.mrb[47].mxu0  ;;  %vm13649_vm14 = vmmov %vm13643_vm7 }
 0x18b   : > { %6703 = vmatprep.mubr.bf16.mxu0 %v2161_v39  ;;  %v813_v19 = vadd.f32 %v10658_v31, %v812_v53  ;;  %v2038_v7 = vrot.slane %v10774_v14, 7  ;;  %v10785_v36 = vmax.f32 %v821_v43, 0.0  ;;  %v816_v39 = vadd.f32 %v10658_v31, %v815_v52 }
 0x18c   : > { %13644 = vst [vmem:[#allocation114_spill] sm:$0xff] %v10770_v55  ;;  %13645 = vst [vmem:[#allocation113_spill] sm:$0xff] %v10776_v25  ;;  %v824_v55 = vadd.f32 %v10658_v31, %v6650_v49  ;;  %6704 = vmatmul.mubr.bf16.gmra.mrb[84].mxu0 %v2162_v50  ;;  %6963 = vmatprep.mubr.msk.bf16.mxu1 %vm6186_vm9, %v6187_v9  ;;  %v2056_v53 = vsel %vm13643_vm7, %v2039_v47, %v2040_v16  ;;  %v13709_v25 = vrot.slane %v9846_v59, 1 }
 0x18d   : > { %13646 = vst [vmem:[#allocation96_spill] sm:$0xff] %v10785_v36  ;;  %v871_v5 = vmax.f32 %v813_v19, 0.0  ;;  %v10796_v1 = vpack.c.bf16 %v2061_v29, %v2062_v23  ;;  %v10801_v49 = vsel %vm10686_vm4, %v10785_v36, 0.0  ;;  %6964 = vmatmul.mubr.msk.bf16.gmra.mrb[40].mxu1 %vm6189_vm5, %v6190_v21  ;;  %v2058_v43 = vsel %vm13649_vm14, %v2037_v27, %v2038_v7  ;;  %vm13650_vm9 = vmmov %vm13643_vm7 }
 0x18e   : > { %v10803_v50 = vmax.f32 %v824_v55, 0.0  ;;  %v2057_v9 = vsel %vm13650_vm9, %v2038_v7, %v2039_v47  ;;  %v2043_v52 = vrot.slane %v10801_v49, 7  ;;  %v2163_v19 = vpack.c.bf16 %v2058_v43, %v2059_v22  ;;  %vm13653_vm5 = vmmov %vm13643_vm7 }
 0x18f   : > { %13647 = vst [vmem:[#allocation9_spill] sm:$0xff] %v10796_v1  ;;  %v10813_v23 = vsel %vm10698_vm12, %v871_v5, 0.0  ;;  %v10815_v29 = vpack.c.bf16 %v871_v5, %v870_v60  ;;  %v10829_v60 = vmax.f32 %v816_v39, 0.0  ;;  %v2164_v58 = vpack.c.bf16 %v2056_v53, %v2057_v9  ;;  %vm6195_vm7 = vmpackc.low %vm10717_vm3, %vm10686_vm4 }
 0x190   : > { %13648 = vst [vmem:[#allocation116_spill] sm:$0xff] %v10803_v50  ;;  %v2041_v21 = vrot.slane %v10813_v23, 7  ;;  %v10822_v27 = vsel %vm10717_vm3, %v10803_v50, 0.0  ;;  %v6196_v47 = vpack.c.bf16 %v10803_v50, %v10785_v36  ;;  %vm13654_vm9 = vmmov %vm13653_vm5  ;;  %6707 = vmatprep.mubr.bf16.mxu0 %v2163_v19  ;;  %v10863_v55 = vpack.c.bf16 %v2059_v22, %v10710_v6  ;;  %v13662_v50 = vld [vmem:[#allocation7_spill] sm:$0xff] }
 0x191   : > { %13651 = vst [vmem:[#allocation104_spill] sm:$0xff] %v10815_v29  ;;  %v12709_v31 = vrot.slane %v10822_v27, 7  ;;  %13652 = vst [vmem:[#allocation17_spill] sm:$0xff] %v10829_v60  ;;  %v10841_v7 = vsel %vm10749_vm11, %v10829_v60, 0.0  ;;  %v6193_v39 = vpack.c.bf16 %v10829_v60, %v871_v5  ;;  %v13655_v5 = vld [vmem:[#allocation100_spill] sm:$0xff]  ;;  %v10865_v60 = vpack.c.bf16 %v2057_v9, %v2058_v43  ;;  %v13671_v9 = vld [vmem:[#allocation121_spill] sm:$0xff] }
 0x192   : > { %v2055_v1 = vsel %vm13653_vm5, %v2040_v16, %v2041_v21  ;;  %v2042_v29 = vrot.slane %v10841_v7, 7  ;;  %vm13656_vm5 = vnez %v13655_v5  ;;  %13658 = vst [vmem:[#allocation13_spill] sm:$0xff] %v10863_v55  ;;  %v13663_v46 = vrot.slane %v13662_v50, 1 }
 0x193   : > { %v10854_v16 = vsel %vm13654_vm9, %v2043_v52, %v12709_v31  ;;  %13659 = vst [vmem:[#allocation115_spill] sm:$0xff] %v10865_v60  ;;  %vm13660_vm9 = vmpackc.low %vm10749_vm11, %vm10698_vm12  ;;  %v10874_v19 = vpack.c.bf16 %v2055_v1, %v2056_v53  ;;  %v13665_v6 = vrot.slane %v13664_v35, 1  ;;  %vm13666_vm14 = vcmp.lt.s32.totalorder %v8161_v2, 7 }
 0x194   : > { %6708 = vmatmul.mubr.bf16.gmra.mrb[88].mxu0 %v2164_v58  ;;  %6967 = vmatprep.mubr.msk.bf16.mxu1 %vm13660_vm9, %v6193_v39  ;;  %vm13668_vm3 = vcmp.lt.s32.totalorder %v8161_v2, 1  ;;  %v13672_v39 = vrot.slane %v13671_v9, 1  ;;  %vm13673_vm9 = vmmov %vm13666_vm14  ;;  %v13681_v9 = vrot.slane %v13662_v50, 1  ;;  %v13686_v31 = vrot.slane %v9671_v44, 1 }
 0x195   : > { %13661 = vst [vmem:[#allocation117_spill] sm:$0xff] %v10874_v19  ;;  %v10882_v22 = vsel %vm13666_vm14, %v13665_v6, %v13663_v46  ;;  %6968 = vmatmul.mubr.msk.bf16.gmra.mrb[44].mxu1 %vm6195_vm7, %v6196_v47  ;;  %v10886_v58 = vsel %vm13668_vm3, %v2041_v21, %v2042_v29  ;;  %vm13669_vm4 = vmmov %vm13668_vm3  ;;  %v13670_v53 = vmov %v13665_v6  ;;  %v13675_v46 = vrot.slane %v9730_v15, 1  ;;  %v13678_v6 = vld [vmem:[#allocation34_spill] sm:$0xff]  ;;  %v13743_v19 = vld [vmem:[#allocation49_spill] sm:$0xff] }
 0x196   : > { %13667 = vst [vmem:[#allocation35_spill] sm:$0xff] %v10882_v22  ;;  %v10890_v43 = vsel %vm13669_vm4, %v2042_v29, %v2043_v52  ;;  %v10898_v36 = vsel %vm13673_vm9, %v13672_v39, %v13670_v53  ;;  %v13676_v47 = vrot.slane %v9675_v3, 1  ;;  %vm13677_vm14 = vmmov %vm13673_vm9  ;;  %v2165_v35 = vpack.c.bf16 %v10886_v58, %v2055_v1 }
 0x197   : > { %13674 = vst [vmem:[#allocation120_spill] sm:$0xff] %v10898_v36  ;;  %vm13679_vm3 = vmpackc.low %vm9480_vm13, %vm13656_vm5  ;;  %v2166_v29 = vpack.c.bf16 %v10854_v16, %v10890_v43  ;;  %v13688_v50 = vmov %v13686_v31  ;;  %v13692_v52 = vrot.slane %v9875_v45, 1  ;;  %v13693_v5 = vrot.slane %v9823_v62, 1  ;;  %v13711_v45 = vld [vmem:[#allocation15_spill] sm:$0xff] }
 0x198   : > { %v10906_v21 = vsel %vm13677_vm14, %v13676_v47, %v13675_v46  ;;  %6987 = vmatprep.mubr.msk.bf16.mxu1 %vm13679_vm3, %v13678_v6  ;;  %v13680_v53 = vmov %v13676_v47  ;;  %vm13682_vm4 = vmmov %vm13673_vm9  ;;  %v13685_v47 = vrot.slane %v9696_v8, 1  ;;  %6711 = vmatprep.mubr.bf16.mxu0 %v2165_v35  ;;  %v13698_v35 = vrot.slane %v9846_v59, 1  ;;  %v13735_v36 = vld [vmem:[#allocation31_spill] sm:$0xff] }
 0x199   : > { %v10925_v39 = vsel %vm13682_vm4, %v13681_v9, %v13680_v53  ;;  %vm13687_vm7 = vmmov %vm13682_vm4  ;;  %v13689_v53 = vrot.slane %v9730_v15, 1  ;;  %v13695_v44 = vmov %v13693_v5  ;;  %v13703_v8 = vmov %v13692_v52 }
 0x19a   : > { %13683 = vst [vmem:[#allocation7_spill] sm:$0xff] %v10925_v39  ;;  %v10929_v46 = vpack.c.bf16 %v10906_v21, %v10925_v39  ;;  %v10939_v3 = vsel %vm13687_vm7, %v13686_v31, %v13685_v47  ;;  %vm13690_vm9 = vmmov %vm13682_vm4  ;;  %v13696_v15 = vmov %v13685_v47  ;;  %v13718_v59 = vrot.slane %v9940_v40, 1  ;;  %v13723_v39 = vld [vmem:[#allocation4_spill] sm:$0xff] }
 0x19b   : > { %v10947_v9 = vsel %vm13690_vm9, %v13689_v53, %v13688_v50  ;;  %vm13694_vm14 = vmmov %vm13682_vm4  ;;  %v13699_v50 = vrot.slane %v9806_v18, 1  ;;  %vm13725_vm5 = vnez %v13233_v11  ;;  %v13727_v40 = vrot.slane %v10140_v48, 1 }
 0x19c   : > { %13684 = vst [vmem:[#allocation12_spill] sm:$0xff] %v10929_v46  ;;  %v10951_v1 = vpack.c.bf16 %v10939_v3, %v10947_v9  ;;  %v10959_v31 = vsel %vm13694_vm14, %v13693_v5, %v13692_v52  ;;  %vm13697_vm3 = vmmov %vm13682_vm4  ;;  %6712 = vmatmul.mubr.bf16.gmra.mrb[92].mxu0 %v2166_v29  ;;  %v13744_v60 = vrot.slane %v13743_v19, 1  ;;  %v13790_v30 = vrot.slane %v13789_v20, 1 }
 0x19d   : > { %v10967_v47 = vsel %vm13697_vm3, %v13696_v15, %v13695_v44  ;;  %vm13700_vm4 = vmmov %vm13697_vm3  ;;  %v13702_v62 = vmov %v13699_v50  ;;  %v13705_v44 = vrot.slane %v10008_v54, 1  ;;  %v13706_v15 = vrot.slane %v9957_v33, 1 }
 0x19e   : > { %13691 = vst [vmem:[#allocation121_spill] sm:$0xff] %v10951_v1  ;;  %v10975_v53 = vsel %vm13700_vm4, %v13699_v50, %v13698_v35  ;;  %v10979_v5 = vpack.c.bf16 %v10959_v31, %v10967_v47  ;;  %vm13704_vm7 = vmmov %vm13697_vm3  ;;  %v13717_v33 = vrot.slane %v9977_v34, 1  ;;  %v13733_v1 = vld [vmem:[#allocation54_spill] sm:$0xff]  ;;  %v13747_v29 = vmov %v13744_v60 }
 0x19f   : > { %v10987_v52 = vsel %vm13704_vm7, %v13703_v8, %v13702_v62  ;;  %vm13707_vm9 = vmmov %vm13697_vm3  ;;  %v13708_v50 = vmov %v13706_v15  ;;  %v13713_v62 = vld [vmem:[#allocation5_spill] sm:$0xff]  ;;  %v13734_v46 = vrot.slane %v13733_v1, 1  ;;  %v13838_v42 = vrot.slane %v10650_v13, 1 }
 0x1a0   : > { %13701 = vst [vmem:[#allocation127_spill] sm:$0xff] %v10979_v5  ;;  %v10995_v35 = vsel %vm13707_vm9, %v13706_v15, %v13705_v44  ;;  %vm13710_vm14 = vmmov %vm13697_vm3  ;;  %vm13712_vm3 = vnez %v13711_v45  ;;  %vm13714_vm4 = vnez %v13713_v62  ;;  %v11011_v8 = vpack.c.bf16 %v10975_v53, %v10987_v52  ;;  %v13760_v62 = vld [vmem:[#allocation47_spill] sm:$0xff]  ;;  %v13768_v45 = vld [vmem:[#allocation69_spill] sm:$0xff] }
 0x1a1   : > { %v11003_v18 = vsel %vm13710_vm14, %v13709_v25, %v13708_v50  ;;  %vm13719_vm9 = vmmov %vm13704_vm7  ;;  %v13720_v15 = vmov %v13718_v59  ;;  %v13721_v50 = vrot.slane %v10008_v54, 1  ;;  %v13728_v54 = vld [vmem:[#allocation45_spill] sm:$0xff] }
 0x1a2   : > { %13715 = vst [vmem:[#allocation128_spill] sm:$0xff] %v11011_v8  ;;  %v11015_v44 = vpack.c.bf16 %v10995_v35, %v11003_v18  ;;  %v11023_v25 = vsel %vm13719_vm9, %v13718_v59, %v13717_v33  ;;  %vm13722_vm14 = vmmov %vm13704_vm7  ;;  %vm13724_vm7 = vnez %v13723_v39  ;;  %v13729_v59 = vrot.slane %v13728_v54, 1 }
 0x1a3   : > { %v11031_v6 = vsel %vm13722_vm14, %v13721_v50, %v13720_v15  ;;  %v13731_v8 = vrot.slane %v9977_v34, 1  ;;  %vm13732_vm14 = vmmov %vm13719_vm9  ;;  %v13740_v34 = vrot.slane %v10140_v48, 1 }
 0x1a4   : > { %13716 = vst [vmem:[#allocation129_spill] sm:$0xff] %v11015_v44  ;;  %v7760_v44 = vld [vmem:[%s12320_s5 + $0x88] sm:$0xff]   ;;  %v11042_v33 = vpack.c.bf16 %v11023_v25, %v11031_v6  ;;  %v11050_v15 = vsel %vm13719_vm9, %v13729_v59, %v13727_v40  ;;  %v13730_v50 = vmov %v13729_v59  ;;  %vm13737_vm13 = vmmov %vm13719_vm9 }
 0x1a5   : > { %v11058_v5 = vsel %vm13732_vm14, %v13731_v8, %v13730_v50  ;;  %v13741_v59 = vld [vmem:[#allocation60_spill] sm:$0xff]  ;;  %vm13749_vm14 = vmmov %vm13719_vm9 }
 0x1a6   : > { %13726 = vst [vmem:[#allocation130_spill] sm:$0xff] %v11042_v33  ;;  %v13736_v33 = vrot.slane %v13735_v36, 1  ;;  %v11070_v40 = vpack.c.bf16 %v11050_v15, %v11058_v5  ;;  %v13742_v50 = vrot.slane %v13741_v59, 1 }
 0x1a8   : > { %v11066_v22 = vsel %vm13737_vm13, %v13736_v33, %v13734_v46  ;;  %13738 = vst [vmem:[#allocation45_spill] sm:$0xff] %v11070_v40  ;;  %v13739_v54 = vmov %v13736_v33  ;;  %vm13745_vm13 = vmmov %vm13719_vm9  ;;  %v13748_v33 = vrot.slane %v13733_v1, 1  ;;  %v13755_v1 = vld [vmem:[#allocation50_spill] sm:$0xff]  ;;  %v13769_v40 = vrot.slane %v13768_v45, 1  ;;  %v13778_v45 = vld [vmem:[#allocation73_spill] sm:$0xff] }
 0x1a9   : > { %v11078_v8 = vsel %vm13719_vm9, %v13740_v34, %v13739_v54  ;;  %v11086_v46 = vsel %vm13745_vm13, %v13744_v60, %v13742_v50  ;;  %v13750_v54 = vld [vmem:[#allocation25_spill] sm:$0xff]  ;;  %vm13751_vm9 = vmpackc.low %vm13714_vm4, %vm13712_vm3  ;;  %v13752_v34 = vld [vmem:[#allocation11_spill] sm:$0xff]  ;;  %v13756_v50 = vrot.slane %v13755_v1, 1  ;;  %v13773_v11 = vrot.slane %v13755_v1, 1 }
 0x1aa   : > { %13746 = vst [vmem:[#allocation54_spill] sm:$0xff] %v11086_v46  ;;  %v11094_v36 = vsel %vm13749_vm14, %v13748_v33, %v13747_v29  ;;  %6988 = vmatmul.mubr.msk.bf16.vlgmr.msra.gmra.mrb[0].mxu1 %vm13751_vm9, %v13750_v54  ;;  %6731 = vmatprep.mubr.bf16.mxu0 %v13752_v34  ;;  %v11106_v60 = vpack.c.bf16 %v11066_v22, %v11078_v8  ;;  %v13757_v29 = vld [vmem:[#allocation58_spill] sm:$0xff]  ;;  %vm13762_vm14 = vmpackc.low %vm13725_vm5, %vm13724_vm7  ;;  %v13772_v39 = vmov %v13769_v40  ;;  %v13780_v1 = vld [vmem:[#allocation76_spill] sm:$0xff] }
 0x1ab   : > { %v11110_v19 = vpack.c.bf16 %v11086_v46, %v11094_v36  ;;  %v13758_v33 = vrot.slane %v13757_v29, 1  ;;  %7036 = vmatpush3.bf16.msra.mxu1 %v13760_v62  ;;  %v13761_v54 = vld [vmem:[#allocation22_spill] sm:$0xff]  ;;  %vm13765_vm9 = vmmov %vm13745_vm13  ;;  %vm13829_vm3 = vnez %v13828_v41  ;;  %v13879_v41 = vrot.slane %v10757_v10, 1 }
 0x1ac   : > { %13753 = vst [vmem:[#allocation31_spill] sm:$0xff] %v11106_v60  ;;  %6991 = vmatprep.mubr.msk.bf16.mxu1 %vm13762_vm14, %v13761_v54  ;;  %vm13774_vm14 = vmmov %vm13765_vm9  ;;  %7037 = vmatprep.subr.bf16.mxu1 %v7760_v44  ;;  %v7769_v46 = vld [vmem:[%s12320_s5 + $0x198] sm:$0xff]  }
 0x1ad   : > { %13754 = vst [vmem:[#allocation60_spill] sm:$0xff] %v11110_v19  ;;  %v11118_v48 = vsel %vm13745_vm13, %v13758_v33, %v13756_v50  ;;  %v13763_v34 = vmov %v13758_v33  ;;  %v13764_v19 = vrot.slane %v13741_v59, 1  ;;  %v13766_v50 = vld [vmem:[#allocation125_spill] sm:$0xff]  ;;  %vm13770_vm13 = vmmov %vm13765_vm9  ;;  %v11150_v29 = vsel %vm13774_vm14, %v13773_v11, %v13772_v39 }
 0x1ae   : > { %13759 = vst [vmem:[#allocation49_spill] sm:$0xff] %v11118_v48  ;;  %v13767_v33 = vrot.slane %v13766_v50, 1  ;;  %13775 = vst [vmem:[#allocation58_spill] sm:$0xff] %v11150_v29  ;;  %v7761_v59 = vld [vmem:[%s12320_s5 + $0x90] sm:$0xff]   ;;  %v13784_v54 = vrot.slane %v13766_v50, 1  ;;  %v13794_v50 = vrot.slane %v13778_v45, 1 }
 0x1af   : > { %v11134_v60 = vsel %vm13765_vm9, %v13764_v19, %v13763_v34  ;;  %v13779_v19 = vrot.slane %v13778_v45, 1  ;;  %vm13791_vm14 = vmmov %vm13765_vm9  ;;  %7038 = vmatpush3.bf16.msra.mxu1 %v7760_v44  ;;  %v13823_v44 = vrot.slane %v10565_v12, 1 }
 0x1b0   : > { %v11142_v62 = vsel %vm13770_vm13, %v13769_v40, %v13767_v33  ;;  %v11157_v34 = vpack.c.bf16 %v11118_v48, %v11134_v60  ;;  %v13781_v33 = vrot.slane %v13780_v1, 1  ;;  %vm13785_vm13 = vmmov %vm13765_vm9  ;;  %v13793_v1 = vmov %v13790_v30  ;;  %7039 = vmatprep.subr.bf16.mxu1 %v7761_v59  ;;  %v13978_v48 = vld [vmem:[#allocation109_spill] sm:$0xff] }
 0x1b1   : > { %13771 = vst [vmem:[#allocation50_spill] sm:$0xff] %v11142_v62  ;;  %v11161_v40 = vpack.c.bf16 %v11142_v62, %v11150_v29  ;;  %vm13840_vm4 = vmmov %vm13765_vm9  ;;  %v13890_v62 = vmov 0.0   ;;  %v13988_v29 = vld [vmem:[#allocation92_spill] sm:$0xff] }
 0x1b2   : > { %13776 = vst [vmem:[#allocation47_spill] sm:$0xff] %v11157_v34  ;;  %v11169_v11 = vsel %vm13765_vm9, %v13781_v33, %v13779_v19  ;;  %v13783_v39 = vmov %v13781_v33  ;;  %v13796_v33 = vld [vmem:[#allocation72_spill] sm:$0xff] }
 0x1b3   : > { %13777 = vst [vmem:[#allocation125_spill] sm:$0xff] %v11161_v40  ;;  %13782 = vst [vmem:[#allocation69_spill] sm:$0xff] %v11169_v11  ;;  %v11177_v55 = vsel %vm13785_vm13, %v13784_v54, %v13783_v39  ;;  %v13788_v40 = vrot.slane %v10463_v17, 1  ;;  %v11197_v54 = vsel %vm13765_vm9, %v13794_v50, %v13793_v1  ;;  %v13797_v39 = vrot.slane %v13796_v33, 1  ;;  %v13813_v17 = vld [vmem:[#allocation23_spill] sm:$0xff]  ;;  %7040 = vmatpush3.bf16.msra.mxu1 %v7761_v59 }
 0x1b4   : > { %13786 = vst [vmem:[#allocation73_spill] sm:$0xff] %v11177_v55  ;;  %v11181_v34 = vpack.c.bf16 %v11169_v11, %v11177_v55  ;;  %13795 = vst [vmem:[#allocation131_spill] sm:$0xff] %v11197_v54  ;;  %v13806_v1 = vrot.slane %v10565_v12, 1  ;;  %v13807_v50 = vrot.slane %v10531_v0, 1  ;;  %vm13814_vm7 = vnez %v13813_v17  ;;  %v13892_v11 = vld [vmem:[#allocation42_spill] sm:$0xff]  ;;  %v7766_v17 = vld [vmem:[%s12320_s5 + $0xb0] sm:$0xff]  }
 0x1b5   : > { %v11189_v19 = vsel %vm13791_vm14, %v13790_v30, %v13788_v40  ;;  %vm13800_vm13 = vmmov %vm13765_vm9  ;;  %v13819_v0 = vrot.slane %v10548_v4, 1  ;;  %v13832_v12 = vrot.slane %v10633_v28, 1  ;;  %v13976_v55 = vld [vmem:[#allocation106_spill] sm:$0xff] }
 0x1b6   : > { %13787 = vst [vmem:[#allocation76_spill] sm:$0xff] %v11181_v34  ;;  %13792 = vst [vmem:[#allocation71_spill] sm:$0xff] %v11189_v19  ;;  %v13799_v34 = vrot.slane %v13798_v38, 1  ;;  %v11209_v30 = vpack.c.bf16 %v11189_v19, %v11197_v54  ;;  %v13898_v54 = vrot.slane %v10841_v7, 1  ;;  %v13927_v19 = vld [vmem:[#allocation51_spill] sm:$0xff] }
 0x1b7   : > { %vm13804_vm14 = vmmov %vm13765_vm9 }
 0x1b8   : > { %v11205_v57 = vsel %vm13800_vm13, %v13799_v34, %v13797_v39  ;;  %13802 = vst [vmem:[#allocation81_spill] sm:$0xff] %v11209_v30  ;;  %v13803_v20 = vmov %v13799_v34  ;;  %v11225_v34 = vsel %vm13765_vm9, %v13807_v50, %v13806_v1  ;;  %v13809_v39 = vmov %v13807_v50  ;;  %vm13811_vm13 = vmmov %vm13765_vm9 }
 0x1b9   : > { %13801 = vst [vmem:[#allocation72_spill] sm:$0xff] %v11205_v57  ;;  %v11217_v45 = vsel %vm13804_vm14, %v13788_v40, %v13803_v20  ;;  %13808 = vst [vmem:[#allocation133_spill] sm:$0xff] %v11225_v34  ;;  %v13810_v30 = vrot.slane %v13796_v33, 1  ;;  %v13815_v20 = vld [vmem:[#allocation19_spill] sm:$0xff]  ;;  %v13820_v33 = vrot.slane %v10516_v51, 1  ;;  %v13831_v51 = vrot.slane %v10672_v26, 1 }
 0x1ba   : > { %13805 = vst [vmem:[#allocation132_spill] sm:$0xff] %v11217_v45  ;;  %vm13816_vm14 = vnez %v13815_v20  ;;  %v11241_v40 = vpack.c.bf16 %v11205_v57, %v11217_v45  ;;  %v13885_v20 = vld [vmem:[#allocation27_spill] sm:$0xff]  ;;  %v13943_v45 = vld [vmem:[#allocation66_spill] sm:$0xff] }
 0x1bb   : > { %v11233_v38 = vsel %vm13811_vm13, %v13810_v30, %v13809_v39  ;;  %v11253_v30 = vsel %vm13765_vm9, %v13820_v33, %v13819_v0  ;;  %v13822_v50 = vmov %v13820_v33  ;;  %vm13824_vm13 = vmmov %vm13765_vm9  ;;  %v11280_v33 = vsel %vm13765_vm9, %v13832_v12, %v13831_v51  ;;  %v13935_v57 = vld [vmem:[#allocation63_spill] sm:$0xff] }
 0x1bc   : > { %13812 = vst [vmem:[#allocation134_spill] sm:$0xff] %v11233_v38  ;;  %13817 = vst [vmem:[#allocation135_spill] sm:$0xff] %v11241_v40  ;;  %v11245_v1 = vpack.c.bf16 %v11225_v34, %v11233_v38  ;;  %v11261_v39 = vsel %vm13824_vm13, %v13823_v44, %v13822_v50  ;;  %v13826_v40 = vld [vmem:[#allocation14_spill] sm:$0xff]  ;;  %v13834_v50 = vmov %v13832_v12  ;;  %v13835_v44 = vrot.slane %v10548_v4, 1  ;;  %v7767_v4 = vld [vmem:[%s12320_s5 + $0x188] sm:$0xff]  }
 0x1bd   : > { %13821 = vst [vmem:[#allocation137_spill] sm:$0xff] %v11253_v30  ;;  %13825 = vst [vmem:[#allocation138_spill] sm:$0xff] %v11261_v39  ;;  %vm13827_vm5 = vnez %v13826_v40  ;;  %v11272_v0 = vpack.c.bf16 %v11253_v30, %v11261_v39  ;;  %v13843_v30 = vld [vmem:[#allocation16_spill] sm:$0xff]  ;;  %v13896_v34 = vld [vmem:[#allocation46_spill] sm:$0xff]  ;;  %vm13936_vm0 = vnez %v13935_v57 }
 0x1be   : > { %13818 = vst [vmem:[#allocation136_spill] sm:$0xff] %v11245_v1  ;;  %v7762_v1 = vld [vmem:[%s12320_s5 + $0x98] sm:$0xff]   ;;  %13833 = vst [vmem:[#allocation140_spill] sm:$0xff] %v11280_v33  ;;  %v13844_v51 = vpack.c.bf16 %v13842_v63, %v13843_v30  ;;  %v13851_v63 = vrot.slane %v10740_v32, 1  ;;  %v13951_v57 = vld [vmem:[#allocation84_spill] sm:$0xff] }
 0x1bf   : > { %13830 = vst [vmem:[#allocation139_spill] sm:$0xff] %v11272_v0  ;;  %vm13836_vm13 = vmmov %vm13765_vm9  ;;  %v13839_v0 = vrot.slane %v10618_v24, 1  ;;  %7041 = vmatprep.subr.bf16.mxu1 %v7762_v1  ;;  %v13937_v38 = vld [vmem:[#allocation62_spill] sm:$0xff] }
 0x1c0   : > { %v11288_v61 = vsel %vm13836_vm13, %v13835_v44, %v13834_v50  ;;  %6732 = vmatmul.mubr.bf16.vlgmr.msra.gmra.mrb[48].mxu0 %v13844_v51  ;;  %v13847_v50 = vrot.slane %v10672_v26, 1  ;;  %vm13848_vm9 = vmmov %vm13840_vm4  ;;  %v13853_v51 = vmov %v13851_v63  ;;  %v13857_v26 = vld [vmem:[#allocation8_spill] sm:$0xff]  ;;  %7042 = vmatpush3.bf16.msra.mxu1 %v7762_v1 }
 0x1c1   : > { %13837 = vst [vmem:[#allocation141_spill] sm:$0xff] %v11288_v61  ;;  %v11296_v56 = vsel %vm13840_vm4, %v13839_v0, %v13838_v42  ;;  %v11306_v28 = vpack.c.bf16 %v11280_v33, %v11288_v61  ;;  %v13846_v12 = vmov %v13839_v0  ;;  %v13850_v0 = vrot.slane %v10774_v14, 1  ;;  %vm13855_vm13 = vmmov %vm13840_vm4  ;;  %v13858_v33 = vld [vmem:[#allocation122_spill] sm:$0xff]  ;;  %v7764_v1 = vld [vmem:[%s12320_s5 + $0xa8] sm:$0xff]  }
 0x1c2   : > { %13841 = vst [vmem:[#allocation142_spill] sm:$0xff] %v11296_v56  ;;  %v11314_v42 = vsel %vm13848_vm9, %v13847_v50, %v13846_v12  ;;  %v13859_v12 = vpack.c.bf16 %v13857_v26, %v13858_v33  ;;  %v13860_v50 = vld [vmem:[#allocation24_spill] sm:$0xff]  ;;  %vm13861_vm9 = vmpackc.low %vm13816_vm14, %vm13814_vm7  ;;  %v13863_v33 = vrot.slane %v10725_v37, 1  ;;  %v13868_v26 = vrot.slane %v10774_v14, 1  ;;  %v7763_v37 = vld [vmem:[%s12320_s5 + $0xa0] sm:$0xff]  }
 0x1c3   : > { %13845 = vst [vmem:[#allocation18_spill] sm:$0xff] %v11306_v28  ;;  %13849 = vst [vmem:[#allocation16_spill] sm:$0xff] %v11314_v42  ;;  %v11322_v44 = vsel %vm13840_vm4, %v13851_v63, %v13850_v0  ;;  %v13854_v28 = vrot.slane %v10650_v13, 1  ;;  %6992 = vmatmul.mubr.msk.bf16.gmra.mrb[4].mxu1 %vm13861_vm9, %v13860_v50  ;;  %v11343_v32 = vpack.c.bf16 %v11296_v56, %v11314_v42  ;;  %v13865_v63 = vld [vmem:[#allocation39_spill] sm:$0xff]  ;;  %v13873_v14 = vld [vmem:[#allocation64_spill] sm:$0xff]  ;;  %7043 = vmatprep.subr.bf16.mxu1 %v7763_v37 }
 0x1c4   : > { %13852 = vst [vmem:[#allocation143_spill] sm:$0xff] %v11322_v44  ;;  %6735 = vmatprep.mubr.bf16.mxu0 %v13859_v12  ;;  %vm13869_vm9 = vmmov %vm13840_vm4  ;;  %6780 = vmatpush3.bf16.msra.mxu0 %v13873_v14  ;;  %v13887_v50 = vld [vmem:[#allocation33_spill] sm:$0xff]  ;;  %v7775_v56 = vld [vmem:[%s12320_s5 + $0x1b8] sm:$0xff]  }
 0x1c5   : > { %v11330_v24 = vsel %vm13855_vm13, %v13854_v28, %v13853_v51  ;;  %v13862_v28 = vrot.slane %v10757_v10, 1  ;;  %vm13866_vm13 = vmpackc.low %vm13829_vm3, %vm13827_vm5  ;;  %v13867_v51 = vmov %v13863_v33  ;;  %6781 = vmatprep.subr.bf16.mxu0 %v7767_v4  ;;  %vm13886_vm5 = vnez %v13885_v20  ;;  %7044 = vmatpush3.bf16.msra.mxu1 %v7763_v37  ;;  %v7772_v37 = vld [vmem:[%s12320_s5 + $0x1a8] sm:$0xff]   ;;  %v13931_v42 = vld [vmem:[#allocation55_spill] sm:$0xff] }
 0x1c6   : > { %13856 = vst [vmem:[#allocation144_spill] sm:$0xff] %v11330_v24  ;;  %v11347_v13 = vpack.c.bf16 %v11322_v44, %v11330_v24  ;;  %6995 = vmatprep.mubr.msk.bf16.mxu1 %vm13866_vm13, %v13865_v63  ;;  %v11369_v12 = vsel %vm13869_vm9, %v13868_v26, %v13867_v51  ;;  %v13874_v26 = vrot.slane %v10841_v7, 1  ;;  %vm13876_vm13 = vmmov %vm13869_vm9  ;;  %vm13888_vm3 = vnez %v13887_v50  ;;  %7045 = vmatprep.subr.bf16.mxu1 %v7764_v1  ;;  %v13919_v44 = vld [vmem:[#allocation41_spill] sm:$0xff]  ;;  %v13933_v61 = vld [vmem:[#allocation48_spill] sm:$0xff] }
 0x1c7   : > { %v11355_v0 = vsel %vm13840_vm4, %v13863_v33, %v13862_v28  ;;  %13870 = vst [vmem:[#allocation122_spill] sm:$0xff] %v11369_v12  ;;  %v13871_v33 = vrot.slane %v10822_v27, 7  ;;  %vm13872_vm4 = vcmp.lt.s32.totalorder %v8161_v2, 1  ;;  %v13875_v28 = vrot.slane %v10813_v23, 1  ;;  %v13881_v23 = vld [vmem:[#allocation37_spill] sm:$0xff]  ;;  %vm13897_vm7 = vmpackc.low %vm13888_vm3, %vm13886_vm5 }
 0x1c8   : > { %13864 = vst [vmem:[#allocation8_spill] sm:$0xff] %v11355_v0  ;;  %v11386_v59 = vpack.c.bf16 %v11355_v0, %v11369_v12  ;;  %6782 = vmatpush3.bf16.msra.mxu0 %v7767_v4  ;;  %v4185_v10 = vrot.slane %v10801_v49, 1  ;;  %v13891_v49 = vld [vmem:[#allocation52_spill] sm:$0xff]  ;;  %v13909_v0 = vld [vmem:[#allocation26_spill] sm:$0xff]  ;;  %v13926_v24 = vld [vmem:[#allocation57_spill] sm:$0xff]  ;;  %vm13932_vm11 = vnez %v13931_v42  ;;  %vm13934_vm15 = vnez %v13933_v61 }
 0x1c9   : > { %v11378_v40 = vsel %vm13872_vm4, %v13871_v33, %v13843_v30  ;;  %v11396_v30 = vsel %vm13876_vm13, %v13875_v28, %v13874_v26  ;;  %v7768_v33 = vld [vmem:[%s12320_s5 + $0x190] sm:$0xff]   ;;  %v13878_v14 = vmov %v13875_v28  ;;  %vm13882_vm4 = vnez %v13881_v23  ;;  %v13889_v28 = vld [vmem:[#allocation28_spill] sm:$0xff]  ;;  %7046 = vmatpush3.bf16.msra.mxu1 %v7764_v1  ;;  %v13947_v42 = vld [vmem:[#allocation79_spill] sm:$0xff] }
 0x1ca   : > { %13877 = vst [vmem:[#allocation64_spill] sm:$0xff] %v11396_v30  ;;  %v11407_v51 = vsel %vm13869_vm9, %v13879_v41, %v13878_v14  ;;  %v13883_v14 = vld [vmem:[#allocation21_spill] sm:$0xff]  ;;  %v4186_v41 = vrot.slane %v10822_v27, 1  ;;  %6736 = vmatmul.mubr.bf16.gmra.mrb[52].mxu0 %v13889_v28  ;;  %6783 = vmatprep.subr.bf16.mxu0 %v7768_v33  ;;  %v11461_v27 = vrot.slane %v13890_v62, 1  ;;  %v13905_v4 = vld [vmem:[#allocation40_spill] sm:$0xff] }
 0x1cb   : > { %13880 = vst [vmem:[#allocation145_spill] sm:$0xff] %v11407_v51  ;;  %v11415_v26 = vpack.c.bf16 %v11396_v30, %v11407_v51  ;;  %vm13884_vm13 = vnez %v13883_v14  ;;  %6739 = vmatprep.mubr.bf16.mxu0 %v13891_v49  ;;  %v13907_v30 = vld [vmem:[#allocation38_spill] sm:$0xff]  ;;  %7047 = vmatprep.subr.bf16.mxu1 %v7766_v17  ;;  %v13915_v1 = vld [vmem:[#allocation124_spill] sm:$0xff]  ;;  %v13917_v51 = vld [vmem:[#allocation53_spill] sm:$0xff] }
 0x1cc   : > { %vm13893_vm9 = vmpackc.low %vm13884_vm13, %vm13882_vm4  ;;  %6784 = vmatpush3.bf16.msra.mxu0 %v7768_v33  ;;  %v13913_v33 = vld [vmem:[#allocation29_spill] sm:$0xff]  ;;  %v13921_v12 = vld [vmem:[#allocation44_spill] sm:$0xff] }
 0x1cd   : > { %6996 = vmatmul.mubr.msk.bf16.gmra.mrb[8].mxu1 %vm13893_vm9, %v13892_v11  ;;  %vm13899_vm9 = vcmp.lt.s32.totalorder %v8161_v2, 7  ;;  %6785 = vmatprep.subr.bf16.mxu0 %v7769_v46  ;;  %v13952_v61 = vld [vmem:[#allocation97_spill] sm:$0xff] }
 0x1ce   : > { %6999 = vmatprep.mubr.msk.bf16.mxu1 %vm13897_vm7, %v13896_v34  ;;  %v11490_v63 = vsel %vm13899_vm9, %v13898_v54, %v4185_v10  ;;  %vm13901_vm7 = vmmov %vm13899_vm9  ;;  %v7771_v54 = vld [vmem:[%s12320_s5 + $0x1a0] sm:$0xff]   ;;  %vm13906_vm9 = vnez %v13905_v4  ;;  %7048 = vmatpush3.bf16.msra.mxu1 %v7766_v17  ;;  %v13923_v17 = vld [vmem:[#allocation56_spill] sm:$0xff] }
 0x1cf   : > { %13900 = vst [vmem:[#allocation37_spill] sm:$0xff] %v11490_v63  ;;  %v11500_v39 = vsel %vm13901_vm7, %v4186_v41, %v11461_v27  ;;  %vm13903_vm5 = vmmov %vm13901_vm7  ;;  %vm13908_vm7 = vnez %v13907_v30  ;;  %v7773_v63 = vld [vmem:[%s12320_s5 + $0x1b0] sm:$0xff]   ;;  %v12880_v30 = vmov 0.0|0.0  }
 0x1d0   : > { %13902 = vst [vmem:[#allocation21_spill] sm:$0xff] %v11500_v39  ;;  %v11504_v7 = vsel %vm13903_vm5, %v4185_v10, %v4186_v41  ;;  %vm12799_vm3 = vmpackc.low %vm13908_vm7, %vm13906_vm9  ;;  %vm13910_vm5 = vnez %v13909_v0  ;;  %v13911_v10 = vld [vmem:[#allocation30_spill] sm:$0xff]  ;;  %6786 = vmatpush3.bf16.msra.mxu0 %v7769_v46  ;;  %v13916_v46 = vld [vmem:[#allocation61_spill] sm:$0xff]  ;;  %vm13920_vm9 = vnez %v13919_v44 }
 0x1d1   : > { %13904 = vst [vmem:[#allocation33_spill] sm:$0xff] %v11504_v7  ;;  %vm13912_vm4 = vnez %v13911_v10  ;;  %v7770_v41 = vld [vmem:[%s12320_s5 + $0xb8] sm:$0xff]   ;;  %6787 = vmatprep.subr.bf16.mxu0 %v7771_v54  ;;  %v13914_v7 = vld [vmem:[#allocation43_spill] sm:$0xff]  ;;  %v13972_v0 = vld [vmem:[#allocation108_spill] sm:$0xff] }
 0x1d2   : > { %vm12804_vm13 = vmpackc.low %vm13912_vm4, %vm13910_vm5  ;;  %6740 = vmatmul.mubr.bf16.gmra.mrb[56].mxu0 %v13913_v33  ;;  %7049 = vmatprep.subr.bf16.mxu1 %v7770_v41  ;;  %v11544_v39 = vld [vmem:[%s12320_s5 + $0x140] sm:$0xff]   ;;  %vm13924_vm5 = vnez %v13923_v17  ;;  %v13939_v17 = vld [vmem:[#allocation126_spill] sm:$0xff] }
 0x1d3   : > { %6743 = vmatprep.mubr.bf16.mxu0 %v13914_v7  ;;  %7050 = vmatpush3.bf16.msra.mxu1 %v7770_v41  ;;  %v13928_v41 = vld [vmem:[#allocation65_spill] sm:$0xff]  ;;  %v13955_v44 = vld [vmem:[#allocation78_spill] sm:$0xff]  ;;  %v13983_v10 = vld [vmem:[#allocation104_spill] sm:$0xff] }
 0x1d4   : > { %6788 = vmatpush3.bf16.msra.mxu0 %v7771_v54  ;;  %7099 = vmatprep.subr.bf16.mxu1 %v11544_v39  ;;  %v13925_v54 = vld [vmem:[#allocation123_spill] sm:$0xff]  ;;  %v13994_v4 = vld [vmem:[#allocation17_spill] sm:$0xff] }
 0x1d5   : > { %7000 = vmatmul.mubr.msk.bf16.gmra.mrb[12].mxu1 %vm12799_vm3, %v13915_v1  ;;  %6789 = vmatprep.subr.bf16.mxu0 %v7772_v37  ;;  %vm13918_vm3 = vnez %v13917_v51  ;;  %v13945_v51 = vld [vmem:[#allocation74_spill] sm:$0xff]  ;;  %v14003_v20 = vld [vmem:[#allocation117_spill] sm:$0xff] }
 0x1d6   : > { %7003 = vmatprep.mubr.msk.bf16.mxu1 %vm12804_vm13, %v13916_v46  ;;  %vm12826_vm7 = vmpackc.low %vm13920_vm9, %vm13918_vm3  ;;  %vm13922_vm13 = vnez %v13921_v12  ;;  %v11587_v12 = vld [vmem:[%s12320_s5 + $0x40] sm:$0xff]   ;;  %vm13948_vm9 = vnez %v13947_v42  ;;  %v13984_v46 = vld [vmem:[#allocation93_spill] sm:$0xff] }
 0x1d7   : > { %vm12824_vm4 = vmpackc.low %vm13924_vm5, %vm13922_vm13  ;;  %vm13946_vm5 = vnez %v13945_v51  ;;  %v13963_v51 = vld [vmem:[#allocation90_spill] sm:$0xff]  ;;  %v13980_v42 = vld [vmem:[#allocation107_spill] sm:$0xff] }
 0x1d8   : > { %6790 = vmatpush3.bf16.msra.mxu0 %v7772_v37  ;;  %v13929_v37 = vld [vmem:[#allocation59_spill] sm:$0xff]  ;;  %vm12836_vm3 = vmpackc.low %vm13936_vm0, %vm13934_vm15 }
 0x1d9   : > { %6791 = vmatprep.subr.bf16.mxu0 %v7773_v63  ;;  %vm13930_vm14 = vnez %v13929_v37  ;;  %v13949_v37 = vld [vmem:[#allocation68_spill] sm:$0xff] }
 0x1da   : > { %6744 = vmatmul.mubr.bf16.gmra.mrb[60].mxu0 %v13925_v54  ;;  %vm12838_vm12 = vmpackc.low %vm13932_vm11, %vm13930_vm14 }
 0x1db   : > { %6747 = vmatprep.mubr.bf16.mxu0 %v13926_v24  ;;  %vm12847_vm14 = vmpackc.low %vm13948_vm9, %vm13946_vm5 }
 0x1dc   : > { %6792 = vmatpush3.bf16.msra.mxu0 %v7773_v63  ;;  %v13938_v63 = vld [vmem:[#allocation67_spill] sm:$0xff] }
 0x1dd   : > { %7004 = vmatmul.mubr.msk.bf16.gmra.mrb[16].mxu1 %vm12826_vm7, %v13927_v19  ;;  %6793 = vmatprep.subr.bf16.mxu0 %v7775_v56  ;;  %vm13944_vm7 = vnez %v13943_v45  ;;  %v13957_v19 = vld [vmem:[#allocation70_spill] sm:$0xff]  ;;  %v13961_v45 = vld [vmem:[#allocation85_spill] sm:$0xff] }
 0x1de   : > { %7007 = vmatprep.mubr.msk.bf16.mxu1 %vm12824_vm4, %v13928_v41  ;;  %v13940_v41 = vld [vmem:[#allocation83_spill] sm:$0xff]  ;;  %vm13958_vm0 = vnez %v13957_v19 }
 0x1df   : > { %vm12854_vm11 = vmpackc.low %vm10489_vm6, %vm13958_vm0  ;;  %v13971_v19 = vld [vmem:[#allocation111_spill] sm:$0xff]  ;;  %vm13977_vm6 = vnez %v13976_v55  ;;  %v13993_v55 = vld [vmem:[#allocation96_spill] sm:$0xff] }
 0x1e0   : > { %6794 = vmatpush3.bf16.msra.mxu0 %v7775_v56  ;;  %v13941_v56 = vld [vmem:[#allocation77_spill] sm:$0xff] }
 0x1e1   : > { %6843 = vmatprep.subr.bf16.mxu0 %v11587_v12  ;;  %vm13942_vm4 = vnez %v13941_v56  ;;  %v13960_v56 = vld [vmem:[#allocation86_spill] sm:$0xff] }
 0x1e2   : > { %6748 = vmatmul.mubr.bf16.gmra.mrb[64].mxu0 %v13937_v38  ;;  %vm12849_vm13 = vmpackc.low %vm13944_vm7, %vm13942_vm4 }
 0x1e3   : > { %6751 = vmatprep.mubr.bf16.mxu0 %v13938_v63 }
 0x1e5   : > { %7008 = vmatmul.mubr.msk.bf16.gmra.mrb[20].mxu1 %vm12838_vm12, %v13939_v17  ;;  %v13950_v17 = vld [vmem:[#allocation80_spill] sm:$0xff]  ;;  %vm13956_vm12 = vnez %v13955_v44  ;;  %v13969_v44 = vld [vmem:[#allocation103_spill] sm:$0xff] }
 0x1e6   : > { %7011 = vmatprep.mubr.msk.bf16.mxu1 %vm12836_vm3, %v13940_v41  ;;  %v13953_v41 = vld [vmem:[#allocation82_spill] sm:$0xff] }
 0x1e7   : > { %vm13954_vm3 = vnez %v13953_v41  ;;  %v13968_v41 = vld [vmem:[#allocation87_spill] sm:$0xff] }
 0x1e8   : > { %vm12855_vm15 = vmpackc.low %vm13956_vm12, %vm13954_vm3  ;;  %vm13979_vm3 = vnez %v13978_v48  ;;  %v13992_v48 = vld [vmem:[#allocation9_spill] sm:$0xff] }
 0x1e9   : > { %vm12882_vm12 = vmpackc.low %vm13979_vm3, %vm13977_vm6 }
 0x1ea   : > { %6752 = vmatmul.mubr.bf16.gmra.mrb[68].mxu0 %v13949_v37 }
 0x1eb   : > { %6755 = vmatprep.mubr.bf16.mxu0 %v13950_v17 }
 0x1ed   : > { %7012 = vmatmul.mubr.msk.bf16.gmra.mrb[24].mxu1 %vm12849_vm13, %v13951_v57  ;;  %v13962_v57 = vld [vmem:[#allocation102_spill] sm:$0xff]  ;;  %vm12866_vm13 = vmpackc.low %vm10591_vm1, %vm10508_vm8  ;;  %vm7810_vm1 = vmmov 1  }
 0x1ee   : > { %7015 = vmatprep.mubr.msk.bf16.mxu1 %vm12847_vm14, %v13952_v61  ;;  %vm12867_vm14 = vmpackc.low %vm10477_vm2, %vm10540_vm10  ;;  %v13981_v61 = vld [vmem:[#allocation112_spill] sm:$0xff]  ;;  %vm13989_vm10 = vnez %v13988_v29  ;;  %v13998_v29 = vld [vmem:[#allocation115_spill] sm:$0xff] }
 0x1ef   : > { %vm6264_vm2 = vmpackc.low %vm7810_vm1, %vm13989_vm10  ;;  %vm14001_vm10 = vcmp.lt.s32.totalorder %v8161_v2, 7  ;;  %v7777_v2 = vld [vmem:[%s12320_s5 + $0x150] sm:$0xff]  }
 0x1f2   : > { %6756 = vmatmul.mubr.bf16.gmra.mrb[72].mxu0 %v13960_v56 }
 0x1f3   : > { %6759 = vmatprep.mubr.bf16.mxu0 %v13961_v45 }
 0x1f5   : > { %7016 = vmatmul.mubr.msk.bf16.gmra.mrb[28].mxu1 %vm12855_vm15, %v13962_v57  ;;  %v13970_v57 = vld [vmem:[#allocation91_spill] sm:$0xff] }
 0x1f6   : > { %7019 = vmatprep.mubr.msk.bf16.mxu1 %vm12854_vm11, %v13963_v51  ;;  %vm13973_vm11 = vnez %v13972_v0  ;;  %v13974_v51 = vld [vmem:[#allocation99_spill] sm:$0xff]  ;;  %v13990_v0 = vld [vmem:[#allocation116_spill] sm:$0xff] }
 0x1f7   : > { %vm13975_vm15 = vnez %v13974_v51  ;;  %v6265_v51 = vpack.c.bf16 %v13890_v62, %v13990_v0  ;;  %v13999_v0 = vld [vmem:[#allocation119_spill] sm:$0xff] }
 0x1f8   : > { %vm6120_vm0 = vmpackc.low %vm13975_vm15, %vm13973_vm11  ;;  %v14000_v1 = vrot.slane %v13999_v0, 1 }
 0x1fa   : > { %6760 = vmatmul.mubr.bf16.gmra.mrb[76].mxu0 %v13968_v41 }
 0x1fb   : > { %6763 = vmatprep.mubr.bf16.mxu0 %v13969_v44 }
 0x1fd   : > { %7020 = vmatmul.mubr.msk.bf16.gmra.mrb[32].mxu1 %vm12867_vm14, %v13970_v57  ;;  %v13982_v57 = vld [vmem:[#allocation113_spill] sm:$0xff] }
 0x1fe   : > { %7023 = vmatprep.mubr.msk.bf16.mxu1 %vm12866_vm13, %v13971_v19  ;;  %vm13985_vm13 = vnez %v13984_v46  ;;  %v13986_v19 = vld [vmem:[#allocation110_spill] sm:$0xff]  ;;  %v13997_v46 = vld [vmem:[#allocation13_spill] sm:$0xff] }
 0x1ff   : > { %vm13987_vm14 = vnez %v13986_v19  ;;  %v11707_v19 = vpack.c.bf16 %v11461_v27, %v11461_v27 }
 0x200   : > { %vm6261_vm8 = vmpackc.low %vm13987_vm14, %vm13985_vm13 }
 0x201   : > { %13996 = vst [vmem:[#allocation28_spill] sm:$0xff] %v11707_v19 }
 0x202   : > { %6764 = vmatmul.mubr.bf16.gmra.mrb[80].mxu0 %v13980_v42 }
 0x203   : > { %6767 = vmatprep.mubr.bf16.mxu0 %v13981_v61 }
 0x205   : > { %7024 = vmatmul.mubr.msk.bf16.gmra.mrb[36].mxu1 %vm6120_vm0, %v13982_v57  ;;  %v13991_v57 = vld [vmem:[#allocation114_spill] sm:$0xff] }
 0x206   : > { %7027 = vmatprep.mubr.msk.bf16.mxu1 %vm12882_vm12, %v13983_v10  ;;  %v13995_v10 = vpack.c.bf16 %v13993_v55, %v13994_v4  ;;  %v4241_v55 = vsel %vm14001_vm10, %v11461_v27, %v14000_v1  ;;  %v7778_v1 = vld [vmem:[%s12320_s5 + $0x158] sm:$0xff]   ;;  %vm14083_vm12 = vnez %v13887_v50  ;;  %v14099_v50 = vld [vmem:[#allocation61_spill] sm:$0xff] }
 0x20a   : > { %6768 = vmatmul.mubr.bf16.gmra.mrb[84].mxu0 %v13991_v57 }
 0x20b   : > { %6771 = vmatprep.mubr.bf16.mxu0 %v13992_v48 }
 0x20d   : > { %7028 = vmatmul.mubr.msk.bf16.gmra.mrb[40].mxu1 %vm6261_vm8, %v13995_v10  ;;  %v7776_v10 = vld [vmem:[%s12320_s5 + $0x148] sm:$0xff]  }
 0x20e   : > { %7031 = vmatprep.mubr.msk.bf16.mxu1 %vm6264_vm2, %v6265_v51  ;;  %v14002_v51 = vld [vmem:[#allocation20_spill] sm:$0xff] }
 0x20f   : > { %v4246_v4 = vpack.c.bf16 %v14002_v51, %v4241_v55  ;;  %v14008_v55 = vld [vmem:[#allocation121_spill] sm:$0xff] }
 0x212   : > { %6772 = vmatmul.mubr.bf16.gmra.mrb[88].mxu0 %v13997_v46 }
 0x213   : > { %6775 = vmatprep.mubr.bf16.mxu0 %v13998_v29 }
 0x215   : > { %7032 = vmatmul.mubr.bf16.gmra.mrb[44].mxu1 %v12880_v30  ;;  %v14004_v30 = vld [vmem:[#allocation35_spill] sm:$0xff] }
 0x216   : > { %7051 = vmatprep.mubr.bf16.mxu1 %v11707_v19  ;;  %v14005_v19 = vld [vmem:[#allocation120_spill] sm:$0xff] }
 0x217   : > { %v14006_v0 = vpack.c.bf16 %v14004_v30, %v14005_v19 }
 0x21a   : > { %6776 = vmatmul.mubr.bf16.gmra.mrb[92].mxu0 %v14003_v20 }
 0x21b   : > { %6795 = vmatprep.mubr.bf16.mxu0 %v13889_v28  ;;  %v14007_v28 = vld [vmem:[#allocation12_spill] sm:$0xff] }
 0x21d   : > { %7052 = vmatmul.mubr.bf16.vlgmr.msra.gmra.mrb[0].mxu1 %v4246_v4  ;;  %v7779_v4 = vld [vmem:[%s12320_s5 + $0x160] sm:$0xff]  }
 0x21e   : > { %7100 = vmatpush3.bf16.msra.mxu1 %v11544_v39  ;;  %7055 = vmatprep.mubr.bf16.mxu1 %v14006_v0  ;;  %v7783_v39 = vld [vmem:[%s12320_s5 + $0x48] sm:$0xff]  }
 0x21f   : > { %7101 = vmatprep.subr.bf16.mxu1 %v7776_v10  ;;  %v14010_v0 = vld [vmem:[#allocation128_spill] sm:$0xff] }
 0x222   : > { %7102 = vmatpush3.bf16.msra.mxu1 %v7776_v10  ;;  %6796 = vmatmul.mubr.bf16.vlgmr.msra.gmra.mrb[48].mxu0 %v13891_v49  ;;  %v7784_v49 = vld [vmem:[%s12320_s5 + $0x50] sm:$0xff]   ;;  %v7785_v10 = vld [vmem:[%s12320_s5 + $0x58] sm:$0xff]  }
 0x223   : > { %7103 = vmatprep.subr.bf16.mxu1 %v7777_v2  ;;  %6799 = vmatprep.mubr.bf16.mxu0 %v13913_v33  ;;  %v7780_v33 = vld [vmem:[%s12320_s5 + $0x168] sm:$0xff]  }
 0x224   : > { %6844 = vmatpush3.bf16.msra.mxu0 %v11587_v12  ;;  %v14009_v12 = vld [vmem:[#allocation127_spill] sm:$0xff] }
 0x225   : > { %7056 = vmatmul.mubr.bf16.gmra.mrb[4].mxu1 %v14007_v28  ;;  %6845 = vmatprep.subr.bf16.mxu0 %v7783_v39 }
 0x226   : > { %7059 = vmatprep.mubr.bf16.mxu1 %v14008_v55  ;;  %7104 = vmatpush3.bf16.msra.mxu1 %v7777_v2  ;;  %v7782_v2 = vld [vmem:[%s12320_s5 + $0x170] sm:$0xff]  }
 0x227   : > { %7105 = vmatprep.subr.bf16.mxu1 %v7778_v1 }
 0x228   : > { %6846 = vmatpush3.bf16.msra.mxu0 %v7783_v39  ;;  %v14011_v39 = vld [vmem:[#allocation129_spill] sm:$0xff] }
 0x229   : > { %6847 = vmatprep.subr.bf16.mxu0 %v7784_v49 }
 0x22a   : > { %7106 = vmatpush3.bf16.msra.mxu1 %v7778_v1  ;;  %6800 = vmatmul.mubr.bf16.gmra.mrb[52].mxu0 %v13914_v7  ;;  %v7787_v7 = vld [vmem:[%s12320_s5 + $0x60] sm:$0xff]   ;;  %v7788_v1 = vld [vmem:[%s12320_s5 + $0x68] sm:$0xff]  }
 0x22b   : > { %7107 = vmatprep.subr.bf16.mxu1 %v7779_v4  ;;  %6803 = vmatprep.mubr.bf16.mxu0 %v13925_v54  ;;  %v7786_v54 = vld [vmem:[%s12320_s5 + $0x178] sm:$0xff]  }
 0x22c   : > { %6848 = vmatpush3.bf16.msra.mxu0 %v7784_v49  ;;  %v7790_v49 = vld [vmem:[%s12320_s5 + $0x200] sm:$0xff]  }
 0x22d   : > { %7060 = vmatmul.mubr.bf16.gmra.mrb[8].mxu1 %v14009_v12  ;;  %6849 = vmatprep.subr.bf16.mxu0 %v7785_v10 }
 0x22e   : > { %7063 = vmatprep.mubr.bf16.mxu1 %v14010_v0  ;;  %7108 = vmatpush3.bf16.msra.mxu1 %v7779_v4  ;;  %v14012_v4 = vld [vmem:[#allocation130_spill] sm:$0xff] }
 0x22f   : > { %7109 = vmatprep.subr.bf16.mxu1 %v7780_v33 }
 0x230   : > { %6850 = vmatpush3.bf16.msra.mxu0 %v7785_v10  ;;  %v14014_v10 = vld [vmem:[#allocation31_spill] sm:$0xff] }
 0x231   : > { %6851 = vmatprep.subr.bf16.mxu0 %v7787_v7 }
 0x232   : > { %7110 = vmatpush3.bf16.msra.mxu1 %v7780_v33  ;;  %6804 = vmatmul.mubr.bf16.gmra.mrb[56].mxu0 %v13926_v24  ;;  %v7789_v24 = vld [vmem:[%s12320_s5 + $0x70] sm:$0xff]  }
 0x233   : > { %7111 = vmatprep.subr.bf16.mxu1 %v7782_v2  ;;  %6807 = vmatprep.mubr.bf16.mxu0 %v13937_v38  ;;  %v7791_v38 = vld [vmem:[%s12320_s5 + $0x78] sm:$0xff]   ;;  %v14013_v33 = vld [vmem:[#allocation45_spill] sm:$0xff] }
 0x234   : > { %6852 = vmatpush3.bf16.msra.mxu0 %v7787_v7  ;;  %v14018_v7 = vld [vmem:[#allocation76_spill] sm:$0xff] }
 0x235   : > { %7064 = vmatmul.mubr.bf16.gmra.mrb[12].mxu1 %v14011_v39  ;;  %6853 = vmatprep.subr.bf16.mxu0 %v7788_v1 }
 0x236   : > { %7067 = vmatprep.mubr.bf16.mxu1 %v14012_v4  ;;  %7112 = vmatpush3.bf16.msra.mxu1 %v7782_v2  ;;  %v14015_v2 = vld [vmem:[#allocation60_spill] sm:$0xff] }
 0x237   : > { %7113 = vmatprep.subr.bf16.mxu1 %v7786_v54 }
 0x238   : > { %6854 = vmatpush3.bf16.msra.mxu0 %v7788_v1  ;;  %v14039_v1 = vld [vmem:[#allocation6_spill] sm:$0xff] }
 0x239   : > { %6855 = vmatprep.subr.bf16.mxu0 %v7789_v24 }
 0x23a   : > { %7114 = vmatpush3.bf16.msra.mxu1 %v7786_v54  ;;  %6808 = vmatmul.mubr.bf16.gmra.mrb[60].mxu0 %v13938_v63  ;;  %v14016_v63 = vld [vmem:[#allocation47_spill] sm:$0xff]  ;;  %v14019_v54 = vld [vmem:[#allocation81_spill] sm:$0xff] }
 0x23b   : > { %7163 = vmatprep.subr.bf16.mxu1 %v7790_v49  ;;  %6811 = vmatprep.mubr.bf16.mxu0 %v13949_v37  ;;  %v14017_v37 = vld [vmem:[#allocation125_spill] sm:$0xff] }
 0x23c   : > { %6856 = vmatpush3.bf16.msra.mxu0 %v7789_v24  ;;  %v14041_v24 = vpack.c.bf16 %v10967_v47, %v10939_v3  ;;  %v14046_v3 = vld [vmem:[#allocation100_spill] sm:$0xff]  ;;  %v14050_v47 = vld [vmem:[#allocation5_spill] sm:$0xff] }
 0x23d   : > { %7068 = vmatmul.mubr.bf16.gmra.mrb[16].mxu1 %v14013_v33  ;;  %6857 = vmatprep.subr.bf16.mxu0 %v7791_v38 }
 0x23e   : > { %7071 = vmatprep.mubr.bf16.mxu1 %v14014_v10 }
 0x240   : > { %6858 = vmatpush3.bf16.msra.mxu0 %v7791_v38  ;;  %v7795_v38 = vld [vmem:[%s12320_s5 + $0x220] sm:$0xff]  }
 0x242   : > { %6812 = vmatmul.mubr.bf16.gmra.mrb[64].mxu0 %v13950_v17  ;;  %v14020_v17 = vld [vmem:[#allocation135_spill] sm:$0xff] }
 0x243   : > { %6815 = vmatprep.mubr.bf16.mxu0 %v13960_v56  ;;  %v14021_v56 = vld [vmem:[#allocation136_spill] sm:$0xff] }
 0x245   : > { %7072 = vmatmul.mubr.bf16.gmra.mrb[20].mxu1 %v14015_v2 }
 0x246   : > { %7075 = vmatprep.mubr.bf16.mxu1 %v14016_v63 }
 0x24a   : > { %6816 = vmatmul.mubr.bf16.gmra.mrb[68].mxu0 %v13961_v45  ;;  %v14022_v45 = vld [vmem:[#allocation139_spill] sm:$0xff] }
 0x24b   : > { %6819 = vmatprep.mubr.bf16.mxu0 %v13968_v41  ;;  %v14023_v41 = vld [vmem:[#allocation18_spill] sm:$0xff] }
 0x24d   : > { %7076 = vmatmul.mubr.bf16.gmra.mrb[24].mxu1 %v14017_v37 }
 0x24e   : > { %7079 = vmatprep.mubr.bf16.mxu1 %v14018_v7 }
 0x252   : > { %6820 = vmatmul.mubr.bf16.gmra.mrb[72].mxu0 %v13969_v44  ;;  %v14027_v44 = vld [vmem:[#allocation7_spill] sm:$0xff] }
 0x253   : > { %6823 = vmatprep.mubr.bf16.mxu0 %v13980_v42  ;;  %v14026_v42 = vld [vmem:[#allocation11_spill] sm:$0xff] }
 0x255   : > { %7080 = vmatmul.mubr.bf16.gmra.mrb[28].mxu1 %v14019_v54 }
 0x256   : > { %7083 = vmatprep.mubr.bf16.mxu1 %v14020_v17 }
 0x25a   : > { %6824 = vmatmul.mubr.bf16.gmra.mrb[76].mxu0 %v13981_v61  ;;  %v14024_v61 = vpack.c.bf16 %v10890_v43, %v10886_v58  ;;  %v14028_v58 = vpack.c.bf16 %v14027_v44, %v14004_v30  ;;  %v14029_v43 = vmov 0.0|0.0   ;;  %v7797_v44 = vld [vmem:[%s12320_s5 + $0x230] sm:$0xff]  }
 0x25b   : > { %6827 = vmatprep.mubr.bf16.mxu0 %v13991_v57  ;;  %v4607_v57 = vpack.c.bf16 %v14005_v19, %v14002_v51  ;;  %v14031_v19 = vld [vmem:[#allocation101_spill] sm:$0xff]  ;;  %v14036_v51 = vld [vmem:[#allocation94_spill] sm:$0xff] }
 0x25c   : > { %vm14032_vm8 = vnez %v14031_v19  ;;  %vm14037_vm13 = vnez %v14036_v51  ;;  %v14070_v19 = vpack.c.bf16 %v11078_v8, %v11050_v15  ;;  %v14084_v8 = vld [vmem:[#allocation27_spill] sm:$0xff]  ;;  %v14088_v51 = vld [vmem:[#allocation38_spill] sm:$0xff] }
 0x25d   : > { %7084 = vmatmul.mubr.bf16.gmra.mrb[32].mxu1 %v14021_v56  ;;  %vm6057_vm2 = vmpackc.low %vm14032_vm8, %vm7810_vm1  ;;  %vm14047_vm8 = vnez %v14046_v3  ;;  %v14115_v3 = vld [vmem:[#allocation71_spill] sm:$0xff] }
 0x25e   : > { %7087 = vmatprep.mubr.bf16.mxu1 %v14022_v45 }
 0x262   : > { %6828 = vmatmul.mubr.bf16.gmra.mrb[80].mxu0 %v13992_v48  ;;  %v14025_v48 = vpack.c.bf16 %v11378_v40, %v10854_v16  ;;  %v14030_v16 = vpack.c.bf16 %v10947_v9, %v10906_v21  ;;  %v7793_v40 = vld [vmem:[%s12320_s5 + $0x210] sm:$0xff]   ;;  %v7794_v21 = vld [vmem:[%s12320_s5 + $0x218] sm:$0xff]  }
 0x263   : > { %6831 = vmatprep.mubr.bf16.mxu0 %v13997_v46  ;;  %v14033_v46 = vld [vmem:[#allocation10_spill] sm:$0xff] }
 0x264   : > { %v6058_v30 = vpack.c.bf16 %v14033_v46, %v13890_v62  ;;  %v14038_v9 = vld [vmem:[#allocation118_spill] sm:$0xff]  ;;  %v14042_v62 = vpack.c.bf16 %v10987_v52, %v10959_v31  ;;  %v14049_v31 = vld [vmem:[#allocation25_spill] sm:$0xff]  ;;  %v14052_v52 = vld [vmem:[#allocation15_spill] sm:$0xff] }
 0x265   : > { %7088 = vmatmul.mubr.bf16.gmra.mrb[36].mxu1 %v14023_v41  ;;  %v14071_v46 = vld [vmem:[#allocation39_spill] sm:$0xff] }
 0x266   : > { %7091 = vmatprep.mubr.bf16.mxu1 %v11343_v32 }
 0x26a   : > { %6832 = vmatmul.mubr.bf16.gmra.mrb[84].mxu0 %v13998_v29  ;;  %v14034_v29 = vld [vmem:[#allocation105_spill] sm:$0xff] }
 0x26b   : > { %6835 = vmatprep.mubr.bf16.mxu0 %v14003_v20  ;;  %v7792_v20 = vld [vmem:[%s12320_s5 + $0x208] sm:$0xff]   ;;  %vm14035_vm14 = vnez %v14034_v29  ;;  %v14074_v29 = vld [vmem:[#allocation14_spill] sm:$0xff] }
 0x26c   : > { %vm6060_vm10 = vmpackc.low %vm14037_vm13, %vm14035_vm14  ;;  %vm14051_vm14 = vnez %v14050_v47  ;;  %vm14053_vm13 = vnez %v14052_v52  ;;  %v14117_v47 = vld [vmem:[#allocation65_spill] sm:$0xff]  ;;  %v14118_v52 = vld [vmem:[#allocation56_spill] sm:$0xff] }
 0x26d   : > { %7092 = vmatmul.mubr.bf16.gmra.mrb[40].mxu1 %v11347_v13 }
 0x26e   : > { %7095 = vmatprep.mubr.bf16.mxu1 %v11386_v59 }
 0x272   : > { %6836 = vmatmul.mubr.bf16.gmra.mrb[88].mxu0 %v14024_v61  ;;  %v7796_v61 = vld [vmem:[%s12320_s5 + $0x228] sm:$0xff]  }
 0x273   : > { %6839 = vmatprep.mubr.bf16.mxu0 %v14025_v48  ;;  %v14044_v48 = vld [vmem:[#allocation3_spill] sm:$0xff] }
 0x274   : > { %vm14045_vm1 = vnez %v14044_v48  ;;  %v14114_v48 = vld [vmem:[#allocation132_spill] sm:$0xff] }
 0x275   : > { %7096 = vmatmul.mubr.bf16.gmra.mrb[44].mxu1 %v11415_v26 }
 0x276   : > { %7115 = vmatprep.mubr.bf16.mxu1 %v4607_v57  ;;  %v14043_v57 = vld [vmem:[#allocation34_spill] sm:$0xff] }
 0x27a   : > { %6840 = vmatmul.mubr.bf16.gmra.mrb[92].mxu0 %v14026_v42  ;;  %v14056_v42 = vpack.c.bf16 %v11031_v6, %v10995_v35  ;;  %v14063_v6 = vld [vmem:[#allocation24_spill] sm:$0xff]  ;;  %v14064_v35 = vld [vmem:[#allocation19_spill] sm:$0xff] }
 0x27b   : > { %6859 = vmatprep.mubr.bf16.mxu0 %v14029_v43  ;;  %v14057_v43 = vld [vmem:[#allocation22_spill] sm:$0xff] }
 0x27d   : > { %7116 = vmatmul.mubr.bf16.vlgmr.msra.gmra.mrb[0].mxu1 %v14028_v58  ;;  %v7798_v58 = vld [vmem:[%s12320_s5 + $0x238] sm:$0xff]  }
 0x27e   : > { %7164 = vmatpush3.bf16.msra.mxu1 %v7790_v49  ;;  %7119 = vmatprep.mubr.bf16.mxu1 %v14030_v16  ;;  %v14040_v49 = vpack.c.bf16 %v14038_v9, %v14039_v1  ;;  %v14058_v16 = vld [vmem:[#allocation32_spill] sm:$0xff]  ;;  %v14100_v1 = vld [vmem:[#allocation30_spill] sm:$0xff] }
 0x27f   : > { %7165 = vmatprep.subr.bf16.mxu1 %v7792_v20 }
 0x282   : > { %7166 = vmatpush3.bf16.msra.mxu1 %v7792_v20  ;;  %6860 = vmatmul.mubr.msk.bf16.vlgmr.msra.gmra.mrb[48].mxu0 %vm6057_vm2, %v6058_v30  ;;  %vm14048_vm2 = vmpackc.low %vm14045_vm1, %vm14047_vm8  ;;  %v14055_v20 = vpack.c.bf16 %v11003_v18, %v10975_v53  ;;  %vm14059_vm1 = vnez %v14058_v16  ;;  %v14060_v53 = vld [vmem:[#allocation4_spill] sm:$0xff]  ;;  %v14066_v18 = vld [vmem:[#allocation23_spill] sm:$0xff] }
 0x283   : > { %7167 = vmatprep.subr.bf16.mxu1 %v7793_v40  ;;  %6863 = vmatprep.mubr.msk.bf16.mxu0 %vm6060_vm10, %v14040_v49  ;;  %vm14054_vm10 = vmpackc.low %vm14051_vm14, %vm14053_vm13  ;;  %vm14061_vm8 = vnez %v14060_v53  ;;  %vm14065_vm14 = vnez %v14064_v35  ;;  %vm14067_vm13 = vnez %v14066_v18  ;;  %v14072_v30 = vld [vmem:[#allocation36_spill] sm:$0xff]  ;;  %v14102_v49 = vld [vmem:[#allocation26_spill] sm:$0xff] }
 0x284   : > { %v14130_v16 = vld [vmem:[#allocation72_spill] sm:$0xff]  ;;  %v14133_v35 = vld [vmem:[#allocation133_spill] sm:$0xff] }
 0x285   : > { %7120 = vmatmul.mubr.bf16.gmra.mrb[4].mxu1 %v14041_v24  ;;  %v14106_v24 = vld [vmem:[#allocation41_spill] sm:$0xff] }
 0x286   : > { %7123 = vmatprep.mubr.bf16.mxu1 %v14042_v62  ;;  %7168 = vmatpush3.bf16.msra.mxu1 %v7793_v40  ;;  %v14069_v40 = vpack.c.bf16 %v11058_v5, %v11023_v25  ;;  %v14080_v5 = vpack.c.bf16 %v11094_v36, %v11066_v22  ;;  %v14081_v25 = vld [vmem:[#allocation54_spill] sm:$0xff]  ;;  %v14094_v36 = vld [vmem:[#allocation49_spill] sm:$0xff] }
 0x287   : > { %7169 = vmatprep.subr.bf16.mxu1 %v7794_v21  ;;  %v14082_v15 = vpack.c.bf16 %v11134_v60, %v14081_v25  ;;  %v14093_v22 = vld [vmem:[#allocation58_spill] sm:$0xff]  ;;  %v14096_v60 = vld [vmem:[#allocation73_spill] sm:$0xff] }
 0x288   : > { %v14108_v62 = vld [vmem:[#allocation53_spill] sm:$0xff] }
 0x289   : > { %v14145_v25 = vld [vmem:[#allocation141_spill] sm:$0xff] }
 0x28a   : > { %7170 = vmatpush3.bf16.msra.mxu1 %v7794_v21  ;;  %6864 = vmatmul.mubr.msk.bf16.gmra.mrb[52].mxu0 %vm14048_vm2, %v14043_v57  ;;  %vm14062_vm2 = vmpackc.low %vm14059_vm1, %vm14061_vm8  ;;  %vm14073_vm1 = vnez %v14072_v30  ;;  %vm14075_vm8 = vnez %v14074_v29  ;;  %v14097_v21 = vld [vmem:[#allocation50_spill] sm:$0xff]  ;;  %v14141_v30 = vld [vmem:[#allocation84_spill] sm:$0xff] }
 0x28b   : > { %7171 = vmatprep.subr.bf16.mxu1 %v7795_v38  ;;  %6867 = vmatprep.mubr.msk.bf16.mxu0 %vm14054_vm10, %v14049_v31  ;;  %vm14068_vm10 = vmpackc.low %vm14065_vm14, %vm14067_vm13  ;;  %vm14077_vm14 = vnez %v13883_v14  ;;  %vm14078_vm13 = vnez %v13881_v23  ;;  %v14087_v14 = vld [vmem:[#allocation124_spill] sm:$0xff]  ;;  %v14098_v9 = vpack.c.bf16 %v14096_v60, %v14097_v21  ;;  %v14116_v31 = vpack.c.bf16 %v14114_v48, %v14115_v3  ;;  %v14155_v60 = vld [vmem:[#allocation102_spill] sm:$0xff] }
 0x28c   : > { %v14090_v23 = vld [vmem:[#allocation40_spill] sm:$0xff]  ;;  %v14156_v21 = vld [vmem:[#allocation78_spill] sm:$0xff]  ;;  %v14173_v48 = vld [vmem:[#allocation91_spill] sm:$0xff] }
 0x28d   : > { %7124 = vmatmul.mubr.bf16.gmra.mrb[8].mxu1 %v14055_v20  ;;  %v14120_v20 = vld [vmem:[#allocation44_spill] sm:$0xff]  ;;  %v14174_v3 = vld [vmem:[#allocation75_spill] sm:$0xff] }
 0x28e   : > { %7127 = vmatprep.mubr.bf16.mxu1 %v14056_v42  ;;  %7172 = vmatpush3.bf16.msra.mxu1 %v7795_v38  ;;  %v14111_v38 = vld [vmem:[#allocation131_spill] sm:$0xff]  ;;  %v14123_v42 = vld [vmem:[#allocation126_spill] sm:$0xff] }
 0x28f   : > { %7173 = vmatprep.subr.bf16.mxu1 %v7796_v61 }
 0x292   : > { %7174 = vmatpush3.bf16.msra.mxu1 %v7796_v61  ;;  %6868 = vmatmul.mubr.msk.bf16.gmra.mrb[56].mxu0 %vm14062_vm2, %v14057_v43  ;;  %vm14076_vm2 = vmpackc.low %vm14073_vm1, %vm14075_vm8  ;;  %vm14085_vm1 = vnez %v14084_v8  ;;  %v14112_v61 = vld [vmem:[#allocation69_spill] sm:$0xff]  ;;  %v14129_v43 = vld [vmem:[#allocation134_spill] sm:$0xff] }
 0x293   : > { %7175 = vmatprep.subr.bf16.mxu1 %v7797_v44  ;;  %6871 = vmatprep.mubr.msk.bf16.mxu0 %vm14068_vm10, %v14063_v6  ;;  %vm14079_vm10 = vmpackc.low %vm14077_vm14, %vm14078_vm13  ;;  %vm14091_vm14 = vnez %v14090_v23  ;;  %v14113_v57 = vpack.c.bf16 %v14111_v38, %v14112_v61  ;;  %v14131_v53 = vpack.c.bf16 %v14129_v43, %v14130_v16  ;;  %v14132_v6 = vld [vmem:[#allocation138_spill] sm:$0xff]  ;;  %v14168_v61 = vld [vmem:[#allocation95_spill] sm:$0xff] }
 0x294   : > { %vm14086_vm8 = vmpackc.low %vm14083_vm12, %vm14085_vm1  ;;  %vm14103_vm12 = vnez %v14102_v49  ;;  %v14134_v18 = vpack.c.bf16 %v14132_v6, %v14133_v35  ;;  %v14167_v38 = vld [vmem:[#allocation90_spill] sm:$0xff]  ;;  %v14185_v43 = vld [vmem:[#allocation111_spill] sm:$0xff] }
 0x295   : > { %7128 = vmatmul.mubr.bf16.gmra.mrb[12].mxu1 %v14069_v40  ;;  %v14135_v40 = vld [vmem:[#allocation83_spill] sm:$0xff]  ;;  %v14186_v16 = vld [vmem:[#allocation88_spill] sm:$0xff]  ;;  %v14191_v6 = vld [vmem:[#allocation113_spill] sm:$0xff] }
 0x296   : > { %7131 = vmatprep.mubr.bf16.mxu1 %v14070_v19  ;;  %7176 = vmatpush3.bf16.msra.mxu1 %v7797_v44  ;;  %v14124_v44 = vld [vmem:[#allocation55_spill] sm:$0xff] }
 0x297   : > { %7177 = vmatprep.subr.bf16.mxu1 %v7798_v58  ;;  %v14136_v19 = vld [vmem:[#allocation63_spill] sm:$0xff] }
 0x29a   : > { %7178 = vmatpush3.bf16.msra.mxu1 %v7798_v58  ;;  %6872 = vmatmul.mubr.msk.bf16.gmra.mrb[60].mxu0 %vm14076_vm2, %v14071_v46  ;;  %vm14089_vm2 = vnez %v14088_v51  ;;  %v14126_v58 = vld [vmem:[#allocation59_spill] sm:$0xff]  ;;  %v14138_v46 = vld [vmem:[#allocation48_spill] sm:$0xff] }
 0x29b   : > { %6875 = vmatprep.mubr.msk.bf16.mxu0 %vm14079_vm10, %v13892_v11  ;;  %vm14092_vm13 = vmpackc.low %vm14089_vm2, %vm14091_vm14  ;;  %v14095_v11 = vpack.c.bf16 %v14093_v22, %v14094_v36  ;;  %vm14101_vm10 = vnez %v14100_v1  ;;  %vm14109_vm2 = vnez %v14108_v62  ;;  %v14149_v51 = vld [vmem:[#allocation140_spill] sm:$0xff]  ;;  %v14151_v22 = vld [vmem:[#allocation97_spill] sm:$0xff] }
 0x29c   : > { %vm14104_vm1 = vmpackc.low %vm14101_vm10, %vm14103_vm12  ;;  %vm14121_vm10 = vnez %v14120_v20  ;;  %v14162_v1 = vld [vmem:[#allocation142_spill] sm:$0xff] }
 0x29d   : > { %7132 = vmatmul.mubr.bf16.gmra.mrb[16].mxu1 %v14080_v5 }
 0x29e   : > { %7135 = vmatprep.mubr.bf16.mxu1 %v14082_v15  ;;  %v14146_v15 = vld [vmem:[#allocation137_spill] sm:$0xff] }
 0x29f   : > { %v14147_v8 = vpack.c.bf16 %v14145_v25, %v14146_v15 }
 0x2a2   : > { %6876 = vmatmul.mubr.msk.bf16.gmra.mrb[64].mxu0 %vm14086_vm8, %v13896_v34  ;;  %v14105_v34 = vld [vmem:[#allocation51_spill] sm:$0xff]  ;;  %vm14107_vm8 = vnez %v14106_v24 }
 0x2a3   : > { %6879 = vmatprep.mubr.msk.bf16.mxu0 %vm14092_vm13, %v14087_v14  ;;  %vm14110_vm14 = vmpackc.low %vm14107_vm8, %vm14109_vm2  ;;  %vm14119_vm13 = vnez %v14118_v52  ;;  %vm14127_vm8 = vnez %v14126_v58  ;;  %v14148_v14 = vld [vmem:[#allocation16_spill] sm:$0xff]  ;;  %v14165_v24 = vld [vmem:[#allocation143_spill] sm:$0xff] }
 0x2a4   : > { %vm14122_vm12 = vmpackc.low %vm14119_vm13, %vm14121_vm10  ;;  %vm14139_vm13 = vnez %v14138_v46  ;;  %v14150_v23 = vpack.c.bf16 %v14148_v14, %v14149_v51  ;;  %v14180_v52 = vld [vmem:[#allocation8_spill] sm:$0xff] }
 0x2a5   : > { %7136 = vmatmul.mubr.bf16.gmra.mrb[20].mxu1 %v14095_v11 }
 0x2a6   : > { %7139 = vmatprep.mubr.bf16.mxu1 %v14098_v9  ;;  %v14158_v9 = vld [vmem:[#allocation82_spill] sm:$0xff] }
 0x2aa   : > { %6880 = vmatmul.mubr.msk.bf16.gmra.mrb[68].mxu0 %vm14104_vm1, %v14099_v50  ;;  %vm14125_vm1 = vnez %v14124_v44  ;;  %v14161_v50 = vld [vmem:[#allocation144_spill] sm:$0xff] }
 0x2ab   : > { %6883 = vmatprep.mubr.msk.bf16.mxu0 %vm14110_vm14, %v14105_v34  ;;  %vm14128_vm2 = vmpackc.low %vm14125_vm1, %vm14127_vm8  ;;  %vm14137_vm14 = vnez %v14136_v19  ;;  %vm14157_vm8 = vnez %v14156_v21  ;;  %v14163_v49 = vpack.c.bf16 %v14161_v50, %v14162_v1  ;;  %v14164_v34 = vld [vmem:[#allocation122_spill] sm:$0xff]  ;;  %v14183_v44 = vld [vmem:[#allocation64_spill] sm:$0xff] }
 0x2ac   : > { %vm14140_vm10 = vmpackc.low %vm14137_vm14, %vm14139_vm13  ;;  %v14166_v62 = vpack.c.bf16 %v14164_v34, %v14165_v24  ;;  %vm14175_vm14 = vnez %v14174_v3  ;;  %v14195_v19 = vld [vmem:[#allocation33_spill] sm:$0xff] }
 0x2ad   : > { %7140 = vmatmul.mubr.bf16.gmra.mrb[24].mxu1 %v14113_v57  ;;  %vm14154_vm1 = vmpackc.low %vm13948_vm9, %vm13946_vm5  ;;  %v14170_v57 = vld [vmem:[#allocation70_spill] sm:$0xff] }
 0x2ae   : > { %7143 = vmatprep.mubr.bf16.mxu1 %v14116_v31  ;;  %vm14171_vm9 = vnez %v14170_v57  ;;  %v14176_v31 = vld [vmem:[#allocation98_spill] sm:$0xff] }
 0x2af   : > { %vm14177_vm13 = vnez %v14176_v31 }
 0x2b2   : > { %6884 = vmatmul.mubr.msk.bf16.gmra.mrb[72].mxu0 %vm14122_vm12, %v14117_v47  ;;  %vm14144_vm12 = vmpackc.low %vm13944_vm7, %vm13942_vm4  ;;  %vm14159_vm4 = vnez %v14158_v9  ;;  %v14179_v47 = vld [vmem:[#allocation145_spill] sm:$0xff] }
 0x2b3   : > { %6887 = vmatprep.mubr.msk.bf16.mxu0 %vm14128_vm2, %v14123_v42  ;;  %vm14160_vm7 = vmpackc.low %vm14157_vm8, %vm14159_vm4  ;;  %vm14169_vm2 = vnez %v14168_v61  ;;  %v14181_v20 = vpack.c.bf16 %v14179_v47, %v14180_v52  ;;  %v14182_v42 = vld [vmem:[#allocation37_spill] sm:$0xff] }
 0x2b4   : > { %vm14172_vm5 = vmpackc.low %vm14169_vm2, %vm14171_vm9  ;;  %v14184_v58 = vpack.c.bf16 %v14182_v42, %v14183_v44 }
 0x2b5   : > { %7144 = vmatmul.mubr.bf16.gmra.mrb[28].mxu1 %v14131_v53  ;;  %v14188_v53 = vld [vmem:[#allocation89_spill] sm:$0xff]  ;;  %vm14200_vm4 = vmpackc.low %vm13979_vm3, %vm13977_vm6  ;;  %vm5518_vm6 = vcmask 27648  }
 0x2b6   : > { %7147 = vmatprep.mubr.bf16.mxu1 %v14134_v18 }
 0x2ba   : > { %6888 = vmatmul.mubr.msk.bf16.gmra.mrb[76].mxu0 %vm14140_vm10, %v14135_v40  ;;  %vm14178_vm10 = vmpackc.low %vm14175_vm14, %vm14177_vm13  ;;  %v14194_v40 = vld [vmem:[#allocation21_spill] sm:$0xff] }
 0x2bb   : > { %6891 = vmatprep.mubr.msk.bf16.mxu0 %vm14144_vm12, %v14141_v30  ;;  %vm14187_vm12 = vnez %v14186_v16  ;;  %v14196_v46 = vpack.c.bf16 %v14194_v40, %v14195_v19  ;;  %v14197_v30 = vld [vmem:[#allocation104_spill] sm:$0xff] }
 0x2bd   : > { %7148 = vmatmul.mubr.bf16.gmra.mrb[32].mxu1 %v14147_v8 }
 0x2be   : > { %7151 = vmatprep.mubr.bf16.mxu1 %v14150_v23 }
 0x2c2   : > { %6892 = vmatmul.mubr.msk.bf16.gmra.mrb[80].mxu0 %vm14154_vm1, %v14151_v22  ;;  %vm14189_vm1 = vnez %v14188_v53 }
 0x2c3   : > { %6895 = vmatprep.mubr.msk.bf16.mxu0 %vm14160_vm7, %v14155_v60  ;;  %vm14190_vm8 = vmpackc.low %vm14187_vm12, %vm14189_vm1 }
 0x2c5   : > { %7152 = vmatmul.mubr.bf16.gmra.mrb[36].mxu1 %v14163_v49 }
 0x2c6   : > { %7155 = vmatprep.mubr.bf16.mxu1 %v14166_v62 }
 0x2ca   : > { %6896 = vmatmul.mubr.msk.bf16.gmra.mrb[84].mxu0 %vm14172_vm5, %v14167_v38 }
 0x2cb   : > { %6899 = vmatprep.mubr.msk.bf16.mxu0 %vm14178_vm10, %v14173_v48 }
 0x2cd   : > { %7156 = vmatmul.mubr.bf16.gmra.mrb[40].mxu1 %v14181_v20 }
 0x2ce   : > { %7159 = vmatprep.mubr.bf16.mxu1 %v14184_v58 }
 0x2d2   : > { %6900 = vmatmul.mubr.msk.bf16.gmra.mrb[88].mxu0 %vm14190_vm8, %v14185_v43 }
 0x2d3   : > { %6903 = vmatprep.mubr.msk.bf16.mxu0 %vm6120_vm0, %v14191_v6 }
 0x2d5   : > { %7160 = vmatmul.mubr.bf16.gmra.mrb[44].mxu1 %v14196_v46 }
 0x2d6   : > { %7179 = vmatprep.mubr.bf16.mxu1 %v14007_v28  ;;  %v4970_v28 = vpack.c.bf16 %v11461_v27, %v14194_v40 }
 0x2da   : > { %6904 = vmatmul.mubr.msk.bf16.gmra.mrb[92].mxu0 %vm14200_vm4, %v14197_v30 }
 0x2dd   : > { %7180 = vmatmul.mubr.bf16.vlgmr.msra.gmra.mrb[0].mxu1 %v14008_v55  ;;  %v14201_v55 = vpack.c.bf16 %v14195_v19, %v14182_v42 }
 0x2de   : > { %7183 = vmatprep.mubr.bf16.mxu1 %v14009_v12  ;;  %v14202_v12 = vld [vmem:[#allocation28_spill] sm:$0xff] }
 0x2e5   : > { %7184 = vmatmul.mubr.bf16.gmra.mrb[4].mxu1 %v14010_v0 }
 0x2e6   : > { %7187 = vmatprep.mubr.bf16.mxu1 %v14011_v39 }
 0x2ed   : > { %7188 = vmatmul.mubr.bf16.gmra.mrb[8].mxu1 %v14012_v4 }
 0x2ee   : > { %7191 = vmatprep.mubr.bf16.mxu1 %v14013_v33 }
 0x2f5   : > { %7192 = vmatmul.mubr.bf16.gmra.mrb[12].mxu1 %v14014_v10 }
 0x2f6   : > { %7195 = vmatprep.mubr.bf16.mxu1 %v14015_v2 }
 0x2fd   : > { %7196 = vmatmul.mubr.bf16.gmra.mrb[16].mxu1 %v14016_v63 }
 0x2fe   : > { %7199 = vmatprep.mubr.bf16.mxu1 %v14017_v37 }
 0x305   : > { %7200 = vmatmul.mubr.bf16.gmra.mrb[20].mxu1 %v14018_v7 }
 0x306   : > { %7203 = vmatprep.mubr.bf16.mxu1 %v14019_v54 }
 0x30d   : > { %7204 = vmatmul.mubr.bf16.gmra.mrb[24].mxu1 %v14020_v17 }
 0x30e   : > { %7207 = vmatprep.mubr.bf16.mxu1 %v14021_v56 }
 0x315   : > { %7208 = vmatmul.mubr.bf16.gmra.mrb[28].mxu1 %v14022_v45 }
 0x316   : > { %7211 = vmatprep.mubr.bf16.mxu1 %v14023_v41 }
 0x31d   : > { %7212 = vmatmul.mubr.bf16.gmra.mrb[32].mxu1 %v11343_v32 }
 0x31e   : > { %7215 = vmatprep.mubr.bf16.mxu1 %v11347_v13 }
 0x325   : > { %7216 = vmatmul.mubr.bf16.gmra.mrb[36].mxu1 %v11386_v59 }
 0x326   : > { %7219 = vmatprep.mubr.bf16.mxu1 %v11415_v26 }
 0x32d   : > { %7220 = vmatmul.mubr.bf16.gmra.mrb[40].mxu1 %v14201_v55 }
 0x32e   : > { %7223 = vmatprep.mubr.bf16.mxu1 %v4970_v28 }
 0x335   : > { %7224 = vmatmul.mubr.bf16.gmra.mrb[44].mxu1 %v14202_v12 }
 0x355   : > { %v6861_v0 = vpop.f32.mrb[48].mxu0 }
 0x356   : > { %v3194_v39 = vpop.f32.mrb[49].mxu0 }
 0x357   : > { %v6862_v4 = vpop.f32.mrb[50].mxu0 }
 0x358   : > { %v3197_v32 = vpop.f32.mrb[51].mxu0 }
 0x35d   : > { %v12077_v33 = vpop.f32.mrb[52].mxu0 }
 0x35e   : > { %v12079_v13 = vpop.f32.mrb[53].mxu0 }
 0x35f   : > { %v12081_v59 = vpop.f32.mrb[54].mxu0 }
 0x360   : > { %v12083_v26 = vpop.f32.mrb[55].mxu0 }
 0x365   : > { %v12085_v27 = vpop.f32.mrb[56].mxu0 }
 0x366   : > { %v12087_v10 = vpop.f32.mrb[57].mxu0 }
 0x367   : > { %v12089_v2 = vpop.f32.mrb[58].mxu0 }
 0x368   : > { %v12091_v63 = vpop.f32.mrb[59].mxu0 }
 0x36d   : > { %v12093_v37 = vpop.f32.mrb[60].mxu0 }
 0x36e   : > { %v12095_v7 = vpop.f32.mrb[61].mxu0 }
 0x36f   : > { %v12097_v54 = vpop.f32.mrb[62].mxu0 }
 0x370   : > { %v12099_v17 = vpop.f32.mrb[63].mxu0 }
 0x375   : > { %v12101_v56 = vpop.f32.mrb[64].mxu0 }
 0x376   : > { %v12103_v45 = vpop.f32.mrb[65].mxu0 }
 0x377   : > { %v12105_v41 = vpop.f32.mrb[66].mxu0 }
 0x378   : > { %v12107_v25 = vpop.f32.mrb[67].mxu0 }
 0x37d   : > { %v12109_v15 = vpop.f32.mrb[68].mxu0 }
 0x37e   : > { %v12111_v8 = vpop.f32.mrb[69].mxu0 }
 0x37f   : > { %v12113_v14 = vpop.f32.mrb[70].mxu0 }
 0x380   : > { %v12115_v51 = vpop.f32.mrb[71].mxu0 }
 0x385   : > { %v12117_v23 = vpop.f32.mrb[72].mxu0 }
 0x386   : > { %v12119_v22 = vpop.f32.mrb[73].mxu0 }
 0x387   : > { %v12121_v36 = vpop.f32.mrb[74].mxu0 }
 0x388   : > { %v12123_v11 = vpop.f32.mrb[75].mxu0 }
 0x38d   : > { %v12125_v60 = vpop.f32.mrb[76].mxu0 }
 0x38e   : > { %v12127_v21 = vpop.f32.mrb[77].mxu0 }
 0x38f   : > { %v12129_v9 = vpop.f32.mrb[78].mxu0 }
 0x390   : > { %v12131_v50 = vpop.f32.mrb[79].mxu0 }
 0x395   : > { %v12133_v1 = vpop.f32.mrb[80].mxu0 }
 0x396   : > { %v12135_v49 = vpop.f32.mrb[81].mxu0 }
 0x397   : > { %v12137_v34 = vpop.f32.mrb[82].mxu0 }
 0x398   : > { %v12139_v24 = vpop.f32.mrb[83].mxu0 }
 0x39d   : > { %v12141_v62 = vpop.f32.mrb[84].mxu0 }
 0x39e   : > { %v12143_v38 = vpop.f32.mrb[85].mxu0 }
 0x39f   : > { %v12145_v61 = vpop.f32.mrb[86].mxu0 }
 0x3a0   : > { %v12147_v57 = vpop.f32.mrb[87].mxu0 }
 0x3a5   : > { %v12149_v48 = vpop.f32.mrb[88].mxu0 }
 0x3a6   : > { %v12151_v3 = vpop.f32.mrb[89].mxu0 }
 0x3a7   : > { %v12153_v31 = vpop.f32.mrb[90].mxu0 }
 0x3a8   : > { %v12155_v47 = vpop.f32.mrb[91].mxu0 }
 0x3ad   : > { %v12157_v52 = vpop.f32.mrb[92].mxu0 }
 0x3ae   : > { %v12159_v20 = vpop.f32.mrb[93].mxu0 }
 0x3af   : > { %v12161_v44 = vpop.f32.mrb[94].mxu0 }
 0x3b0   : > { %v7181_v42 = vpop.f32.mrb[0].mxu1  ;;  %v12170_v16 = vpop.f32.mrb[95].mxu0 }
 0x3b1   : > { %v7227_v58 = vadd.f32 %v7181_v42, %v6861_v0  ;;  %v5071_v43 = vpop.f32.mrb[1].mxu1 }
 0x3b2   : > { %v7228_v53 = vadd.f32 %v5071_v43, %v3194_v39  ;;  %v7182_v6 = vpop.f32.mrb[2].mxu1 }
 0x3b3   : > { %v5892_v35 = vpack.c.bf16 %v7227_v58, %v7227_v58  ;;  %v7229_v18 = vadd.f32 %v7182_v6, %v6862_v4  ;;  %v5074_v40 = vpop.f32.mrb[3].mxu1 }
 0x3b4   : > { %v5890_v19 = vpack.c.bf16 %v7228_v53, %v7228_v53  ;;  %v7230_v46 = vadd.f32 %v5074_v40, %v3197_v32 }
 0x3b5   : > { %5521 = vst.msk [vmem:[%s12168_s7 + $0x8] sm:$0xf] %vm5518_vm6, %v5892_v35  ;;  %v5893_v30 = vpack.c.bf16 %v7229_v18, %v7229_v18 }
 0x3b6   : > { %5519 = vst.msk [vmem:[%s12168_s7] sm:$0xf] %vm5518_vm6, %v5890_v19  ;;  %v5891_v29 = vpack.c.bf16 %v7230_v46, %v7230_v46 }
 0x3b7   : > { %5522 = vst.msk [vmem:[%s12168_s7 + $0xc] sm:$0xf] %vm5518_vm6, %v5893_v30 }
 0x3b8   : > { %5520 = vst.msk [vmem:[%s12168_s7 + $0x4] sm:$0xf] %vm5518_vm6, %v5891_v29  ;;  %v7185_v5 = vpop.f32.mrb[4].mxu1 }
 0x3b9   : > { %v7231_v28 = vadd.f32 %v7185_v5, %v12077_v33  ;;  %v5087_v55 = vpop.f32.mrb[5].mxu1 }
 0x3ba   : > { %v7232_v12 = vadd.f32 %v5087_v55, %v12079_v13  ;;  %v7186_v0 = vpop.f32.mrb[6].mxu1 }
 0x3bb   : > { %v5896_v39 = vpack.c.bf16 %v7231_v28, %v7231_v28  ;;  %v7233_v4 = vadd.f32 %v7186_v0, %v12081_v59  ;;  %v5090_v32 = vpop.f32.mrb[7].mxu1 }
 0x3bc   : > { %v5894_v42 = vpack.c.bf16 %v7232_v12, %v7232_v12  ;;  %v7234_v58 = vadd.f32 %v5090_v32, %v12083_v26 }
 0x3bd   : > { %5525 = vst.msk [vmem:[%s12168_s7 + $0x18] sm:$0xf] %vm5518_vm6, %v5896_v39  ;;  %v5897_v43 = vpack.c.bf16 %v7233_v4, %v7233_v4 }
 0x3be   : > { %5523 = vst.msk [vmem:[%s12168_s7 + $0x10] sm:$0xf] %vm5518_vm6, %v5894_v42  ;;  %v5895_v53 = vpack.c.bf16 %v7234_v58, %v7234_v58 }
 0x3bf   : > { %5526 = vst.msk [vmem:[%s12168_s7 + $0x1c] sm:$0xf] %vm5518_vm6, %v5897_v43 }
 0x3c0   : > { %5524 = vst.msk [vmem:[%s12168_s7 + $0x14] sm:$0xf] %vm5518_vm6, %v5895_v53  ;;  %v7189_v33 = vpop.f32.mrb[8].mxu1 }
 0x3c1   : > { %v7235_v13 = vadd.f32 %v7189_v33, %v12085_v27  ;;  %v5103_v59 = vpop.f32.mrb[9].mxu1 }
 0x3c2   : > { %v7236_v26 = vadd.f32 %v5103_v59, %v12087_v10  ;;  %v7190_v6 = vpop.f32.mrb[10].mxu1 }
 0x3c3   : > { %v5900_v35 = vpack.c.bf16 %v7235_v13, %v7235_v13  ;;  %v7237_v18 = vadd.f32 %v7190_v6, %v12089_v2  ;;  %v5106_v40 = vpop.f32.mrb[11].mxu1 }
 0x3c4   : > { %v5898_v19 = vpack.c.bf16 %v7236_v26, %v7236_v26  ;;  %v7238_v46 = vadd.f32 %v5106_v40, %v12091_v63 }
 0x3c5   : > { %5529 = vst.msk [vmem:[%s12168_s7 + $0x28] sm:$0xf] %vm5518_vm6, %v5900_v35  ;;  %v5901_v30 = vpack.c.bf16 %v7237_v18, %v7237_v18 }
 0x3c6   : > { %5527 = vst.msk [vmem:[%s12168_s7 + $0x20] sm:$0xf] %vm5518_vm6, %v5898_v19  ;;  %v5899_v29 = vpack.c.bf16 %v7238_v46, %v7238_v46 }
 0x3c7   : > { %5530 = vst.msk [vmem:[%s12168_s7 + $0x2c] sm:$0xf] %vm5518_vm6, %v5901_v30 }
 0x3c8   : > { %5528 = vst.msk [vmem:[%s12168_s7 + $0x24] sm:$0xf] %vm5518_vm6, %v5899_v29  ;;  %v7193_v27 = vpop.f32.mrb[12].mxu1 }
 0x3c9   : > { %v7239_v10 = vadd.f32 %v7193_v27, %v12093_v37  ;;  %v5119_v2 = vpop.f32.mrb[13].mxu1 }
 0x3ca   : > { %v7240_v63 = vadd.f32 %v5119_v2, %v12095_v7  ;;  %v7194_v5 = vpop.f32.mrb[14].mxu1 }
 0x3cb   : > { %v5904_v28 = vpack.c.bf16 %v7239_v10, %v7239_v10  ;;  %v7241_v55 = vadd.f32 %v7194_v5, %v12097_v54  ;;  %v5122_v12 = vpop.f32.mrb[15].mxu1 }
 0x3cc   : > { %v5902_v0 = vpack.c.bf16 %v7240_v63, %v7240_v63  ;;  %v7242_v39 = vadd.f32 %v5122_v12, %v12099_v17 }
 0x3cd   : > { %5533 = vst.msk [vmem:[%s12168_s7 + $0x38] sm:$0xf] %vm5518_vm6, %v5904_v28  ;;  %v5905_v4 = vpack.c.bf16 %v7241_v55, %v7241_v55 }
 0x3ce   : > { %5531 = vst.msk [vmem:[%s12168_s7 + $0x30] sm:$0xf] %vm5518_vm6, %v5902_v0  ;;  %v5903_v32 = vpack.c.bf16 %v7242_v39, %v7242_v39 }
 0x3cf   : > { %5534 = vst.msk [vmem:[%s12168_s7 + $0x3c] sm:$0xf] %vm5518_vm6, %v5905_v4 }
 0x3d0   : > { %5532 = vst.msk [vmem:[%s12168_s7 + $0x34] sm:$0xf] %vm5518_vm6, %v5903_v32  ;;  %v7197_v37 = vpop.f32.mrb[16].mxu1 }
 0x3d1   : > { %v7243_v7 = vadd.f32 %v7197_v37, %v12101_v56  ;;  %v5135_v54 = vpop.f32.mrb[17].mxu1 }
 0x3d2   : > { %v7244_v17 = vadd.f32 %v5135_v54, %v12103_v45  ;;  %v7198_v42 = vpop.f32.mrb[18].mxu1 }
 0x3d3   : > { %v5908_v58 = vpack.c.bf16 %v7243_v7, %v7243_v7  ;;  %v7245_v43 = vadd.f32 %v7198_v42, %v12105_v41  ;;  %v5138_v53 = vpop.f32.mrb[19].mxu1 }
 0x3d4   : > { %v5906_v33 = vpack.c.bf16 %v7244_v17, %v7244_v17  ;;  %v7246_v13 = vadd.f32 %v5138_v53, %v12107_v25 }
 0x3d5   : > { %5537 = vst.msk [vmem:[%s12168_s7 + $0x48] sm:$0xf] %vm5518_vm6, %v5908_v58  ;;  %v5909_v59 = vpack.c.bf16 %v7245_v43, %v7245_v43 }
 0x3d6   : > { %5535 = vst.msk [vmem:[%s12168_s7 + $0x40] sm:$0xf] %vm5518_vm6, %v5906_v33  ;;  %v5907_v26 = vpack.c.bf16 %v7246_v13, %v7246_v13 }
 0x3d7   : > { %5538 = vst.msk [vmem:[%s12168_s7 + $0x4c] sm:$0xf] %vm5518_vm6, %v5909_v59 }
 0x3d8   : > { %5536 = vst.msk [vmem:[%s12168_s7 + $0x44] sm:$0xf] %vm5518_vm6, %v5907_v26  ;;  %v7201_v56 = vpop.f32.mrb[20].mxu1 }
 0x3d9   : > { %v7247_v45 = vadd.f32 %v7201_v56, %v12109_v15  ;;  %v5151_v41 = vpop.f32.mrb[21].mxu1 }
 0x3da   : > { %v7248_v25 = vadd.f32 %v5151_v41, %v12111_v8  ;;  %v7202_v6 = vpop.f32.mrb[22].mxu1 }
 0x3db   : > { %v5912_v35 = vpack.c.bf16 %v7247_v45, %v7247_v45  ;;  %v7249_v18 = vadd.f32 %v7202_v6, %v12113_v14  ;;  %v5154_v40 = vpop.f32.mrb[23].mxu1 }
 0x3dc   : > { %v5910_v19 = vpack.c.bf16 %v7248_v25, %v7248_v25  ;;  %v7250_v46 = vadd.f32 %v5154_v40, %v12115_v51 }
 0x3dd   : > { %5541 = vst.msk [vmem:[%s12168_s7 + $0x58] sm:$0xf] %vm5518_vm6, %v5912_v35  ;;  %v5913_v30 = vpack.c.bf16 %v7249_v18, %v7249_v18 }
 0x3de   : > { %5539 = vst.msk [vmem:[%s12168_s7 + $0x50] sm:$0xf] %vm5518_vm6, %v5910_v19  ;;  %v5911_v29 = vpack.c.bf16 %v7250_v46, %v7250_v46 }
 0x3df   : > { %5542 = vst.msk [vmem:[%s12168_s7 + $0x5c] sm:$0xf] %vm5518_vm6, %v5913_v30 }
 0x3e0   : > { %5540 = vst.msk [vmem:[%s12168_s7 + $0x54] sm:$0xf] %vm5518_vm6, %v5911_v29  ;;  %v7205_v15 = vpop.f32.mrb[24].mxu1 }
 0x3e1   : > { %v7251_v8 = vadd.f32 %v7205_v15, %v12117_v23  ;;  %v5167_v14 = vpop.f32.mrb[25].mxu1 }
 0x3e2   : > { %v7252_v51 = vadd.f32 %v5167_v14, %v12119_v22  ;;  %v7206_v27 = vpop.f32.mrb[26].mxu1 }
 0x3e3   : > { %v5916_v10 = vpack.c.bf16 %v7251_v8, %v7251_v8  ;;  %v7253_v2 = vadd.f32 %v7206_v27, %v12121_v36  ;;  %v5170_v63 = vpop.f32.mrb[27].mxu1 }
 0x3e4   : > { %v5914_v5 = vpack.c.bf16 %v7252_v51, %v7252_v51  ;;  %v7254_v28 = vadd.f32 %v5170_v63, %v12123_v11 }
 0x3e5   : > { %5545 = vst.msk [vmem:[%s12168_s7 + $0x68] sm:$0xf] %vm5518_vm6, %v5916_v10  ;;  %v5917_v55 = vpack.c.bf16 %v7253_v2, %v7253_v2 }
 0x3e6   : > { %5543 = vst.msk [vmem:[%s12168_s7 + $0x60] sm:$0xf] %vm5518_vm6, %v5914_v5  ;;  %v5915_v12 = vpack.c.bf16 %v7254_v28, %v7254_v28 }
 0x3e7   : > { %5546 = vst.msk [vmem:[%s12168_s7 + $0x6c] sm:$0xf] %vm5518_vm6, %v5917_v55 }
 0x3e8   : > { %5544 = vst.msk [vmem:[%s12168_s7 + $0x64] sm:$0xf] %vm5518_vm6, %v5915_v12  ;;  %v7209_v23 = vpop.f32.mrb[28].mxu1 }
 0x3e9   : > { %v7255_v22 = vadd.f32 %v7209_v23, %v12125_v60  ;;  %v5183_v36 = vpop.f32.mrb[29].mxu1 }
 0x3ea   : > { %v7256_v11 = vadd.f32 %v5183_v36, %v12127_v21  ;;  %v7210_v0 = vpop.f32.mrb[30].mxu1 }
 0x3eb   : > { %v5920_v39 = vpack.c.bf16 %v7255_v22, %v7255_v22  ;;  %v7257_v4 = vadd.f32 %v7210_v0, %v12129_v9  ;;  %v5186_v32 = vpop.f32.mrb[31].mxu1 }
 0x3ec   : > { %v5918_v37 = vpack.c.bf16 %v7256_v11, %v7256_v11  ;;  %v7258_v7 = vadd.f32 %v5186_v32, %v12131_v50 }
 0x3ed   : > { %5549 = vst.msk [vmem:[%s12168_s7 + $0x78] sm:$0xf] %vm5518_vm6, %v5920_v39  ;;  %v5921_v54 = vpack.c.bf16 %v7257_v4, %v7257_v4 }
 0x3ee   : > { %5547 = vst.msk [vmem:[%s12168_s7 + $0x70] sm:$0xf] %vm5518_vm6, %v5918_v37  ;;  %v5919_v17 = vpack.c.bf16 %v7258_v7, %v7258_v7 }
 0x3ef   : > { %5550 = vst.msk [vmem:[%s12168_s7 + $0x7c] sm:$0xf] %vm5518_vm6, %v5921_v54 }
 0x3f0   : > { %5548 = vst.msk [vmem:[%s12168_s7 + $0x74] sm:$0xf] %vm5518_vm6, %v5919_v17  ;;  %v7213_v60 = vpop.f32.mrb[32].mxu1 }
 0x3f1   : > { %v7259_v21 = vadd.f32 %v7213_v60, %v12133_v1  ;;  %v5199_v9 = vpop.f32.mrb[33].mxu1 }
 0x3f2   : > { %v7260_v50 = vadd.f32 %v5199_v9, %v12135_v49  ;;  %v7214_v42 = vpop.f32.mrb[34].mxu1 }
 0x3f3   : > { %v5924_v58 = vpack.c.bf16 %v7259_v21, %v7259_v21  ;;  %v7261_v43 = vadd.f32 %v7214_v42, %v12137_v34  ;;  %v5202_v53 = vpop.f32.mrb[35].mxu1 }
 0x3f4   : > { %v5922_v33 = vpack.c.bf16 %v7260_v50, %v7260_v50  ;;  %v7262_v13 = vadd.f32 %v5202_v53, %v12139_v24 }
 0x3f5   : > { %5553 = vst.msk [vmem:[%s12168_s7 + $0x88] sm:$0xf] %vm5518_vm6, %v5924_v58  ;;  %v5925_v59 = vpack.c.bf16 %v7261_v43, %v7261_v43 }
 0x3f6   : > { %5551 = vst.msk [vmem:[%s12168_s7 + $0x80] sm:$0xf] %vm5518_vm6, %v5922_v33  ;;  %v5923_v26 = vpack.c.bf16 %v7262_v13, %v7262_v13 }
 0x3f7   : > { %5554 = vst.msk [vmem:[%s12168_s7 + $0x8c] sm:$0xf] %vm5518_vm6, %v5925_v59 }
 0x3f8   : > { %5552 = vst.msk [vmem:[%s12168_s7 + $0x84] sm:$0xf] %vm5518_vm6, %v5923_v26  ;;  %v7217_v1 = vpop.f32.mrb[36].mxu1 }
 0x3f9   : > { %v7263_v49 = vadd.f32 %v7217_v1, %v12141_v62  ;;  %v5215_v34 = vpop.f32.mrb[37].mxu1 }
 0x3fa   : > { %v7264_v24 = vadd.f32 %v5215_v34, %v12143_v38  ;;  %v7218_v56 = vpop.f32.mrb[38].mxu1 }
 0x3fb   : > { %v5928_v45 = vpack.c.bf16 %v7263_v49, %v7263_v49  ;;  %v7265_v41 = vadd.f32 %v7218_v56, %v12145_v61  ;;  %v5218_v25 = vpop.f32.mrb[39].mxu1 }
 0x3fc   : > { %v5926_v6 = vpack.c.bf16 %v7264_v24, %v7264_v24  ;;  %v7266_v35 = vadd.f32 %v5218_v25, %v12147_v57 }
 0x3fd   : > { %5557 = vst.msk [vmem:[%s12168_s7 + $0x98] sm:$0xf] %vm5518_vm6, %v5928_v45  ;;  %v5929_v18 = vpack.c.bf16 %v7265_v41, %v7265_v41 }
 0x3fe   : > { %5555 = vst.msk [vmem:[%s12168_s7 + $0x90] sm:$0xf] %vm5518_vm6, %v5926_v6  ;;  %v5927_v40 = vpack.c.bf16 %v7266_v35, %v7266_v35 }
 0x3ff   : > { %5558 = vst.msk [vmem:[%s12168_s7 + $0x9c] sm:$0xf] %vm5518_vm6, %v5929_v18 }
 0x400   : > { %5556 = vst.msk [vmem:[%s12168_s7 + $0x94] sm:$0xf] %vm5518_vm6, %v5927_v40  ;;  %v7221_v62 = vpop.f32.mrb[40].mxu1 }
 0x401   : > { %v7267_v38 = vadd.f32 %v7221_v62, %v12149_v48  ;;  %v5231_v61 = vpop.f32.mrb[41].mxu1 }
 0x402   : > { %v7268_v57 = vadd.f32 %v5231_v61, %v12151_v3  ;;  %v7222_v19 = vpop.f32.mrb[42].mxu1 }
 0x403   : > { %v5932_v46 = vpack.c.bf16 %v7267_v38, %v7267_v38  ;;  %v7269_v30 = vadd.f32 %v7222_v19, %v12153_v31  ;;  %v5234_v29 = vpop.f32.mrb[43].mxu1 }
 0x404   : > { %v5930_v15 = vpack.c.bf16 %v7268_v57, %v7268_v57  ;;  %v7270_v8 = vadd.f32 %v5234_v29, %v12155_v47 }
 0x405   : > { %5561 = vst.msk [vmem:[%s12168_s7 + $0xa8] sm:$0xf] %vm5518_vm6, %v5932_v46  ;;  %v5933_v14 = vpack.c.bf16 %v7269_v30, %v7269_v30 }
 0x406   : > { %5559 = vst.msk [vmem:[%s12168_s7 + $0xa0] sm:$0xf] %vm5518_vm6, %v5930_v15  ;;  %v5931_v51 = vpack.c.bf16 %v7270_v8, %v7270_v8 }
 0x407   : > { %5562 = vst.msk [vmem:[%s12168_s7 + $0xac] sm:$0xf] %vm5518_vm6, %v5933_v14 }
 0x408   : > { %5560 = vst.msk [vmem:[%s12168_s7 + $0xa4] sm:$0xf] %vm5518_vm6, %v5931_v51  ;;  %v7225_v48 = vpop.f32.mrb[44].mxu1 }
 0x409   : > { %v7271_v3 = vadd.f32 %v7225_v48, %v12157_v52  ;;  %v5247_v31 = vpop.f32.mrb[45].mxu1 }
 0x40a   : > { %v7272_v47 = vadd.f32 %v5247_v31, %v12159_v20  ;;  %v7226_v27 = vpop.f32.mrb[46].mxu1 }
 0x40b   : > { %v5936_v10 = vpack.c.bf16 %v7271_v3, %v7271_v3  ;;  %v7273_v2 = vadd.f32 %v7226_v27, %v12161_v44  ;;  %v5250_v63 = vpop.f32.mrb[47].mxu1 }
 0x40c   : > { %v5934_v5 = vpack.c.bf16 %v7272_v47, %v7272_v47  ;;  %v7274_v28 = vadd.f32 %v5250_v63, %v12170_v16 }
 0x40d   : > { %5565 = vst.msk [vmem:[%s12168_s7 + $0xb8] sm:$0xf] %vm5518_vm6, %v5936_v10  ;;  %v5937_v55 = vpack.c.bf16 %v7273_v2, %v7273_v2 }
 0x40e   : > { %5563 = vst.msk [vmem:[%s12168_s7 + $0xb0] sm:$0xf] %vm5518_vm6, %v5934_v5  ;;  %v5935_v12 = vpack.c.bf16 %v7274_v28, %v7274_v28 }
 0x40f   : > { %5566 = vst.msk [vmem:[%s12168_s7 + $0xbc] sm:$0xf] %vm5518_vm6, %v5937_v55 }
 0x410   : > { %5564 = vst.msk [vmem:[%s12168_s7 + $0xb4] sm:$0xf] %vm5518_vm6, %v5935_v12 }
 0x411 PF: > { %s16_s21 = sadd.s32 1, %s7807_s21  }
 0x412   : > { %p13_p4 = scmp.ge.s32.totalorder %s16_s21, 4  }
 0x414   :  { %15 = sbr.rel (!%p13_p4) target bundleno = 1 (0x1), region = 84 }

</bundles_post_ra>
